<compile_context>
chip_gen: v7x
topology: tpu7x:2x2x1
jax: 0.10.0
libtpu: 0.0.40
codegen_flags: <defaults>
</compile_context>

<pallas_src>
import jax
import jax.numpy as jnp
from jax.experimental import pallas as pl
from jax.experimental.pallas import tpu as pltpu


def _make_kernel(tb, C, E):
    """Kernel closure over the static tile sizes (fully unrolled gather)."""

    def kernel(t_idx_ref, c_idx_ref,      # scalar prefetch (SMEM): (B,), (B*C,)
               t_tab_ref, c_tab_ref,      # VMEM-resident tables: (V, E) each
               z_ref,                     # VMEM out block: (1, 1, tb*C)
               tvr_buf, cv_buf):          # VMEM scratch: (tb*C, E) each
        g = pl.program_id(0)
        base = g * tb

        # ---- in-VMEM gather -------------------------------------------------
        # Target row b is written replicated C times (rows b*C .. b*C+C-1) so
        # the contraction is a single bulk VPU pass.  Loops are static Python
        # loops -> fully unrolled, static scratch offsets, no div/mod.
        for b in range(tb):
            t_row = t_idx_ref[base + b]
            tv = t_tab_ref[pl.ds(t_row, 1), :]                          # (1, E)
            tvr_buf[pl.ds(b * C, C), :] = jnp.broadcast_to(tv, (C, E))
            for c in range(C):
                c_row = c_idx_ref[(base + b) * C + c]
                cv_buf[pl.ds(b * C + c, 1), :] = c_tab_ref[pl.ds(c_row, 1), :]

        # ---- VPU contraction: z[j] = sum_e tvr[j,e] * cv[j,e],  j = b*C + c --
        tvr = tvr_buf[...].astype(jnp.float32)                      # (tb*C, E)
        cv = cv_buf[...].astype(jnp.float32)                        # (tb*C, E)
        z = jnp.sum(tvr * cv, axis=1)                               # (tb*C,)
        z_ref[...] = z.reshape(1, 1, tb * C)                        # lane-dense row

    return kernel


def word2vec_forward(targets, contexts, target_table, context_table, *, tb=None):
    """Pallas implementation of Word2Vec.forward (skip-gram scoring)."""
    (B,) = targets.shape
    Bc, C = contexts.shape
    assert Bc == B
    V, E = target_table.shape
    assert context_table.shape == (V, E)
    assert context_table.dtype == target_table.dtype

    if tb is None:
        tb = B if B <= 64 else 64
    assert B % tb == 0, "batch must be divisible by the batch tile"
    G = B // tb

    # ---- VMEM residency gate (v7x has only 64 MiB physical VMEM) -----------
    itemsize = jnp.dtype(target_table.dtype).itemsize
    table_bytes = 2 * V * E * itemsize                 # both tables
    table_bytes_buffered = 2 * table_bytes             # pipeline double-buffer
    scratch_bytes = 2 * tb * C * E * 4                 # tvr_buf + cv_buf (f32)
    out_bytes = 2 * tb * C * 4                         # double-buffered out block
    needed = table_bytes_buffered + scratch_bytes + out_bytes + (4 << 20)
    assert needed <= (48 << 20), (
        "embedding tables too large for VMEM residency on v7x; "
        "use the HBM-gather fallback")
    # TODO(synk): for vocabularies whose combined tables exceed ~24-32 MiB
    # (v7x) add an HBM-resident-table + double-buffered per-row DMA gather path.
    vmem_limit = int(min(48 << 20, max(needed, 16 << 20)))

    t_idx = targets.astype(jnp.int32)                  # (B,)   -> SMEM
    c_idx = contexts.reshape(-1).astype(jnp.int32)     # (B*C,) -> SMEM (1-D: no
    #                                                     2-D SMEM padding blowup)

    # Whole-table blocks with a constant index_map: DMA'd to VMEM once,
    # reused across every grid step.
    tab_spec = pl.BlockSpec((V, E), lambda i, *_: (0, 0))

    z = pl.pallas_call(
        _make_kernel(tb, C, E),
        out_shape=jax.ShapeDtypeStruct((G, 1, tb * C), jnp.float32),
        grid_spec=pltpu.PrefetchScalarGridSpec(
            num_scalar_prefetch=2,                     # targets, flat contexts
            grid=(G,),
            in_specs=[tab_spec, tab_spec],
            out_specs=pl.BlockSpec((1, 1, tb * C), lambda i, *_: (i, 0, 0)),
            scratch_shapes=[
                pltpu.VMEM((tb * C, E), target_table.dtype),   # replicated targets
                pltpu.VMEM((tb * C, E), context_table.dtype),  # gathered contexts
            ],
        ),
        compiler_params=pltpu.CompilerParams(
            dimension_semantics=("parallel",),         # per-step output blocks
            vmem_limit_bytes=vmem_limit,
        ),
    )(t_idx, c_idx, target_table, context_table)

    return z.reshape(B, C)


if __name__ == "__main__":
    # Small, module-consistent shapes.
    VOCAB_SIZE = 512
    EMBEDDING_SIZE = 128
    BATCH = 32
    CONTEXT = 8          # tb * CONTEXT = 128 -> lane-dense per-step output block

    key = jax.random.PRNGKey(0)
    k_tt, k_ct, k_tg, k_cx = jax.random.split(key, 4)

    # Deterministic parameter init (nn.Embedding default ~ N(0, 1)).
    target_table = jax.random.normal(k_tt, (VOCAB_SIZE, EMBEDDING_SIZE),
                                     dtype=jnp.float32)
    context_table = jax.random.normal(k_ct, (VOCAB_SIZE, EMBEDDING_SIZE),
                                      dtype=jnp.float32)

    targets = jax.random.randint(k_tg, (BATCH,), 0, VOCAB_SIZE, dtype=jnp.int32)
    contexts = jax.random.randint(k_cx, (BATCH, CONTEXT), 0, VOCAB_SIZE,
                                  dtype=jnp.int32)

    z = word2vec_forward(targets, contexts, target_table, context_table, tb=16)
    z = jax.block_until_ready(z)

    # Pure-JAX reference for sanity.
    tv_ref = target_table[targets]                 # (B, E)
    cv_ref = context_table[contexts]               # (B, C, E)
    z_ref = jnp.einsum('be,bce->bc', tv_ref, cv_ref)
    assert z.shape == (BATCH, CONTEXT) and z.dtype == jnp.float32
    assert jnp.allclose(z, z_ref, atol=1e-3, rtol=1e-3), "mismatch vs reference"

    print("KERNEL_OK")
</pallas_src>

<mosaic_0001>
module attributes {stable_mosaic.version = 11 : i64} {
  func.func @kernel(%arg0: i32, %arg1: memref<32xi32, #tpu.memory_space<smem>>, %arg2: memref<256xi32, #tpu.memory_space<smem>>, %arg3: memref<512x128xf32, #tpu.memory_space<vmem>>, %arg4: memref<512x128xf32, #tpu.memory_space<vmem>>, %arg5: memref<1x1x128xf32, #tpu.memory_space<vmem>>, %arg6: memref<128x128xf32, #tpu.memory_space<vmem>>, %arg7: memref<128x128xf32, #tpu.memory_space<vmem>>) attributes {dimension_semantics = [#tpu.dimension_semantics<parallel>], iteration_bounds = array<i64: 2>, scalar_prefetch = 2 : i64, scratch_operands = 2 : i64, tpu.core_type = #tpu.core_type<tc>, window_params = [{pipeline_mode = #tpu.pipeline_mode<synchronous>, transform_indices = @transform_0, window_bounds = array<i64: 512, 128>}, {pipeline_mode = #tpu.pipeline_mode<synchronous>, transform_indices = @transform_1, window_bounds = array<i64: 512, 128>}, {transform_indices = @transform_2, window_bounds = array<i64: 1, 1, 128>}]} {
    %c16_i32 = arith.constant 16 : i32
    %0 = arith.muli %arg0, %c16_i32 : i32
    %c0_i32 = arith.constant 0 : i32
    %1 = arith.addi %0, %c0_i32 : i32
    %2 = arith.index_cast %1 : i32 to index
    %3 = memref.load %arg1[%2] : memref<32xi32, #tpu.memory_space<smem>>
    %4 = arith.index_cast %3 : i32 to index
    %c0 = arith.constant 0 : index
    %5 = vector.load %arg3[%4, %c0] : memref<512x128xf32, #tpu.memory_space<vmem>>, vector<1x128xf32>
    %6 = vector.shape_cast %5 : vector<1x128xf32> to vector<1x128xf32>
    %7 = vector.broadcast %6 : vector<1x128xf32> to vector<8x128xf32>
    %c0_0 = arith.constant 0 : index
    %c0_1 = arith.constant 0 : index
    %8 = vector.load %arg6[%c0_0, %c0_1] : memref<128x128xf32, #tpu.memory_space<vmem>>, vector<8x128xf32>
    tpu.vector_store %arg6[%c0_0, %c0_1], %7 {strides = array<i32>} : memref<128x128xf32, #tpu.memory_space<vmem>>, vector<8x128xf32>,
    %c0_i32_2 = arith.constant 0 : i32
    %9 = arith.addi %0, %c0_i32_2 : i32
    %c8_i32 = arith.constant 8 : i32
    %10 = arith.muli %9, %c8_i32 : i32
    %c0_i32_3 = arith.constant 0 : i32
    %11 = arith.addi %10, %c0_i32_3 : i32
    %12 = arith.index_cast %11 : i32 to index
    %13 = memref.load %arg2[%12] : memref<256xi32, #tpu.memory_space<smem>>
    %14 = arith.index_cast %13 : i32 to index
    %c0_4 = arith.constant 0 : index
    %15 = vector.load %arg4[%14, %c0_4] : memref<512x128xf32, #tpu.memory_space<vmem>>, vector<1x128xf32>
    %c0_5 = arith.constant 0 : index
    %c0_6 = arith.constant 0 : index
    %16 = vector.load %arg7[%c0_5, %c0_6] : memref<128x128xf32, #tpu.memory_space<vmem>>, vector<1x128xf32>
    tpu.vector_store %arg7[%c0_5, %c0_6], %15 {strides = array<i32>} : memref<128x128xf32, #tpu.memory_space<vmem>>, vector<1x128xf32>,
    %c0_i32_7 = arith.constant 0 : i32
    %17 = arith.addi %0, %c0_i32_7 : i32
    %c8_i32_8 = arith.constant 8 : i32
    %18 = arith.muli %17, %c8_i32_8 : i32
    %c1_i32 = arith.constant 1 : i32
    %19 = arith.addi %18, %c1_i32 : i32
    %20 = arith.index_cast %19 : i32 to index
    %21 = memref.load %arg2[%20] : memref<256xi32, #tpu.memory_space<smem>>
    %22 = arith.index_cast %21 : i32 to index
    %c0_9 = arith.constant 0 : index
    %23 = vector.load %arg4[%22, %c0_9] : memref<512x128xf32, #tpu.memory_space<vmem>>, vector<1x128xf32>
    %c1 = arith.constant 1 : index
    %c0_10 = arith.constant 0 : index
    %24 = vector.load %arg7[%c1, %c0_10] : memref<128x128xf32, #tpu.memory_space<vmem>>, vector<1x128xf32>
    tpu.vector_store %arg7[%c1, %c0_10], %23 {strides = array<i32>} : memref<128x128xf32, #tpu.memory_space<vmem>>, vector<1x128xf32>,
    %c0_i32_11 = arith.constant 0 : i32
    %25 = arith.addi %0, %c0_i32_11 : i32
    %c8_i32_12 = arith.constant 8 : i32
    %26 = arith.muli %25, %c8_i32_12 : i32
    %c2_i32 = arith.constant 2 : i32
    %27 = arith.addi %26, %c2_i32 : i32
    %28 = arith.index_cast %27 : i32 to index
    %29 = memref.load %arg2[%28] : memref<256xi32, #tpu.memory_space<smem>>
    %30 = arith.index_cast %29 : i32 to index
    %c0_13 = arith.constant 0 : index
    %31 = vector.load %arg4[%30, %c0_13] : memref<512x128xf32, #tpu.memory_space<vmem>>, vector<1x128xf32>
    %c2 = arith.constant 2 : index
    %c0_14 = arith.constant 0 : index
    %32 = vector.load %arg7[%c2, %c0_14] : memref<128x128xf32, #tpu.memory_space<vmem>>, vector<1x128xf32>
    tpu.vector_store %arg7[%c2, %c0_14], %31 {strides = array<i32>} : memref<128x128xf32, #tpu.memory_space<vmem>>, vector<1x128xf32>,
    %c0_i32_15 = arith.constant 0 : i32
    %33 = arith.addi %0, %c0_i32_15 : i32
    %c8_i32_16 = arith.constant 8 : i32
    %34 = arith.muli %33, %c8_i32_16 : i32
    %c3_i32 = arith.constant 3 : i32
    %35 = arith.addi %34, %c3_i32 : i32
    %36 = arith.index_cast %35 : i32 to index
    %37 = memref.load %arg2[%36] : memref<256xi32, #tpu.memory_space<smem>>
    %38 = arith.index_cast %37 : i32 to index
    %c0_17 = arith.constant 0 : index
    %39 = vector.load %arg4[%38, %c0_17] : memref<512x128xf32, #tpu.memory_space<vmem>>, vector<1x128xf32>
    %c3 = arith.constant 3 : index
    %c0_18 = arith.constant 0 : index
    %40 = vector.load %arg7[%c3, %c0_18] : memref<128x128xf32, #tpu.memory_space<vmem>>, vector<1x128xf32>
    tpu.vector_store %arg7[%c3, %c0_18], %39 {strides = array<i32>} : memref<128x128xf32, #tpu.memory_space<vmem>>, vector<1x128xf32>,
    %c0_i32_19 = arith.constant 0 : i32
    %41 = arith.addi %0, %c0_i32_19 : i32
    %c8_i32_20 = arith.constant 8 : i32
    %42 = arith.muli %41, %c8_i32_20 : i32
    %c4_i32 = arith.constant 4 : i32
    %43 = arith.addi %42, %c4_i32 : i32
    %44 = arith.index_cast %43 : i32 to index
    %45 = memref.load %arg2[%44] : memref<256xi32, #tpu.memory_space<smem>>
    %46 = arith.index_cast %45 : i32 to index
    %c0_21 = arith.constant 0 : index
    %47 = vector.load %arg4[%46, %c0_21] : memref<512x128xf32, #tpu.memory_space<vmem>>, vector<1x128xf32>
    %c4 = arith.constant 4 : index
    %c0_22 = arith.constant 0 : index
    %48 = vector.load %arg7[%c4, %c0_22] : memref<128x128xf32, #tpu.memory_space<vmem>>, vector<1x128xf32>
    tpu.vector_store %arg7[%c4, %c0_22], %47 {strides = array<i32>} : memref<128x128xf32, #tpu.memory_space<vmem>>, vector<1x128xf32>,
    %c0_i32_23 = arith.constant 0 : i32
    %49 = arith.addi %0, %c0_i32_23 : i32
    %c8_i32_24 = arith.constant 8 : i32
    %50 = arith.muli %49, %c8_i32_24 : i32
    %c5_i32 = arith.constant 5 : i32
    %51 = arith.addi %50, %c5_i32 : i32
    %52 = arith.index_cast %51 : i32 to index
    %53 = memref.load %arg2[%52] : memref<256xi32, #tpu.memory_space<smem>>
    %54 = arith.index_cast %53 : i32 to index
    %c0_25 = arith.constant 0 : index
    %55 = vector.load %arg4[%54, %c0_25] : memref<512x128xf32, #tpu.memory_space<vmem>>, vector<1x128xf32>
    %c5 = arith.constant 5 : index
    %c0_26 = arith.constant 0 : index
    %56 = vector.load %arg7[%c5, %c0_26] : memref<128x128xf32, #tpu.memory_space<vmem>>, vector<1x128xf32>
    tpu.vector_store %arg7[%c5, %c0_26], %55 {strides = array<i32>} : memref<128x128xf32, #tpu.memory_space<vmem>>, vector<1x128xf32>,
    %c0_i32_27 = arith.constant 0 : i32
    %57 = arith.addi %0, %c0_i32_27 : i32
    %c8_i32_28 = arith.constant 8 : i32
    %58 = arith.muli %57, %c8_i32_28 : i32
    %c6_i32 = arith.constant 6 : i32
    %59 = arith.addi %58, %c6_i32 : i32
    %60 = arith.index_cast %59 : i32 to index
    %61 = memref.load %arg2[%60] : memref<256xi32, #tpu.memory_space<smem>>
    %62 = arith.index_cast %61 : i32 to index
    %c0_29 = arith.constant 0 : index
    %63 = vector.load %arg4[%62, %c0_29] : memref<512x128xf32, #tpu.memory_space<vmem>>, vector<1x128xf32>
    %c6 = arith.constant 6 : index
    %c0_30 = arith.constant 0 : index
    %64 = vector.load %arg7[%c6, %c0_30] : memref<128x128xf32, #tpu.memory_space<vmem>>, vector<1x128xf32>
    tpu.vector_store %arg7[%c6, %c0_30], %63 {strides = array<i32>} : memref<128x128xf32, #tpu.memory_space<vmem>>, vector<1x128xf32>,
    %c0_i32_31 = arith.constant 0 : i32
    %65 = arith.addi %0, %c0_i32_31 : i32
    %c8_i32_32 = arith.constant 8 : i32
    %66 = arith.muli %65, %c8_i32_32 : i32
    %c7_i32 = arith.constant 7 : i32
    %67 = arith.addi %66, %c7_i32 : i32
    %68 = arith.index_cast %67 : i32 to index
    %69 = memref.load %arg2[%68] : memref<256xi32, #tpu.memory_space<smem>>
    %70 = arith.index_cast %69 : i32 to index
    %c0_33 = arith.constant 0 : index
    %71 = vector.load %arg4[%70, %c0_33] : memref<512x128xf32, #tpu.memory_space<vmem>>, vector<1x128xf32>
    %c7 = arith.constant 7 : index
    %c0_34 = arith.constant 0 : index
    %72 = vector.load %arg7[%c7, %c0_34] : memref<128x128xf32, #tpu.memory_space<vmem>>, vector<1x128xf32>
    tpu.vector_store %arg7[%c7, %c0_34], %71 {strides = array<i32>} : memref<128x128xf32, #tpu.memory_space<vmem>>, vector<1x128xf32>,
    %c1_i32_35 = arith.constant 1 : i32
    %73 = arith.addi %0, %c1_i32_35 : i32
    %74 = arith.index_cast %73 : i32 to index
    %75 = memref.load %arg1[%74] : memref<32xi32, #tpu.memory_space<smem>>
    %76 = arith.index_cast %75 : i32 to index
    %c0_36 = arith.constant 0 : index
    %77 = vector.load %arg3[%76, %c0_36] : memref<512x128xf32, #tpu.memory_space<vmem>>, vector<1x128xf32>
    %78 = vector.shape_cast %77 : vector<1x128xf32> to vector<1x128xf32>
    %79 = vector.broadcast %78 : vector<1x128xf32> to vector<8x128xf32>
    %c8 = arith.constant 8 : index
    %c0_37 = arith.constant 0 : index
    %80 = vector.load %arg6[%c8, %c0_37] : memref<128x128xf32, #tpu.memory_space<vmem>>, vector<8x128xf32>
    tpu.vector_store %arg6[%c8, %c0_37], %79 {strides = array<i32>} : memref<128x128xf32, #tpu.memory_space<vmem>>, vector<8x128xf32>,
    %c1_i32_38 = arith.constant 1 : i32
    %81 = arith.addi %0, %c1_i32_38 : i32
    %c8_i32_39 = arith.constant 8 : i32
    %82 = arith.muli %81, %c8_i32_39 : i32
    %c0_i32_40 = arith.constant 0 : i32
    %83 = arith.addi %82, %c0_i32_40 : i32
    %84 = arith.index_cast %83 : i32 to index
    %85 = memref.load %arg2[%84] : memref<256xi32, #tpu.memory_space<smem>>
    %86 = arith.index_cast %85 : i32 to index
    %c0_41 = arith.constant 0 : index
    %87 = vector.load %arg4[%86, %c0_41] : memref<512x128xf32, #tpu.memory_space<vmem>>, vector<1x128xf32>
    %c8_42 = arith.constant 8 : index
    %c0_43 = arith.constant 0 : index
    %88 = vector.load %arg7[%c8_42, %c0_43] : memref<128x128xf32, #tpu.memory_space<vmem>>, vector<1x128xf32>
    tpu.vector_store %arg7[%c8_42, %c0_43], %87 {strides = array<i32>} : memref<128x128xf32, #tpu.memory_space<vmem>>, vector<1x128xf32>,
    %c1_i32_44 = arith.constant 1 : i32
    %89 = arith.addi %0, %c1_i32_44 : i32
    %c8_i32_45 = arith.constant 8 : i32
    %90 = arith.muli %89, %c8_i32_45 : i32
    %c1_i32_46 = arith.constant 1 : i32
    %91 = arith.addi %90, %c1_i32_46 : i32
    %92 = arith.index_cast %91 : i32 to index
    %93 = memref.load %arg2[%92] : memref<256xi32, #tpu.memory_space<smem>>
    %94 = arith.index_cast %93 : i32 to index
    %c0_47 = arith.constant 0 : index
    %95 = vector.load %arg4[%94, %c0_47] : memref<512x128xf32, #tpu.memory_space<vmem>>, vector<1x128xf32>
    %c9 = arith.constant 9 : index
    %c0_48 = arith.constant 0 : index
    %96 = vector.load %arg7[%c9, %c0_48] : memref<128x128xf32, #tpu.memory_space<vmem>>, vector<1x128xf32>
    tpu.vector_store %arg7[%c9, %c0_48], %95 {strides = array<i32>} : memref<128x128xf32, #tpu.memory_space<vmem>>, vector<1x128xf32>,
    %c1_i32_49 = arith.constant 1 : i32
    %97 = arith.addi %0, %c1_i32_49 : i32
    %c8_i32_50 = arith.constant 8 : i32
    %98 = arith.muli %97, %c8_i32_50 : i32
    %c2_i32_51 = arith.constant 2 : i32
    %99 = arith.addi %98, %c2_i32_51 : i32
    %100 = arith.index_cast %99 : i32 to index
    %101 = memref.load %arg2[%100] : memref<256xi32, #tpu.memory_space<smem>>
    %102 = arith.index_cast %101 : i32 to index
    %c0_52 = arith.constant 0 : index
    %103 = vector.load %arg4[%102, %c0_52] : memref<512x128xf32, #tpu.memory_space<vmem>>, vector<1x128xf32>
    %c10 = arith.constant 10 : index
    %c0_53 = arith.constant 0 : index
    %104 = vector.load %arg7[%c10, %c0_53] : memref<128x128xf32, #tpu.memory_space<vmem>>, vector<1x128xf32>
    tpu.vector_store %arg7[%c10, %c0_53], %103 {strides = array<i32>} : memref<128x128xf32, #tpu.memory_space<vmem>>, vector<1x128xf32>,
    %c1_i32_54 = arith.constant 1 : i32
    %105 = arith.addi %0, %c1_i32_54 : i32
    %c8_i32_55 = arith.constant 8 : i32
    %106 = arith.muli %105, %c8_i32_55 : i32
    %c3_i32_56 = arith.constant 3 : i32
    %107 = arith.addi %106, %c3_i32_56 : i32
    %108 = arith.index_cast %107 : i32 to index
    %109 = memref.load %arg2[%108] : memref<256xi32, #tpu.memory_space<smem>>
    %110 = arith.index_cast %109 : i32 to index
    %c0_57 = arith.constant 0 : index
    %111 = vector.load %arg4[%110, %c0_57] : memref<512x128xf32, #tpu.memory_space<vmem>>, vector<1x128xf32>
    %c11 = arith.constant 11 : index
    %c0_58 = arith.constant 0 : index
    %112 = vector.load %arg7[%c11, %c0_58] : memref<128x128xf32, #tpu.memory_space<vmem>>, vector<1x128xf32>
    tpu.vector_store %arg7[%c11, %c0_58], %111 {strides = array<i32>} : memref<128x128xf32, #tpu.memory_space<vmem>>, vector<1x128xf32>,
    %c1_i32_59 = arith.constant 1 : i32
    %113 = arith.addi %0, %c1_i32_59 : i32
    %c8_i32_60 = arith.constant 8 : i32
    %114 = arith.muli %113, %c8_i32_60 : i32
    %c4_i32_61 = arith.constant 4 : i32
    %115 = arith.addi %114, %c4_i32_61 : i32
    %116 = arith.index_cast %115 : i32 to index
    %117 = memref.load %arg2[%116] : memref<256xi32, #tpu.memory_space<smem>>
    %118 = arith.index_cast %117 : i32 to index
    %c0_62 = arith.constant 0 : index
    %119 = vector.load %arg4[%118, %c0_62] : memref<512x128xf32, #tpu.memory_space<vmem>>, vector<1x128xf32>
    %c12 = arith.constant 12 : index
    %c0_63 = arith.constant 0 : index
    %120 = vector.load %arg7[%c12, %c0_63] : memref<128x128xf32, #tpu.memory_space<vmem>>, vector<1x128xf32>
    tpu.vector_store %arg7[%c12, %c0_63], %119 {strides = array<i32>} : memref<128x128xf32, #tpu.memory_space<vmem>>, vector<1x128xf32>,
    %c1_i32_64 = arith.constant 1 : i32
    %121 = arith.addi %0, %c1_i32_64 : i32
    %c8_i32_65 = arith.constant 8 : i32
    %122 = arith.muli %121, %c8_i32_65 : i32
    %c5_i32_66 = arith.constant 5 : i32
    %123 = arith.addi %122, %c5_i32_66 : i32
    %124 = arith.index_cast %123 : i32 to index
    %125 = memref.load %arg2[%124] : memref<256xi32, #tpu.memory_space<smem>>
    %126 = arith.index_cast %125 : i32 to index
    %c0_67 = arith.constant 0 : index
    %127 = vector.load %arg4[%126, %c0_67] : memref<512x128xf32, #tpu.memory_space<vmem>>, vector<1x128xf32>
    %c13 = arith.constant 13 : index
    %c0_68 = arith.constant 0 : index
    %128 = vector.load %arg7[%c13, %c0_68] : memref<128x128xf32, #tpu.memory_space<vmem>>, vector<1x128xf32>
    tpu.vector_store %arg7[%c13, %c0_68], %127 {strides = array<i32>} : memref<128x128xf32, #tpu.memory_space<vmem>>, vector<1x128xf32>,
    %c1_i32_69 = arith.constant 1 : i32
    %129 = arith.addi %0, %c1_i32_69 : i32
    %c8_i32_70 = arith.constant 8 : i32
    %130 = arith.muli %129, %c8_i32_70 : i32
    %c6_i32_71 = arith.constant 6 : i32
    %131 = arith.addi %130, %c6_i32_71 : i32
    %132 = arith.index_cast %131 : i32 to index
    %133 = memref.load %arg2[%132] : memref<256xi32, #tpu.memory_space<smem>>
    %134 = arith.index_cast %133 : i32 to index
    %c0_72 = arith.constant 0 : index
    %135 = vector.load %arg4[%134, %c0_72] : memref<512x128xf32, #tpu.memory_space<vmem>>, vector<1x128xf32>
    %c14 = arith.constant 14 : index
    %c0_73 = arith.constant 0 : index
    %136 = vector.load %arg7[%c14, %c0_73] : memref<128x128xf32, #tpu.memory_space<vmem>>, vector<1x128xf32>
    tpu.vector_store %arg7[%c14, %c0_73], %135 {strides = array<i32>} : memref<128x128xf32, #tpu.memory_space<vmem>>, vector<1x128xf32>,
    %c1_i32_74 = arith.constant 1 : i32
    %137 = arith.addi %0, %c1_i32_74 : i32
    %c8_i32_75 = arith.constant 8 : i32
    %138 = arith.muli %137, %c8_i32_75 : i32
    %c7_i32_76 = arith.constant 7 : i32
    %139 = arith.addi %138, %c7_i32_76 : i32
    %140 = arith.index_cast %139 : i32 to index
    %141 = memref.load %arg2[%140] : memref<256xi32, #tpu.memory_space<smem>>
    %142 = arith.index_cast %141 : i32 to index
    %c0_77 = arith.constant 0 : index
    %143 = vector.load %arg4[%142, %c0_77] : memref<512x128xf32, #tpu.memory_space<vmem>>, vector<1x128xf32>
    %c15 = arith.constant 15 : index
    %c0_78 = arith.constant 0 : index
    %144 = vector.load %arg7[%c15, %c0_78] : memref<128x128xf32, #tpu.memory_space<vmem>>, vector<1x128xf32>
    tpu.vector_store %arg7[%c15, %c0_78], %143 {strides = array<i32>} : memref<128x128xf32, #tpu.memory_space<vmem>>, vector<1x128xf32>,
    %c2_i32_79 = arith.constant 2 : i32
    %145 = arith.addi %0, %c2_i32_79 : i32
    %146 = arith.index_cast %145 : i32 to index
    %147 = memref.load %arg1[%146] : memref<32xi32, #tpu.memory_space<smem>>
    %148 = arith.index_cast %147 : i32 to index
    %c0_80 = arith.constant 0 : index
    %149 = vector.load %arg3[%148, %c0_80] : memref<512x128xf32, #tpu.memory_space<vmem>>, vector<1x128xf32>
    %150 = vector.shape_cast %149 : vector<1x128xf32> to vector<1x128xf32>
    %151 = vector.broadcast %150 : vector<1x128xf32> to vector<8x128xf32>
    %c16 = arith.constant 16 : index
    %c0_81 = arith.constant 0 : index
    %152 = vector.load %arg6[%c16, %c0_81] : memref<128x128xf32, #tpu.memory_space<vmem>>, vector<8x128xf32>
    tpu.vector_store %arg6[%c16, %c0_81], %151 {strides = array<i32>} : memref<128x128xf32, #tpu.memory_space<vmem>>, vector<8x128xf32>,
    %c2_i32_82 = arith.constant 2 : i32
    %153 = arith.addi %0, %c2_i32_82 : i32
    %c8_i32_83 = arith.constant 8 : i32
    %154 = arith.muli %153, %c8_i32_83 : i32
    %c0_i32_84 = arith.constant 0 : i32
    %155 = arith.addi %154, %c0_i32_84 : i32
    %156 = arith.index_cast %155 : i32 to index
    %157 = memref.load %arg2[%156] : memref<256xi32, #tpu.memory_space<smem>>
    %158 = arith.index_cast %157 : i32 to index
    %c0_85 = arith.constant 0 : index
    %159 = vector.load %arg4[%158, %c0_85] : memref<512x128xf32, #tpu.memory_space<vmem>>, vector<1x128xf32>
    %c16_86 = arith.constant 16 : index
    %c0_87 = arith.constant 0 : index
    %160 = vector.load %arg7[%c16_86, %c0_87] : memref<128x128xf32, #tpu.memory_space<vmem>>, vector<1x128xf32>
    tpu.vector_store %arg7[%c16_86, %c0_87], %159 {strides = array<i32>} : memref<128x128xf32, #tpu.memory_space<vmem>>, vector<1x128xf32>,
    %c2_i32_88 = arith.constant 2 : i32
    %161 = arith.addi %0, %c2_i32_88 : i32
    %c8_i32_89 = arith.constant 8 : i32
    %162 = arith.muli %161, %c8_i32_89 : i32
    %c1_i32_90 = arith.constant 1 : i32
    %163 = arith.addi %162, %c1_i32_90 : i32
    %164 = arith.index_cast %163 : i32 to index
    %165 = memref.load %arg2[%164] : memref<256xi32, #tpu.memory_space<smem>>
    %166 = arith.index_cast %165 : i32 to index
    %c0_91 = arith.constant 0 : index
    %167 = vector.load %arg4[%166, %c0_91] : memref<512x128xf32, #tpu.memory_space<vmem>>, vector<1x128xf32>
    %c17 = arith.constant 17 : index
    %c0_92 = arith.constant 0 : index
    %168 = vector.load %arg7[%c17, %c0_92] : memref<128x128xf32, #tpu.memory_space<vmem>>, vector<1x128xf32>
    tpu.vector_store %arg7[%c17, %c0_92], %167 {strides = array<i32>} : memref<128x128xf32, #tpu.memory_space<vmem>>, vector<1x128xf32>,
    %c2_i32_93 = arith.constant 2 : i32
    %169 = arith.addi %0, %c2_i32_93 : i32
    %c8_i32_94 = arith.constant 8 : i32
    %170 = arith.muli %169, %c8_i32_94 : i32
    %c2_i32_95 = arith.constant 2 : i32
    %171 = arith.addi %170, %c2_i32_95 : i32
    %172 = arith.index_cast %171 : i32 to index
    %173 = memref.load %arg2[%172] : memref<256xi32, #tpu.memory_space<smem>>
    %174 = arith.index_cast %173 : i32 to index
    %c0_96 = arith.constant 0 : index
    %175 = vector.load %arg4[%174, %c0_96] : memref<512x128xf32, #tpu.memory_space<vmem>>, vector<1x128xf32>
    %c18 = arith.constant 18 : index
    %c0_97 = arith.constant 0 : index
    %176 = vector.load %arg7[%c18, %c0_97] : memref<128x128xf32, #tpu.memory_space<vmem>>, vector<1x128xf32>
    tpu.vector_store %arg7[%c18, %c0_97], %175 {strides = array<i32>} : memref<128x128xf32, #tpu.memory_space<vmem>>, vector<1x128xf32>,
    %c2_i32_98 = arith.constant 2 : i32
    %177 = arith.addi %0, %c2_i32_98 : i32
    %c8_i32_99 = arith.constant 8 : i32
    %178 = arith.muli %177, %c8_i32_99 : i32
    %c3_i32_100 = arith.constant 3 : i32
    %179 = arith.addi %178, %c3_i32_100 : i32
    %180 = arith.index_cast %179 : i32 to index
    %181 = memref.load %arg2[%180] : memref<256xi32, #tpu.memory_space<smem>>
    %182 = arith.index_cast %181 : i32 to index
    %c0_101 = arith.constant 0 : index
    %183 = vector.load %arg4[%182, %c0_101] : memref<512x128xf32, #tpu.memory_space<vmem>>, vector<1x128xf32>
    %c19 = arith.constant 19 : index
    %c0_102 = arith.constant 0 : index
    %184 = vector.load %arg7[%c19, %c0_102] : memref<128x128xf32, #tpu.memory_space<vmem>>, vector<1x128xf32>
    tpu.vector_store %arg7[%c19, %c0_102], %183 {strides = array<i32>} : memref<128x128xf32, #tpu.memory_space<vmem>>, vector<1x128xf32>,
    %c2_i32_103 = arith.constant 2 : i32
    %185 = arith.addi %0, %c2_i32_103 : i32
    %c8_i32_104 = arith.constant 8 : i32
    %186 = arith.muli %185, %c8_i32_104 : i32
    %c4_i32_105 = arith.constant 4 : i32
    %187 = arith.addi %186, %c4_i32_105 : i32
    %188 = arith.index_cast %187 : i32 to index
    %189 = memref.load %arg2[%188] : memref<256xi32, #tpu.memory_space<smem>>
    %190 = arith.index_cast %189 : i32 to index
    %c0_106 = arith.constant 0 : index
    %191 = vector.load %arg4[%190, %c0_106] : memref<512x128xf32, #tpu.memory_space<vmem>>, vector<1x128xf32>
    %c20 = arith.constant 20 : index
    %c0_107 = arith.constant 0 : index
    %192 = vector.load %arg7[%c20, %c0_107] : memref<128x128xf32, #tpu.memory_space<vmem>>, vector<1x128xf32>
    tpu.vector_store %arg7[%c20, %c0_107], %191 {strides = array<i32>} : memref<128x128xf32, #tpu.memory_space<vmem>>, vector<1x128xf32>,
    %c2_i32_108 = arith.constant 2 : i32
    %193 = arith.addi %0, %c2_i32_108 : i32
    %c8_i32_109 = arith.constant 8 : i32
    %194 = arith.muli %193, %c8_i32_109 : i32
    %c5_i32_110 = arith.constant 5 : i32
    %195 = arith.addi %194, %c5_i32_110 : i32
    %196 = arith.index_cast %195 : i32 to index
    %197 = memref.load %arg2[%196] : memref<256xi32, #tpu.memory_space<smem>>
    %198 = arith.index_cast %197 : i32 to index
    %c0_111 = arith.constant 0 : index
    %199 = vector.load %arg4[%198, %c0_111] : memref<512x128xf32, #tpu.memory_space<vmem>>, vector<1x128xf32>
    %c21 = arith.constant 21 : index
    %c0_112 = arith.constant 0 : index
    %200 = vector.load %arg7[%c21, %c0_112] : memref<128x128xf32, #tpu.memory_space<vmem>>, vector<1x128xf32>
    tpu.vector_store %arg7[%c21, %c0_112], %199 {strides = array<i32>} : memref<128x128xf32, #tpu.memory_space<vmem>>, vector<1x128xf32>,
    %c2_i32_113 = arith.constant 2 : i32
    %201 = arith.addi %0, %c2_i32_113 : i32
    %c8_i32_114 = arith.constant 8 : i32
    %202 = arith.muli %201, %c8_i32_114 : i32
    %c6_i32_115 = arith.constant 6 : i32
    %203 = arith.addi %202, %c6_i32_115 : i32
    %204 = arith.index_cast %203 : i32 to index
    %205 = memref.load %arg2[%204] : memref<256xi32, #tpu.memory_space<smem>>
    %206 = arith.index_cast %205 : i32 to index
    %c0_116 = arith.constant 0 : index
    %207 = vector.load %arg4[%206, %c0_116] : memref<512x128xf32, #tpu.memory_space<vmem>>, vector<1x128xf32>
    %c22 = arith.constant 22 : index
    %c0_117 = arith.constant 0 : index
    %208 = vector.load %arg7[%c22, %c0_117] : memref<128x128xf32, #tpu.memory_space<vmem>>, vector<1x128xf32>
    tpu.vector_store %arg7[%c22, %c0_117], %207 {strides = array<i32>} : memref<128x128xf32, #tpu.memory_space<vmem>>, vector<1x128xf32>,
    %c2_i32_118 = arith.constant 2 : i32
    %209 = arith.addi %0, %c2_i32_118 : i32
    %c8_i32_119 = arith.constant 8 : i32
    %210 = arith.muli %209, %c8_i32_119 : i32
    %c7_i32_120 = arith.constant 7 : i32
    %211 = arith.addi %210, %c7_i32_120 : i32
    %212 = arith.index_cast %211 : i32 to index
    %213 = memref.load %arg2[%212] : memref<256xi32, #tpu.memory_space<smem>>
    %214 = arith.index_cast %213 : i32 to index
    %c0_121 = arith.constant 0 : index
    %215 = vector.load %arg4[%214, %c0_121] : memref<512x128xf32, #tpu.memory_space<vmem>>, vector<1x128xf32>
    %c23 = arith.constant 23 : index
    %c0_122 = arith.constant 0 : index
    %216 = vector.load %arg7[%c23, %c0_122] : memref<128x128xf32, #tpu.memory_space<vmem>>, vector<1x128xf32>
    tpu.vector_store %arg7[%c23, %c0_122], %215 {strides = array<i32>} : memref<128x128xf32, #tpu.memory_space<vmem>>, vector<1x128xf32>,
    %c3_i32_123 = arith.constant 3 : i32
    %217 = arith.addi %0, %c3_i32_123 : i32
    %218 = arith.index_cast %217 : i32 to index
    %219 = memref.load %arg1[%218] : memref<32xi32, #tpu.memory_space<smem>>
    %220 = arith.index_cast %219 : i32 to index
    %c0_124 = arith.constant 0 : index
    %221 = vector.load %arg3[%220, %c0_124] : memref<512x128xf32, #tpu.memory_space<vmem>>, vector<1x128xf32>
    %222 = vector.shape_cast %221 : vector<1x128xf32> to vector<1x128xf32>
    %223 = vector.broadcast %222 : vector<1x128xf32> to vector<8x128xf32>
    %c24 = arith.constant 24 : index
    %c0_125 = arith.constant 0 : index
    %224 = vector.load %arg6[%c24, %c0_125] : memref<128x128xf32, #tpu.memory_space<vmem>>, vector<8x128xf32>
    tpu.vector_store %arg6[%c24, %c0_125], %223 {strides = array<i32>} : memref<128x128xf32, #tpu.memory_space<vmem>>, vector<8x128xf32>,
    %c3_i32_126 = arith.constant 3 : i32
    %225 = arith.addi %0, %c3_i32_126 : i32
    %c8_i32_127 = arith.constant 8 : i32
    %226 = arith.muli %225, %c8_i32_127 : i32
    %c0_i32_128 = arith.constant 0 : i32
    %227 = arith.addi %226, %c0_i32_128 : i32
    %228 = arith.index_cast %227 : i32 to index
    %229 = memref.load %arg2[%228] : memref<256xi32, #tpu.memory_space<smem>>
    %230 = arith.index_cast %229 : i32 to index
    %c0_129 = arith.constant 0 : index
    %231 = vector.load %arg4[%230, %c0_129] : memref<512x128xf32, #tpu.memory_space<vmem>>, vector<1x128xf32>
    %c24_130 = arith.constant 24 : index
    %c0_131 = arith.constant 0 : index
    %232 = vector.load %arg7[%c24_130, %c0_131] : memref<128x128xf32, #tpu.memory_space<vmem>>, vector<1x128xf32>
    tpu.vector_store %arg7[%c24_130, %c0_131], %231 {strides = array<i32>} : memref<128x128xf32, #tpu.memory_space<vmem>>, vector<1x128xf32>,
    %c3_i32_132 = arith.constant 3 : i32
    %233 = arith.addi %0, %c3_i32_132 : i32
    %c8_i32_133 = arith.constant 8 : i32
    %234 = arith.muli %233, %c8_i32_133 : i32
    %c1_i32_134 = arith.constant 1 : i32
    %235 = arith.addi %234, %c1_i32_134 : i32
    %236 = arith.index_cast %235 : i32 to index
    %237 = memref.load %arg2[%236] : memref<256xi32, #tpu.memory_space<smem>>
    %238 = arith.index_cast %237 : i32 to index
    %c0_135 = arith.constant 0 : index
    %239 = vector.load %arg4[%238, %c0_135] : memref<512x128xf32, #tpu.memory_space<vmem>>, vector<1x128xf32>
    %c25 = arith.constant 25 : index
    %c0_136 = arith.constant 0 : index
    %240 = vector.load %arg7[%c25, %c0_136] : memref<128x128xf32, #tpu.memory_space<vmem>>, vector<1x128xf32>
    tpu.vector_store %arg7[%c25, %c0_136], %239 {strides = array<i32>} : memref<128x128xf32, #tpu.memory_space<vmem>>, vector<1x128xf32>,
    %c3_i32_137 = arith.constant 3 : i32
    %241 = arith.addi %0, %c3_i32_137 : i32
    %c8_i32_138 = arith.constant 8 : i32
    %242 = arith.muli %241, %c8_i32_138 : i32
    %c2_i32_139 = arith.constant 2 : i32
    %243 = arith.addi %242, %c2_i32_139 : i32
    %244 = arith.index_cast %243 : i32 to index
    %245 = memref.load %arg2[%244] : memref<256xi32, #tpu.memory_space<smem>>
    %246 = arith.index_cast %245 : i32 to index
    %c0_140 = arith.constant 0 : index
    %247 = vector.load %arg4[%246, %c0_140] : memref<512x128xf32, #tpu.memory_space<vmem>>, vector<1x128xf32>
    %c26 = arith.constant 26 : index
    %c0_141 = arith.constant 0 : index
    %248 = vector.load %arg7[%c26, %c0_141] : memref<128x128xf32, #tpu.memory_space<vmem>>, vector<1x128xf32>
    tpu.vector_store %arg7[%c26, %c0_141], %247 {strides = array<i32>} : memref<128x128xf32, #tpu.memory_space<vmem>>, vector<1x128xf32>,
    %c3_i32_142 = arith.constant 3 : i32
    %249 = arith.addi %0, %c3_i32_142 : i32
    %c8_i32_143 = arith.constant 8 : i32
    %250 = arith.muli %249, %c8_i32_143 : i32
    %c3_i32_144 = arith.constant 3 : i32
    %251 = arith.addi %250, %c3_i32_144 : i32
    %252 = arith.index_cast %251 : i32 to index
    %253 = memref.load %arg2[%252] : memref<256xi32, #tpu.memory_space<smem>>
    %254 = arith.index_cast %253 : i32 to index
    %c0_145 = arith.constant 0 : index
    %255 = vector.load %arg4[%254, %c0_145] : memref<512x128xf32, #tpu.memory_space<vmem>>, vector<1x128xf32>
    %c27 = arith.constant 27 : index
    %c0_146 = arith.constant 0 : index
    %256 = vector.load %arg7[%c27, %c0_146] : memref<128x128xf32, #tpu.memory_space<vmem>>, vector<1x128xf32>
    tpu.vector_store %arg7[%c27, %c0_146], %255 {strides = array<i32>} : memref<128x128xf32, #tpu.memory_space<vmem>>, vector<1x128xf32>,
    %c3_i32_147 = arith.constant 3 : i32
    %257 = arith.addi %0, %c3_i32_147 : i32
    %c8_i32_148 = arith.constant 8 : i32
    %258 = arith.muli %257, %c8_i32_148 : i32
    %c4_i32_149 = arith.constant 4 : i32
    %259 = arith.addi %258, %c4_i32_149 : i32
    %260 = arith.index_cast %259 : i32 to index
    %261 = memref.load %arg2[%260] : memref<256xi32, #tpu.memory_space<smem>>
    %262 = arith.index_cast %261 : i32 to index
    %c0_150 = arith.constant 0 : index
    %263 = vector.load %arg4[%262, %c0_150] : memref<512x128xf32, #tpu.memory_space<vmem>>, vector<1x128xf32>
    %c28 = arith.constant 28 : index
    %c0_151 = arith.constant 0 : index
    %264 = vector.load %arg7[%c28, %c0_151] : memref<128x128xf32, #tpu.memory_space<vmem>>, vector<1x128xf32>
    tpu.vector_store %arg7[%c28, %c0_151], %263 {strides = array<i32>} : memref<128x128xf32, #tpu.memory_space<vmem>>, vector<1x128xf32>,
    %c3_i32_152 = arith.constant 3 : i32
    %265 = arith.addi %0, %c3_i32_152 : i32
    %c8_i32_153 = arith.constant 8 : i32
    %266 = arith.muli %265, %c8_i32_153 : i32
    %c5_i32_154 = arith.constant 5 : i32
    %267 = arith.addi %266, %c5_i32_154 : i32
    %268 = arith.index_cast %267 : i32 to index
    %269 = memref.load %arg2[%268] : memref<256xi32, #tpu.memory_space<smem>>
    %270 = arith.index_cast %269 : i32 to index
    %c0_155 = arith.constant 0 : index
    %271 = vector.load %arg4[%270, %c0_155] : memref<512x128xf32, #tpu.memory_space<vmem>>, vector<1x128xf32>
    %c29 = arith.constant 29 : index
    %c0_156 = arith.constant 0 : index
    %272 = vector.load %arg7[%c29, %c0_156] : memref<128x128xf32, #tpu.memory_space<vmem>>, vector<1x128xf32>
    tpu.vector_store %arg7[%c29, %c0_156], %271 {strides = array<i32>} : memref<128x128xf32, #tpu.memory_space<vmem>>, vector<1x128xf32>,
    %c3_i32_157 = arith.constant 3 : i32
    %273 = arith.addi %0, %c3_i32_157 : i32
    %c8_i32_158 = arith.constant 8 : i32
    %274 = arith.muli %273, %c8_i32_158 : i32
    %c6_i32_159 = arith.constant 6 : i32
    %275 = arith.addi %274, %c6_i32_159 : i32
    %276 = arith.index_cast %275 : i32 to index
    %277 = memref.load %arg2[%276] : memref<256xi32, #tpu.memory_space<smem>>
    %278 = arith.index_cast %277 : i32 to index
    %c0_160 = arith.constant 0 : index
    %279 = vector.load %arg4[%278, %c0_160] : memref<512x128xf32, #tpu.memory_space<vmem>>, vector<1x128xf32>
    %c30 = arith.constant 30 : index
    %c0_161 = arith.constant 0 : index
    %280 = vector.load %arg7[%c30, %c0_161] : memref<128x128xf32, #tpu.memory_space<vmem>>, vector<1x128xf32>
    tpu.vector_store %arg7[%c30, %c0_161], %279 {strides = array<i32>} : memref<128x128xf32, #tpu.memory_space<vmem>>, vector<1x128xf32>,
    %c3_i32_162 = arith.constant 3 : i32
    %281 = arith.addi %0, %c3_i32_162 : i32
    %c8_i32_163 = arith.constant 8 : i32
    %282 = arith.muli %281, %c8_i32_163 : i32
    %c7_i32_164 = arith.constant 7 : i32
    %283 = arith.addi %282, %c7_i32_164 : i32
    %284 = arith.index_cast %283 : i32 to index
    %285 = memref.load %arg2[%284] : memref<256xi32, #tpu.memory_space<smem>>
    %286 = arith.index_cast %285 : i32 to index
    %c0_165 = arith.constant 0 : index
    %287 = vector.load %arg4[%286, %c0_165] : memref<512x128xf32, #tpu.memory_space<vmem>>, vector<1x128xf32>
    %c31 = arith.constant 31 : index
    %c0_166 = arith.constant 0 : index
    %288 = vector.load %arg7[%c31, %c0_166] : memref<128x128xf32, #tpu.memory_space<vmem>>, vector<1x128xf32>
    tpu.vector_store %arg7[%c31, %c0_166], %287 {strides = array<i32>} : memref<128x128xf32, #tpu.memory_space<vmem>>, vector<1x128xf32>,
    %c4_i32_167 = arith.constant 4 : i32
    %289 = arith.addi %0, %c4_i32_167 : i32
    %290 = arith.index_cast %289 : i32 to index
    %291 = memref.load %arg1[%290] : memref<32xi32, #tpu.memory_space<smem>>
    %292 = arith.index_cast %291 : i32 to index
    %c0_168 = arith.constant 0 : index
    %293 = vector.load %arg3[%292, %c0_168] : memref<512x128xf32, #tpu.memory_space<vmem>>, vector<1x128xf32>
    %294 = vector.shape_cast %293 : vector<1x128xf32> to vector<1x128xf32>
    %295 = vector.broadcast %294 : vector<1x128xf32> to vector<8x128xf32>
    %c32 = arith.constant 32 : index
    %c0_169 = arith.constant 0 : index
    %296 = vector.load %arg6[%c32, %c0_169] : memref<128x128xf32, #tpu.memory_space<vmem>>, vector<8x128xf32>
    tpu.vector_store %arg6[%c32, %c0_169], %295 {strides = array<i32>} : memref<128x128xf32, #tpu.memory_space<vmem>>, vector<8x128xf32>,
    %c4_i32_170 = arith.constant 4 : i32
    %297 = arith.addi %0, %c4_i32_170 : i32
    %c8_i32_171 = arith.constant 8 : i32
    %298 = arith.muli %297, %c8_i32_171 : i32
    %c0_i32_172 = arith.constant 0 : i32
    %299 = arith.addi %298, %c0_i32_172 : i32
    %300 = arith.index_cast %299 : i32 to index
    %301 = memref.load %arg2[%300] : memref<256xi32, #tpu.memory_space<smem>>
    %302 = arith.index_cast %301 : i32 to index
    %c0_173 = arith.constant 0 : index
    %303 = vector.load %arg4[%302, %c0_173] : memref<512x128xf32, #tpu.memory_space<vmem>>, vector<1x128xf32>
    %c32_174 = arith.constant 32 : index
    %c0_175 = arith.constant 0 : index
    %304 = vector.load %arg7[%c32_174, %c0_175] : memref<128x128xf32, #tpu.memory_space<vmem>>, vector<1x128xf32>
    tpu.vector_store %arg7[%c32_174, %c0_175], %303 {strides = array<i32>} : memref<128x128xf32, #tpu.memory_space<vmem>>, vector<1x128xf32>,
    %c4_i32_176 = arith.constant 4 : i32
    %305 = arith.addi %0, %c4_i32_176 : i32
    %c8_i32_177 = arith.constant 8 : i32
    %306 = arith.muli %305, %c8_i32_177 : i32
    %c1_i32_178 = arith.constant 1 : i32
    %307 = arith.addi %306, %c1_i32_178 : i32
    %308 = arith.index_cast %307 : i32 to index
    %309 = memref.load %arg2[%308] : memref<256xi32, #tpu.memory_space<smem>>
    %310 = arith.index_cast %309 : i32 to index
    %c0_179 = arith.constant 0 : index
    %311 = vector.load %arg4[%310, %c0_179] : memref<512x128xf32, #tpu.memory_space<vmem>>, vector<1x128xf32>
    %c33 = arith.constant 33 : index
    %c0_180 = arith.constant 0 : index
    %312 = vector.load %arg7[%c33, %c0_180] : memref<128x128xf32, #tpu.memory_space<vmem>>, vector<1x128xf32>
    tpu.vector_store %arg7[%c33, %c0_180], %311 {strides = array<i32>} : memref<128x128xf32, #tpu.memory_space<vmem>>, vector<1x128xf32>,
    %c4_i32_181 = arith.constant 4 : i32
    %313 = arith.addi %0, %c4_i32_181 : i32
    %c8_i32_182 = arith.constant 8 : i32
    %314 = arith.muli %313, %c8_i32_182 : i32
    %c2_i32_183 = arith.constant 2 : i32
    %315 = arith.addi %314, %c2_i32_183 : i32
    %316 = arith.index_cast %315 : i32 to index
    %317 = memref.load %arg2[%316] : memref<256xi32, #tpu.memory_space<smem>>
    %318 = arith.index_cast %317 : i32 to index
    %c0_184 = arith.constant 0 : index
    %319 = vector.load %arg4[%318, %c0_184] : memref<512x128xf32, #tpu.memory_space<vmem>>, vector<1x128xf32>
    %c34 = arith.constant 34 : index
    %c0_185 = arith.constant 0 : index
    %320 = vector.load %arg7[%c34, %c0_185] : memref<128x128xf32, #tpu.memory_space<vmem>>, vector<1x128xf32>
    tpu.vector_store %arg7[%c34, %c0_185], %319 {strides = array<i32>} : memref<128x128xf32, #tpu.memory_space<vmem>>, vector<1x128xf32>,
    %c4_i32_186 = arith.constant 4 : i32
    %321 = arith.addi %0, %c4_i32_186 : i32
    %c8_i32_187 = arith.constant 8 : i32
    %322 = arith.muli %321, %c8_i32_187 : i32
    %c3_i32_188 = arith.constant 3 : i32
    %323 = arith.addi %322, %c3_i32_188 : i32
    %324 = arith.index_cast %323 : i32 to index
    %325 = memref.load %arg2[%324] : memref<256xi32, #tpu.memory_space<smem>>
    %326 = arith.index_cast %325 : i32 to index
    %c0_189 = arith.constant 0 : index
    %327 = vector.load %arg4[%326, %c0_189] : memref<512x128xf32, #tpu.memory_space<vmem>>, vector<1x128xf32>
    %c35 = arith.constant 35 : index
    %c0_190 = arith.constant 0 : index
    %328 = vector.load %arg7[%c35, %c0_190] : memref<128x128xf32, #tpu.memory_space<vmem>>, vector<1x128xf32>
    tpu.vector_store %arg7[%c35, %c0_190], %327 {strides = array<i32>} : memref<128x128xf32, #tpu.memory_space<vmem>>, vector<1x128xf32>,
    %c4_i32_191 = arith.constant 4 : i32
    %329 = arith.addi %0, %c4_i32_191 : i32
    %c8_i32_192 = arith.constant 8 : i32
    %330 = arith.muli %329, %c8_i32_192 : i32
    %c4_i32_193 = arith.constant 4 : i32
    %331 = arith.addi %330, %c4_i32_193 : i32
    %332 = arith.index_cast %331 : i32 to index
    %333 = memref.load %arg2[%332] : memref<256xi32, #tpu.memory_space<smem>>
    %334 = arith.index_cast %333 : i32 to index
    %c0_194 = arith.constant 0 : index
    %335 = vector.load %arg4[%334, %c0_194] : memref<512x128xf32, #tpu.memory_space<vmem>>, vector<1x128xf32>
    %c36 = arith.constant 36 : index
    %c0_195 = arith.constant 0 : index
    %336 = vector.load %arg7[%c36, %c0_195] : memref<128x128xf32, #tpu.memory_space<vmem>>, vector<1x128xf32>
    tpu.vector_store %arg7[%c36, %c0_195], %335 {strides = array<i32>} : memref<128x128xf32, #tpu.memory_space<vmem>>, vector<1x128xf32>,
    %c4_i32_196 = arith.constant 4 : i32
    %337 = arith.addi %0, %c4_i32_196 : i32
    %c8_i32_197 = arith.constant 8 : i32
    %338 = arith.muli %337, %c8_i32_197 : i32
    %c5_i32_198 = arith.constant 5 : i32
    %339 = arith.addi %338, %c5_i32_198 : i32
    %340 = arith.index_cast %339 : i32 to index
    %341 = memref.load %arg2[%340] : memref<256xi32, #tpu.memory_space<smem>>
    %342 = arith.index_cast %341 : i32 to index
    %c0_199 = arith.constant 0 : index
    %343 = vector.load %arg4[%342, %c0_199] : memref<512x128xf32, #tpu.memory_space<vmem>>, vector<1x128xf32>
    %c37 = arith.constant 37 : index
    %c0_200 = arith.constant 0 : index
    %344 = vector.load %arg7[%c37, %c0_200] : memref<128x128xf32, #tpu.memory_space<vmem>>, vector<1x128xf32>
    tpu.vector_store %arg7[%c37, %c0_200], %343 {strides = array<i32>} : memref<128x128xf32, #tpu.memory_space<vmem>>, vector<1x128xf32>,
    %c4_i32_201 = arith.constant 4 : i32
    %345 = arith.addi %0, %c4_i32_201 : i32
    %c8_i32_202 = arith.constant 8 : i32
    %346 = arith.muli %345, %c8_i32_202 : i32
    %c6_i32_203 = arith.constant 6 : i32
    %347 = arith.addi %346, %c6_i32_203 : i32
    %348 = arith.index_cast %347 : i32 to index
    %349 = memref.load %arg2[%348] : memref<256xi32, #tpu.memory_space<smem>>
    %350 = arith.index_cast %349 : i32 to index
    %c0_204 = arith.constant 0 : index
    %351 = vector.load %arg4[%350, %c0_204] : memref<512x128xf32, #tpu.memory_space<vmem>>, vector<1x128xf32>
    %c38 = arith.constant 38 : index
    %c0_205 = arith.constant 0 : index
    %352 = vector.load %arg7[%c38, %c0_205] : memref<128x128xf32, #tpu.memory_space<vmem>>, vector<1x128xf32>
    tpu.vector_store %arg7[%c38, %c0_205], %351 {strides = array<i32>} : memref<128x128xf32, #tpu.memory_space<vmem>>, vector<1x128xf32>,
    %c4_i32_206 = arith.constant 4 : i32
    %353 = arith.addi %0, %c4_i32_206 : i32
    %c8_i32_207 = arith.constant 8 : i32
    %354 = arith.muli %353, %c8_i32_207 : i32
    %c7_i32_208 = arith.constant 7 : i32
    %355 = arith.addi %354, %c7_i32_208 : i32
    %356 = arith.index_cast %355 : i32 to index
    %357 = memref.load %arg2[%356] : memref<256xi32, #tpu.memory_space<smem>>
    %358 = arith.index_cast %357 : i32 to index
    %c0_209 = arith.constant 0 : index
    %359 = vector.load %arg4[%358, %c0_209] : memref<512x128xf32, #tpu.memory_space<vmem>>, vector<1x128xf32>
    %c39 = arith.constant 39 : index
    %c0_210 = arith.constant 0 : index
    %360 = vector.load %arg7[%c39, %c0_210] : memref<128x128xf32, #tpu.memory_space<vmem>>, vector<1x128xf32>
    tpu.vector_store %arg7[%c39, %c0_210], %359 {strides = array<i32>} : memref<128x128xf32, #tpu.memory_space<vmem>>, vector<1x128xf32>,
    %c5_i32_211 = arith.constant 5 : i32
    %361 = arith.addi %0, %c5_i32_211 : i32
    %362 = arith.index_cast %361 : i32 to index
    %363 = memref.load %arg1[%362] : memref<32xi32, #tpu.memory_space<smem>>
    %364 = arith.index_cast %363 : i32 to index
    %c0_212 = arith.constant 0 : index
    %365 = vector.load %arg3[%364, %c0_212] : memref<512x128xf32, #tpu.memory_space<vmem>>, vector<1x128xf32>
    %366 = vector.shape_cast %365 : vector<1x128xf32> to vector<1x128xf32>
    %367 = vector.broadcast %366 : vector<1x128xf32> to vector<8x128xf32>
    %c40 = arith.constant 40 : index
    %c0_213 = arith.constant 0 : index
    %368 = vector.load %arg6[%c40, %c0_213] : memref<128x128xf32, #tpu.memory_space<vmem>>, vector<8x128xf32>
    tpu.vector_store %arg6[%c40, %c0_213], %367 {strides = array<i32>} : memref<128x128xf32, #tpu.memory_space<vmem>>, vector<8x128xf32>,
    %c5_i32_214 = arith.constant 5 : i32
    %369 = arith.addi %0, %c5_i32_214 : i32
    %c8_i32_215 = arith.constant 8 : i32
    %370 = arith.muli %369, %c8_i32_215 : i32
    %c0_i32_216 = arith.constant 0 : i32
    %371 = arith.addi %370, %c0_i32_216 : i32
    %372 = arith.index_cast %371 : i32 to index
    %373 = memref.load %arg2[%372] : memref<256xi32, #tpu.memory_space<smem>>
    %374 = arith.index_cast %373 : i32 to index
    %c0_217 = arith.constant 0 : index
    %375 = vector.load %arg4[%374, %c0_217] : memref<512x128xf32, #tpu.memory_space<vmem>>, vector<1x128xf32>
    %c40_218 = arith.constant 40 : index
    %c0_219 = arith.constant 0 : index
    %376 = vector.load %arg7[%c40_218, %c0_219] : memref<128x128xf32, #tpu.memory_space<vmem>>, vector<1x128xf32>
    tpu.vector_store %arg7[%c40_218, %c0_219], %375 {strides = array<i32>} : memref<128x128xf32, #tpu.memory_space<vmem>>, vector<1x128xf32>,
    %c5_i32_220 = arith.constant 5 : i32
    %377 = arith.addi %0, %c5_i32_220 : i32
    %c8_i32_221 = arith.constant 8 : i32
    %378 = arith.muli %377, %c8_i32_221 : i32
    %c1_i32_222 = arith.constant 1 : i32
    %379 = arith.addi %378, %c1_i32_222 : i32
    %380 = arith.index_cast %379 : i32 to index
    %381 = memref.load %arg2[%380] : memref<256xi32, #tpu.memory_space<smem>>
    %382 = arith.index_cast %381 : i32 to index
    %c0_223 = arith.constant 0 : index
    %383 = vector.load %arg4[%382, %c0_223] : memref<512x128xf32, #tpu.memory_space<vmem>>, vector<1x128xf32>
    %c41 = arith.constant 41 : index
    %c0_224 = arith.constant 0 : index
    %384 = vector.load %arg7[%c41, %c0_224] : memref<128x128xf32, #tpu.memory_space<vmem>>, vector<1x128xf32>
    tpu.vector_store %arg7[%c41, %c0_224], %383 {strides = array<i32>} : memref<128x128xf32, #tpu.memory_space<vmem>>, vector<1x128xf32>,
    %c5_i32_225 = arith.constant 5 : i32
    %385 = arith.addi %0, %c5_i32_225 : i32
    %c8_i32_226 = arith.constant 8 : i32
    %386 = arith.muli %385, %c8_i32_226 : i32
    %c2_i32_227 = arith.constant 2 : i32
    %387 = arith.addi %386, %c2_i32_227 : i32
    %388 = arith.index_cast %387 : i32 to index
    %389 = memref.load %arg2[%388] : memref<256xi32, #tpu.memory_space<smem>>
    %390 = arith.index_cast %389 : i32 to index
    %c0_228 = arith.constant 0 : index
    %391 = vector.load %arg4[%390, %c0_228] : memref<512x128xf32, #tpu.memory_space<vmem>>, vector<1x128xf32>
    %c42 = arith.constant 42 : index
    %c0_229 = arith.constant 0 : index
    %392 = vector.load %arg7[%c42, %c0_229] : memref<128x128xf32, #tpu.memory_space<vmem>>, vector<1x128xf32>
    tpu.vector_store %arg7[%c42, %c0_229], %391 {strides = array<i32>} : memref<128x128xf32, #tpu.memory_space<vmem>>, vector<1x128xf32>,
    %c5_i32_230 = arith.constant 5 : i32
    %393 = arith.addi %0, %c5_i32_230 : i32
    %c8_i32_231 = arith.constant 8 : i32
    %394 = arith.muli %393, %c8_i32_231 : i32
    %c3_i32_232 = arith.constant 3 : i32
    %395 = arith.addi %394, %c3_i32_232 : i32
    %396 = arith.index_cast %395 : i32 to index
    %397 = memref.load %arg2[%396] : memref<256xi32, #tpu.memory_space<smem>>
    %398 = arith.index_cast %397 : i32 to index
    %c0_233 = arith.constant 0 : index
    %399 = vector.load %arg4[%398, %c0_233] : memref<512x128xf32, #tpu.memory_space<vmem>>, vector<1x128xf32>
    %c43 = arith.constant 43 : index
    %c0_234 = arith.constant 0 : index
    %400 = vector.load %arg7[%c43, %c0_234] : memref<128x128xf32, #tpu.memory_space<vmem>>, vector<1x128xf32>
    tpu.vector_store %arg7[%c43, %c0_234], %399 {strides = array<i32>} : memref<128x128xf32, #tpu.memory_space<vmem>>, vector<1x128xf32>,
    %c5_i32_235 = arith.constant 5 : i32
    %401 = arith.addi %0, %c5_i32_235 : i32
    %c8_i32_236 = arith.constant 8 : i32
    %402 = arith.muli %401, %c8_i32_236 : i32
    %c4_i32_237 = arith.constant 4 : i32
    %403 = arith.addi %402, %c4_i32_237 : i32
    %404 = arith.index_cast %403 : i32 to index
    %405 = memref.load %arg2[%404] : memref<256xi32, #tpu.memory_space<smem>>
    %406 = arith.index_cast %405 : i32 to index
    %c0_238 = arith.constant 0 : index
    %407 = vector.load %arg4[%406, %c0_238] : memref<512x128xf32, #tpu.memory_space<vmem>>, vector<1x128xf32>
    %c44 = arith.constant 44 : index
    %c0_239 = arith.constant 0 : index
    %408 = vector.load %arg7[%c44, %c0_239] : memref<128x128xf32, #tpu.memory_space<vmem>>, vector<1x128xf32>
    tpu.vector_store %arg7[%c44, %c0_239], %407 {strides = array<i32>} : memref<128x128xf32, #tpu.memory_space<vmem>>, vector<1x128xf32>,
    %c5_i32_240 = arith.constant 5 : i32
    %409 = arith.addi %0, %c5_i32_240 : i32
    %c8_i32_241 = arith.constant 8 : i32
    %410 = arith.muli %409, %c8_i32_241 : i32
    %c5_i32_242 = arith.constant 5 : i32
    %411 = arith.addi %410, %c5_i32_242 : i32
    %412 = arith.index_cast %411 : i32 to index
    %413 = memref.load %arg2[%412] : memref<256xi32, #tpu.memory_space<smem>>
    %414 = arith.index_cast %413 : i32 to index
    %c0_243 = arith.constant 0 : index
    %415 = vector.load %arg4[%414, %c0_243] : memref<512x128xf32, #tpu.memory_space<vmem>>, vector<1x128xf32>
    %c45 = arith.constant 45 : index
    %c0_244 = arith.constant 0 : index
    %416 = vector.load %arg7[%c45, %c0_244] : memref<128x128xf32, #tpu.memory_space<vmem>>, vector<1x128xf32>
    tpu.vector_store %arg7[%c45, %c0_244], %415 {strides = array<i32>} : memref<128x128xf32, #tpu.memory_space<vmem>>, vector<1x128xf32>,
    %c5_i32_245 = arith.constant 5 : i32
    %417 = arith.addi %0, %c5_i32_245 : i32
    %c8_i32_246 = arith.constant 8 : i32
    %418 = arith.muli %417, %c8_i32_246 : i32
    %c6_i32_247 = arith.constant 6 : i32
    %419 = arith.addi %418, %c6_i32_247 : i32
    %420 = arith.index_cast %419 : i32 to index
    %421 = memref.load %arg2[%420] : memref<256xi32, #tpu.memory_space<smem>>
    %422 = arith.index_cast %421 : i32 to index
    %c0_248 = arith.constant 0 : index
    %423 = vector.load %arg4[%422, %c0_248] : memref<512x128xf32, #tpu.memory_space<vmem>>, vector<1x128xf32>
    %c46 = arith.constant 46 : index
    %c0_249 = arith.constant 0 : index
    %424 = vector.load %arg7[%c46, %c0_249] : memref<128x128xf32, #tpu.memory_space<vmem>>, vector<1x128xf32>
    tpu.vector_store %arg7[%c46, %c0_249], %423 {strides = array<i32>} : memref<128x128xf32, #tpu.memory_space<vmem>>, vector<1x128xf32>,
    %c5_i32_250 = arith.constant 5 : i32
    %425 = arith.addi %0, %c5_i32_250 : i32
    %c8_i32_251 = arith.constant 8 : i32
    %426 = arith.muli %425, %c8_i32_251 : i32
    %c7_i32_252 = arith.constant 7 : i32
    %427 = arith.addi %426, %c7_i32_252 : i32
    %428 = arith.index_cast %427 : i32 to index
    %429 = memref.load %arg2[%428] : memref<256xi32, #tpu.memory_space<smem>>
    %430 = arith.index_cast %429 : i32 to index
    %c0_253 = arith.constant 0 : index
    %431 = vector.load %arg4[%430, %c0_253] : memref<512x128xf32, #tpu.memory_space<vmem>>, vector<1x128xf32>
    %c47 = arith.constant 47 : index
    %c0_254 = arith.constant 0 : index
    %432 = vector.load %arg7[%c47, %c0_254] : memref<128x128xf32, #tpu.memory_space<vmem>>, vector<1x128xf32>
    tpu.vector_store %arg7[%c47, %c0_254], %431 {strides = array<i32>} : memref<128x128xf32, #tpu.memory_space<vmem>>, vector<1x128xf32>,
    %c6_i32_255 = arith.constant 6 : i32
    %433 = arith.addi %0, %c6_i32_255 : i32
    %434 = arith.index_cast %433 : i32 to index
    %435 = memref.load %arg1[%434] : memref<32xi32, #tpu.memory_space<smem>>
    %436 = arith.index_cast %435 : i32 to index
    %c0_256 = arith.constant 0 : index
    %437 = vector.load %arg3[%436, %c0_256] : memref<512x128xf32, #tpu.memory_space<vmem>>, vector<1x128xf32>
    %438 = vector.shape_cast %437 : vector<1x128xf32> to vector<1x128xf32>
    %439 = vector.broadcast %438 : vector<1x128xf32> to vector<8x128xf32>
    %c48 = arith.constant 48 : index
    %c0_257 = arith.constant 0 : index
    %440 = vector.load %arg6[%c48, %c0_257] : memref<128x128xf32, #tpu.memory_space<vmem>>, vector<8x128xf32>
    tpu.vector_store %arg6[%c48, %c0_257], %439 {strides = array<i32>} : memref<128x128xf32, #tpu.memory_space<vmem>>, vector<8x128xf32>,
    %c6_i32_258 = arith.constant 6 : i32
    %441 = arith.addi %0, %c6_i32_258 : i32
    %c8_i32_259 = arith.constant 8 : i32
    %442 = arith.muli %441, %c8_i32_259 : i32
    %c0_i32_260 = arith.constant 0 : i32
    %443 = arith.addi %442, %c0_i32_260 : i32
    %444 = arith.index_cast %443 : i32 to index
    %445 = memref.load %arg2[%444] : memref<256xi32, #tpu.memory_space<smem>>
    %446 = arith.index_cast %445 : i32 to index
    %c0_261 = arith.constant 0 : index
    %447 = vector.load %arg4[%446, %c0_261] : memref<512x128xf32, #tpu.memory_space<vmem>>, vector<1x128xf32>
    %c48_262 = arith.constant 48 : index
    %c0_263 = arith.constant 0 : index
    %448 = vector.load %arg7[%c48_262, %c0_263] : memref<128x128xf32, #tpu.memory_space<vmem>>, vector<1x128xf32>
    tpu.vector_store %arg7[%c48_262, %c0_263], %447 {strides = array<i32>} : memref<128x128xf32, #tpu.memory_space<vmem>>, vector<1x128xf32>,
    %c6_i32_264 = arith.constant 6 : i32
    %449 = arith.addi %0, %c6_i32_264 : i32
    %c8_i32_265 = arith.constant 8 : i32
    %450 = arith.muli %449, %c8_i32_265 : i32
    %c1_i32_266 = arith.constant 1 : i32
    %451 = arith.addi %450, %c1_i32_266 : i32
    %452 = arith.index_cast %451 : i32 to index
    %453 = memref.load %arg2[%452] : memref<256xi32, #tpu.memory_space<smem>>
    %454 = arith.index_cast %453 : i32 to index
    %c0_267 = arith.constant 0 : index
    %455 = vector.load %arg4[%454, %c0_267] : memref<512x128xf32, #tpu.memory_space<vmem>>, vector<1x128xf32>
    %c49 = arith.constant 49 : index
    %c0_268 = arith.constant 0 : index
    %456 = vector.load %arg7[%c49, %c0_268] : memref<128x128xf32, #tpu.memory_space<vmem>>, vector<1x128xf32>
    tpu.vector_store %arg7[%c49, %c0_268], %455 {strides = array<i32>} : memref<128x128xf32, #tpu.memory_space<vmem>>, vector<1x128xf32>,
    %c6_i32_269 = arith.constant 6 : i32
    %457 = arith.addi %0, %c6_i32_269 : i32
    %c8_i32_270 = arith.constant 8 : i32
    %458 = arith.muli %457, %c8_i32_270 : i32
    %c2_i32_271 = arith.constant 2 : i32
    %459 = arith.addi %458, %c2_i32_271 : i32
    %460 = arith.index_cast %459 : i32 to index
    %461 = memref.load %arg2[%460] : memref<256xi32, #tpu.memory_space<smem>>
    %462 = arith.index_cast %461 : i32 to index
    %c0_272 = arith.constant 0 : index
    %463 = vector.load %arg4[%462, %c0_272] : memref<512x128xf32, #tpu.memory_space<vmem>>, vector<1x128xf32>
    %c50 = arith.constant 50 : index
    %c0_273 = arith.constant 0 : index
    %464 = vector.load %arg7[%c50, %c0_273] : memref<128x128xf32, #tpu.memory_space<vmem>>, vector<1x128xf32>
    tpu.vector_store %arg7[%c50, %c0_273], %463 {strides = array<i32>} : memref<128x128xf32, #tpu.memory_space<vmem>>, vector<1x128xf32>,
    %c6_i32_274 = arith.constant 6 : i32
    %465 = arith.addi %0, %c6_i32_274 : i32
    %c8_i32_275 = arith.constant 8 : i32
    %466 = arith.muli %465, %c8_i32_275 : i32
    %c3_i32_276 = arith.constant 3 : i32
    %467 = arith.addi %466, %c3_i32_276 : i32
    %468 = arith.index_cast %467 : i32 to index
    %469 = memref.load %arg2[%468] : memref<256xi32, #tpu.memory_space<smem>>
    %470 = arith.index_cast %469 : i32 to index
    %c0_277 = arith.constant 0 : index
    %471 = vector.load %arg4[%470, %c0_277] : memref<512x128xf32, #tpu.memory_space<vmem>>, vector<1x128xf32>
    %c51 = arith.constant 51 : index
    %c0_278 = arith.constant 0 : index
    %472 = vector.load %arg7[%c51, %c0_278] : memref<128x128xf32, #tpu.memory_space<vmem>>, vector<1x128xf32>
    tpu.vector_store %arg7[%c51, %c0_278], %471 {strides = array<i32>} : memref<128x128xf32, #tpu.memory_space<vmem>>, vector<1x128xf32>,
    %c6_i32_279 = arith.constant 6 : i32
    %473 = arith.addi %0, %c6_i32_279 : i32
    %c8_i32_280 = arith.constant 8 : i32
    %474 = arith.muli %473, %c8_i32_280 : i32
    %c4_i32_281 = arith.constant 4 : i32
    %475 = arith.addi %474, %c4_i32_281 : i32
    %476 = arith.index_cast %475 : i32 to index
    %477 = memref.load %arg2[%476] : memref<256xi32, #tpu.memory_space<smem>>
    %478 = arith.index_cast %477 : i32 to index
    %c0_282 = arith.constant 0 : index
    %479 = vector.load %arg4[%478, %c0_282] : memref<512x128xf32, #tpu.memory_space<vmem>>, vector<1x128xf32>
    %c52 = arith.constant 52 : index
    %c0_283 = arith.constant 0 : index
    %480 = vector.load %arg7[%c52, %c0_283] : memref<128x128xf32, #tpu.memory_space<vmem>>, vector<1x128xf32>
    tpu.vector_store %arg7[%c52, %c0_283], %479 {strides = array<i32>} : memref<128x128xf32, #tpu.memory_space<vmem>>, vector<1x128xf32>,
    %c6_i32_284 = arith.constant 6 : i32
    %481 = arith.addi %0, %c6_i32_284 : i32
    %c8_i32_285 = arith.constant 8 : i32
    %482 = arith.muli %481, %c8_i32_285 : i32
    %c5_i32_286 = arith.constant 5 : i32
    %483 = arith.addi %482, %c5_i32_286 : i32
    %484 = arith.index_cast %483 : i32 to index
    %485 = memref.load %arg2[%484] : memref<256xi32, #tpu.memory_space<smem>>
    %486 = arith.index_cast %485 : i32 to index
    %c0_287 = arith.constant 0 : index
    %487 = vector.load %arg4[%486, %c0_287] : memref<512x128xf32, #tpu.memory_space<vmem>>, vector<1x128xf32>
    %c53 = arith.constant 53 : index
    %c0_288 = arith.constant 0 : index
    %488 = vector.load %arg7[%c53, %c0_288] : memref<128x128xf32, #tpu.memory_space<vmem>>, vector<1x128xf32>
    tpu.vector_store %arg7[%c53, %c0_288], %487 {strides = array<i32>} : memref<128x128xf32, #tpu.memory_space<vmem>>, vector<1x128xf32>,
    %c6_i32_289 = arith.constant 6 : i32
    %489 = arith.addi %0, %c6_i32_289 : i32
    %c8_i32_290 = arith.constant 8 : i32
    %490 = arith.muli %489, %c8_i32_290 : i32
    %c6_i32_291 = arith.constant 6 : i32
    %491 = arith.addi %490, %c6_i32_291 : i32
    %492 = arith.index_cast %491 : i32 to index
    %493 = memref.load %arg2[%492] : memref<256xi32, #tpu.memory_space<smem>>
    %494 = arith.index_cast %493 : i32 to index
    %c0_292 = arith.constant 0 : index
    %495 = vector.load %arg4[%494, %c0_292] : memref<512x128xf32, #tpu.memory_space<vmem>>, vector<1x128xf32>
    %c54 = arith.constant 54 : index
    %c0_293 = arith.constant 0 : index
    %496 = vector.load %arg7[%c54, %c0_293] : memref<128x128xf32, #tpu.memory_space<vmem>>, vector<1x128xf32>
    tpu.vector_store %arg7[%c54, %c0_293], %495 {strides = array<i32>} : memref<128x128xf32, #tpu.memory_space<vmem>>, vector<1x128xf32>,
    %c6_i32_294 = arith.constant 6 : i32
    %497 = arith.addi %0, %c6_i32_294 : i32
    %c8_i32_295 = arith.constant 8 : i32
    %498 = arith.muli %497, %c8_i32_295 : i32
    %c7_i32_296 = arith.constant 7 : i32
    %499 = arith.addi %498, %c7_i32_296 : i32
    %500 = arith.index_cast %499 : i32 to index
    %501 = memref.load %arg2[%500] : memref<256xi32, #tpu.memory_space<smem>>
    %502 = arith.index_cast %501 : i32 to index
    %c0_297 = arith.constant 0 : index
    %503 = vector.load %arg4[%502, %c0_297] : memref<512x128xf32, #tpu.memory_space<vmem>>, vector<1x128xf32>
    %c55 = arith.constant 55 : index
    %c0_298 = arith.constant 0 : index
    %504 = vector.load %arg7[%c55, %c0_298] : memref<128x128xf32, #tpu.memory_space<vmem>>, vector<1x128xf32>
    tpu.vector_store %arg7[%c55, %c0_298], %503 {strides = array<i32>} : memref<128x128xf32, #tpu.memory_space<vmem>>, vector<1x128xf32>,
    %c7_i32_299 = arith.constant 7 : i32
    %505 = arith.addi %0, %c7_i32_299 : i32
    %506 = arith.index_cast %505 : i32 to index
    %507 = memref.load %arg1[%506] : memref<32xi32, #tpu.memory_space<smem>>
    %508 = arith.index_cast %507 : i32 to index
    %c0_300 = arith.constant 0 : index
    %509 = vector.load %arg3[%508, %c0_300] : memref<512x128xf32, #tpu.memory_space<vmem>>, vector<1x128xf32>
    %510 = vector.shape_cast %509 : vector<1x128xf32> to vector<1x128xf32>
    %511 = vector.broadcast %510 : vector<1x128xf32> to vector<8x128xf32>
    %c56 = arith.constant 56 : index
    %c0_301 = arith.constant 0 : index
    %512 = vector.load %arg6[%c56, %c0_301] : memref<128x128xf32, #tpu.memory_space<vmem>>, vector<8x128xf32>
    tpu.vector_store %arg6[%c56, %c0_301], %511 {strides = array<i32>} : memref<128x128xf32, #tpu.memory_space<vmem>>, vector<8x128xf32>,
    %c7_i32_302 = arith.constant 7 : i32
    %513 = arith.addi %0, %c7_i32_302 : i32
    %c8_i32_303 = arith.constant 8 : i32
    %514 = arith.muli %513, %c8_i32_303 : i32
    %c0_i32_304 = arith.constant 0 : i32
    %515 = arith.addi %514, %c0_i32_304 : i32
    %516 = arith.index_cast %515 : i32 to index
    %517 = memref.load %arg2[%516] : memref<256xi32, #tpu.memory_space<smem>>
    %518 = arith.index_cast %517 : i32 to index
    %c0_305 = arith.constant 0 : index
    %519 = vector.load %arg4[%518, %c0_305] : memref<512x128xf32, #tpu.memory_space<vmem>>, vector<1x128xf32>
    %c56_306 = arith.constant 56 : index
    %c0_307 = arith.constant 0 : index
    %520 = vector.load %arg7[%c56_306, %c0_307] : memref<128x128xf32, #tpu.memory_space<vmem>>, vector<1x128xf32>
    tpu.vector_store %arg7[%c56_306, %c0_307], %519 {strides = array<i32>} : memref<128x128xf32, #tpu.memory_space<vmem>>, vector<1x128xf32>,
    %c7_i32_308 = arith.constant 7 : i32
    %521 = arith.addi %0, %c7_i32_308 : i32
    %c8_i32_309 = arith.constant 8 : i32
    %522 = arith.muli %521, %c8_i32_309 : i32
    %c1_i32_310 = arith.constant 1 : i32
    %523 = arith.addi %522, %c1_i32_310 : i32
    %524 = arith.index_cast %523 : i32 to index
    %525 = memref.load %arg2[%524] : memref<256xi32, #tpu.memory_space<smem>>
    %526 = arith.index_cast %525 : i32 to index
    %c0_311 = arith.constant 0 : index
    %527 = vector.load %arg4[%526, %c0_311] : memref<512x128xf32, #tpu.memory_space<vmem>>, vector<1x128xf32>
    %c57 = arith.constant 57 : index
    %c0_312 = arith.constant 0 : index
    %528 = vector.load %arg7[%c57, %c0_312] : memref<128x128xf32, #tpu.memory_space<vmem>>, vector<1x128xf32>
    tpu.vector_store %arg7[%c57, %c0_312], %527 {strides = array<i32>} : memref<128x128xf32, #tpu.memory_space<vmem>>, vector<1x128xf32>,
    %c7_i32_313 = arith.constant 7 : i32
    %529 = arith.addi %0, %c7_i32_313 : i32
    %c8_i32_314 = arith.constant 8 : i32
    %530 = arith.muli %529, %c8_i32_314 : i32
    %c2_i32_315 = arith.constant 2 : i32
    %531 = arith.addi %530, %c2_i32_315 : i32
    %532 = arith.index_cast %531 : i32 to index
    %533 = memref.load %arg2[%532] : memref<256xi32, #tpu.memory_space<smem>>
    %534 = arith.index_cast %533 : i32 to index
    %c0_316 = arith.constant 0 : index
    %535 = vector.load %arg4[%534, %c0_316] : memref<512x128xf32, #tpu.memory_space<vmem>>, vector<1x128xf32>
    %c58 = arith.constant 58 : index
    %c0_317 = arith.constant 0 : index
    %536 = vector.load %arg7[%c58, %c0_317] : memref<128x128xf32, #tpu.memory_space<vmem>>, vector<1x128xf32>
    tpu.vector_store %arg7[%c58, %c0_317], %535 {strides = array<i32>} : memref<128x128xf32, #tpu.memory_space<vmem>>, vector<1x128xf32>,
    %c7_i32_318 = arith.constant 7 : i32
    %537 = arith.addi %0, %c7_i32_318 : i32
    %c8_i32_319 = arith.constant 8 : i32
    %538 = arith.muli %537, %c8_i32_319 : i32
    %c3_i32_320 = arith.constant 3 : i32
    %539 = arith.addi %538, %c3_i32_320 : i32
    %540 = arith.index_cast %539 : i32 to index
    %541 = memref.load %arg2[%540] : memref<256xi32, #tpu.memory_space<smem>>
    %542 = arith.index_cast %541 : i32 to index
    %c0_321 = arith.constant 0 : index
    %543 = vector.load %arg4[%542, %c0_321] : memref<512x128xf32, #tpu.memory_space<vmem>>, vector<1x128xf32>
    %c59 = arith.constant 59 : index
    %c0_322 = arith.constant 0 : index
    %544 = vector.load %arg7[%c59, %c0_322] : memref<128x128xf32, #tpu.memory_space<vmem>>, vector<1x128xf32>
    tpu.vector_store %arg7[%c59, %c0_322], %543 {strides = array<i32>} : memref<128x128xf32, #tpu.memory_space<vmem>>, vector<1x128xf32>,
    %c7_i32_323 = arith.constant 7 : i32
    %545 = arith.addi %0, %c7_i32_323 : i32
    %c8_i32_324 = arith.constant 8 : i32
    %546 = arith.muli %545, %c8_i32_324 : i32
    %c4_i32_325 = arith.constant 4 : i32
    %547 = arith.addi %546, %c4_i32_325 : i32
    %548 = arith.index_cast %547 : i32 to index
    %549 = memref.load %arg2[%548] : memref<256xi32, #tpu.memory_space<smem>>
    %550 = arith.index_cast %549 : i32 to index
    %c0_326 = arith.constant 0 : index
    %551 = vector.load %arg4[%550, %c0_326] : memref<512x128xf32, #tpu.memory_space<vmem>>, vector<1x128xf32>
    %c60 = arith.constant 60 : index
    %c0_327 = arith.constant 0 : index
    %552 = vector.load %arg7[%c60, %c0_327] : memref<128x128xf32, #tpu.memory_space<vmem>>, vector<1x128xf32>
    tpu.vector_store %arg7[%c60, %c0_327], %551 {strides = array<i32>} : memref<128x128xf32, #tpu.memory_space<vmem>>, vector<1x128xf32>,
    %c7_i32_328 = arith.constant 7 : i32
    %553 = arith.addi %0, %c7_i32_328 : i32
    %c8_i32_329 = arith.constant 8 : i32
    %554 = arith.muli %553, %c8_i32_329 : i32
    %c5_i32_330 = arith.constant 5 : i32
    %555 = arith.addi %554, %c5_i32_330 : i32
    %556 = arith.index_cast %555 : i32 to index
    %557 = memref.load %arg2[%556] : memref<256xi32, #tpu.memory_space<smem>>
    %558 = arith.index_cast %557 : i32 to index
    %c0_331 = arith.constant 0 : index
    %559 = vector.load %arg4[%558, %c0_331] : memref<512x128xf32, #tpu.memory_space<vmem>>, vector<1x128xf32>
    %c61 = arith.constant 61 : index
    %c0_332 = arith.constant 0 : index
    %560 = vector.load %arg7[%c61, %c0_332] : memref<128x128xf32, #tpu.memory_space<vmem>>, vector<1x128xf32>
    tpu.vector_store %arg7[%c61, %c0_332], %559 {strides = array<i32>} : memref<128x128xf32, #tpu.memory_space<vmem>>, vector<1x128xf32>,
    %c7_i32_333 = arith.constant 7 : i32
    %561 = arith.addi %0, %c7_i32_333 : i32
    %c8_i32_334 = arith.constant 8 : i32
    %562 = arith.muli %561, %c8_i32_334 : i32
    %c6_i32_335 = arith.constant 6 : i32
    %563 = arith.addi %562, %c6_i32_335 : i32
    %564 = arith.index_cast %563 : i32 to index
    %565 = memref.load %arg2[%564] : memref<256xi32, #tpu.memory_space<smem>>
    %566 = arith.index_cast %565 : i32 to index
    %c0_336 = arith.constant 0 : index
    %567 = vector.load %arg4[%566, %c0_336] : memref<512x128xf32, #tpu.memory_space<vmem>>, vector<1x128xf32>
    %c62 = arith.constant 62 : index
    %c0_337 = arith.constant 0 : index
    %568 = vector.load %arg7[%c62, %c0_337] : memref<128x128xf32, #tpu.memory_space<vmem>>, vector<1x128xf32>
    tpu.vector_store %arg7[%c62, %c0_337], %567 {strides = array<i32>} : memref<128x128xf32, #tpu.memory_space<vmem>>, vector<1x128xf32>,
    %c7_i32_338 = arith.constant 7 : i32
    %569 = arith.addi %0, %c7_i32_338 : i32
    %c8_i32_339 = arith.constant 8 : i32
    %570 = arith.muli %569, %c8_i32_339 : i32
    %c7_i32_340 = arith.constant 7 : i32
    %571 = arith.addi %570, %c7_i32_340 : i32
    %572 = arith.index_cast %571 : i32 to index
    %573 = memref.load %arg2[%572] : memref<256xi32, #tpu.memory_space<smem>>
    %574 = arith.index_cast %573 : i32 to index
    %c0_341 = arith.constant 0 : index
    %575 = vector.load %arg4[%574, %c0_341] : memref<512x128xf32, #tpu.memory_space<vmem>>, vector<1x128xf32>
    %c63 = arith.constant 63 : index
    %c0_342 = arith.constant 0 : index
    %576 = vector.load %arg7[%c63, %c0_342] : memref<128x128xf32, #tpu.memory_space<vmem>>, vector<1x128xf32>
    tpu.vector_store %arg7[%c63, %c0_342], %575 {strides = array<i32>} : memref<128x128xf32, #tpu.memory_space<vmem>>, vector<1x128xf32>,
    %c8_i32_343 = arith.constant 8 : i32
    %577 = arith.addi %0, %c8_i32_343 : i32
    %578 = arith.index_cast %577 : i32 to index
    %579 = memref.load %arg1[%578] : memref<32xi32, #tpu.memory_space<smem>>
    %580 = arith.index_cast %579 : i32 to index
    %c0_344 = arith.constant 0 : index
    %581 = vector.load %arg3[%580, %c0_344] : memref<512x128xf32, #tpu.memory_space<vmem>>, vector<1x128xf32>
    %582 = vector.shape_cast %581 : vector<1x128xf32> to vector<1x128xf32>
    %583 = vector.broadcast %582 : vector<1x128xf32> to vector<8x128xf32>
    %c64 = arith.constant 64 : index
    %c0_345 = arith.constant 0 : index
    %584 = vector.load %arg6[%c64, %c0_345] : memref<128x128xf32, #tpu.memory_space<vmem>>, vector<8x128xf32>
    tpu.vector_store %arg6[%c64, %c0_345], %583 {strides = array<i32>} : memref<128x128xf32, #tpu.memory_space<vmem>>, vector<8x128xf32>,
    %c8_i32_346 = arith.constant 8 : i32
    %585 = arith.addi %0, %c8_i32_346 : i32
    %c8_i32_347 = arith.constant 8 : i32
    %586 = arith.muli %585, %c8_i32_347 : i32
    %c0_i32_348 = arith.constant 0 : i32
    %587 = arith.addi %586, %c0_i32_348 : i32
    %588 = arith.index_cast %587 : i32 to index
    %589 = memref.load %arg2[%588] : memref<256xi32, #tpu.memory_space<smem>>
    %590 = arith.index_cast %589 : i32 to index
    %c0_349 = arith.constant 0 : index
    %591 = vector.load %arg4[%590, %c0_349] : memref<512x128xf32, #tpu.memory_space<vmem>>, vector<1x128xf32>
    %c64_350 = arith.constant 64 : index
    %c0_351 = arith.constant 0 : index
    %592 = vector.load %arg7[%c64_350, %c0_351] : memref<128x128xf32, #tpu.memory_space<vmem>>, vector<1x128xf32>
    tpu.vector_store %arg7[%c64_350, %c0_351], %591 {strides = array<i32>} : memref<128x128xf32, #tpu.memory_space<vmem>>, vector<1x128xf32>,
    %c8_i32_352 = arith.constant 8 : i32
    %593 = arith.addi %0, %c8_i32_352 : i32
    %c8_i32_353 = arith.constant 8 : i32
    %594 = arith.muli %593, %c8_i32_353 : i32
    %c1_i32_354 = arith.constant 1 : i32
    %595 = arith.addi %594, %c1_i32_354 : i32
    %596 = arith.index_cast %595 : i32 to index
    %597 = memref.load %arg2[%596] : memref<256xi32, #tpu.memory_space<smem>>
    %598 = arith.index_cast %597 : i32 to index
    %c0_355 = arith.constant 0 : index
    %599 = vector.load %arg4[%598, %c0_355] : memref<512x128xf32, #tpu.memory_space<vmem>>, vector<1x128xf32>
    %c65 = arith.constant 65 : index
    %c0_356 = arith.constant 0 : index
    %600 = vector.load %arg7[%c65, %c0_356] : memref<128x128xf32, #tpu.memory_space<vmem>>, vector<1x128xf32>
    tpu.vector_store %arg7[%c65, %c0_356], %599 {strides = array<i32>} : memref<128x128xf32, #tpu.memory_space<vmem>>, vector<1x128xf32>,
    %c8_i32_357 = arith.constant 8 : i32
    %601 = arith.addi %0, %c8_i32_357 : i32
    %c8_i32_358 = arith.constant 8 : i32
    %602 = arith.muli %601, %c8_i32_358 : i32
    %c2_i32_359 = arith.constant 2 : i32
    %603 = arith.addi %602, %c2_i32_359 : i32
    %604 = arith.index_cast %603 : i32 to index
    %605 = memref.load %arg2[%604] : memref<256xi32, #tpu.memory_space<smem>>
    %606 = arith.index_cast %605 : i32 to index
    %c0_360 = arith.constant 0 : index
    %607 = vector.load %arg4[%606, %c0_360] : memref<512x128xf32, #tpu.memory_space<vmem>>, vector<1x128xf32>
    %c66 = arith.constant 66 : index
    %c0_361 = arith.constant 0 : index
    %608 = vector.load %arg7[%c66, %c0_361] : memref<128x128xf32, #tpu.memory_space<vmem>>, vector<1x128xf32>
    tpu.vector_store %arg7[%c66, %c0_361], %607 {strides = array<i32>} : memref<128x128xf32, #tpu.memory_space<vmem>>, vector<1x128xf32>,
    %c8_i32_362 = arith.constant 8 : i32
    %609 = arith.addi %0, %c8_i32_362 : i32
    %c8_i32_363 = arith.constant 8 : i32
    %610 = arith.muli %609, %c8_i32_363 : i32
    %c3_i32_364 = arith.constant 3 : i32
    %611 = arith.addi %610, %c3_i32_364 : i32
    %612 = arith.index_cast %611 : i32 to index
    %613 = memref.load %arg2[%612] : memref<256xi32, #tpu.memory_space<smem>>
    %614 = arith.index_cast %613 : i32 to index
    %c0_365 = arith.constant 0 : index
    %615 = vector.load %arg4[%614, %c0_365] : memref<512x128xf32, #tpu.memory_space<vmem>>, vector<1x128xf32>
    %c67 = arith.constant 67 : index
    %c0_366 = arith.constant 0 : index
    %616 = vector.load %arg7[%c67, %c0_366] : memref<128x128xf32, #tpu.memory_space<vmem>>, vector<1x128xf32>
    tpu.vector_store %arg7[%c67, %c0_366], %615 {strides = array<i32>} : memref<128x128xf32, #tpu.memory_space<vmem>>, vector<1x128xf32>,
    %c8_i32_367 = arith.constant 8 : i32
    %617 = arith.addi %0, %c8_i32_367 : i32
    %c8_i32_368 = arith.constant 8 : i32
    %618 = arith.muli %617, %c8_i32_368 : i32
    %c4_i32_369 = arith.constant 4 : i32
    %619 = arith.addi %618, %c4_i32_369 : i32
    %620 = arith.index_cast %619 : i32 to index
    %621 = memref.load %arg2[%620] : memref<256xi32, #tpu.memory_space<smem>>
    %622 = arith.index_cast %621 : i32 to index
    %c0_370 = arith.constant 0 : index
    %623 = vector.load %arg4[%622, %c0_370] : memref<512x128xf32, #tpu.memory_space<vmem>>, vector<1x128xf32>
    %c68 = arith.constant 68 : index
    %c0_371 = arith.constant 0 : index
    %624 = vector.load %arg7[%c68, %c0_371] : memref<128x128xf32, #tpu.memory_space<vmem>>, vector<1x128xf32>
    tpu.vector_store %arg7[%c68, %c0_371], %623 {strides = array<i32>} : memref<128x128xf32, #tpu.memory_space<vmem>>, vector<1x128xf32>,
    %c8_i32_372 = arith.constant 8 : i32
    %625 = arith.addi %0, %c8_i32_372 : i32
    %c8_i32_373 = arith.constant 8 : i32
    %626 = arith.muli %625, %c8_i32_373 : i32
    %c5_i32_374 = arith.constant 5 : i32
    %627 = arith.addi %626, %c5_i32_374 : i32
    %628 = arith.index_cast %627 : i32 to index
    %629 = memref.load %arg2[%628] : memref<256xi32, #tpu.memory_space<smem>>
    %630 = arith.index_cast %629 : i32 to index
    %c0_375 = arith.constant 0 : index
    %631 = vector.load %arg4[%630, %c0_375] : memref<512x128xf32, #tpu.memory_space<vmem>>, vector<1x128xf32>
    %c69 = arith.constant 69 : index
    %c0_376 = arith.constant 0 : index
    %632 = vector.load %arg7[%c69, %c0_376] : memref<128x128xf32, #tpu.memory_space<vmem>>, vector<1x128xf32>
    tpu.vector_store %arg7[%c69, %c0_376], %631 {strides = array<i32>} : memref<128x128xf32, #tpu.memory_space<vmem>>, vector<1x128xf32>,
    %c8_i32_377 = arith.constant 8 : i32
    %633 = arith.addi %0, %c8_i32_377 : i32
    %c8_i32_378 = arith.constant 8 : i32
    %634 = arith.muli %633, %c8_i32_378 : i32
    %c6_i32_379 = arith.constant 6 : i32
    %635 = arith.addi %634, %c6_i32_379 : i32
    %636 = arith.index_cast %635 : i32 to index
    %637 = memref.load %arg2[%636] : memref<256xi32, #tpu.memory_space<smem>>
    %638 = arith.index_cast %637 : i32 to index
    %c0_380 = arith.constant 0 : index
    %639 = vector.load %arg4[%638, %c0_380] : memref<512x128xf32, #tpu.memory_space<vmem>>, vector<1x128xf32>
    %c70 = arith.constant 70 : index
    %c0_381 = arith.constant 0 : index
    %640 = vector.load %arg7[%c70, %c0_381] : memref<128x128xf32, #tpu.memory_space<vmem>>, vector<1x128xf32>
    tpu.vector_store %arg7[%c70, %c0_381], %639 {strides = array<i32>} : memref<128x128xf32, #tpu.memory_space<vmem>>, vector<1x128xf32>,
    %c8_i32_382 = arith.constant 8 : i32
    %641 = arith.addi %0, %c8_i32_382 : i32
    %c8_i32_383 = arith.constant 8 : i32
    %642 = arith.muli %641, %c8_i32_383 : i32
    %c7_i32_384 = arith.constant 7 : i32
    %643 = arith.addi %642, %c7_i32_384 : i32
    %644 = arith.index_cast %643 : i32 to index
    %645 = memref.load %arg2[%644] : memref<256xi32, #tpu.memory_space<smem>>
    %646 = arith.index_cast %645 : i32 to index
    %c0_385 = arith.constant 0 : index
    %647 = vector.load %arg4[%646, %c0_385] : memref<512x128xf32, #tpu.memory_space<vmem>>, vector<1x128xf32>
    %c71 = arith.constant 71 : index
    %c0_386 = arith.constant 0 : index
    %648 = vector.load %arg7[%c71, %c0_386] : memref<128x128xf32, #tpu.memory_space<vmem>>, vector<1x128xf32>
    tpu.vector_store %arg7[%c71, %c0_386], %647 {strides = array<i32>} : memref<128x128xf32, #tpu.memory_space<vmem>>, vector<1x128xf32>,
    %c9_i32 = arith.constant 9 : i32
    %649 = arith.addi %0, %c9_i32 : i32
    %650 = arith.index_cast %649 : i32 to index
    %651 = memref.load %arg1[%650] : memref<32xi32, #tpu.memory_space<smem>>
    %652 = arith.index_cast %651 : i32 to index
    %c0_387 = arith.constant 0 : index
    %653 = vector.load %arg3[%652, %c0_387] : memref<512x128xf32, #tpu.memory_space<vmem>>, vector<1x128xf32>
    %654 = vector.shape_cast %653 : vector<1x128xf32> to vector<1x128xf32>
    %655 = vector.broadcast %654 : vector<1x128xf32> to vector<8x128xf32>
    %c72 = arith.constant 72 : index
    %c0_388 = arith.constant 0 : index
    %656 = vector.load %arg6[%c72, %c0_388] : memref<128x128xf32, #tpu.memory_space<vmem>>, vector<8x128xf32>
    tpu.vector_store %arg6[%c72, %c0_388], %655 {strides = array<i32>} : memref<128x128xf32, #tpu.memory_space<vmem>>, vector<8x128xf32>,
    %c9_i32_389 = arith.constant 9 : i32
    %657 = arith.addi %0, %c9_i32_389 : i32
    %c8_i32_390 = arith.constant 8 : i32
    %658 = arith.muli %657, %c8_i32_390 : i32
    %c0_i32_391 = arith.constant 0 : i32
    %659 = arith.addi %658, %c0_i32_391 : i32
    %660 = arith.index_cast %659 : i32 to index
    %661 = memref.load %arg2[%660] : memref<256xi32, #tpu.memory_space<smem>>
    %662 = arith.index_cast %661 : i32 to index
    %c0_392 = arith.constant 0 : index
    %663 = vector.load %arg4[%662, %c0_392] : memref<512x128xf32, #tpu.memory_space<vmem>>, vector<1x128xf32>
    %c72_393 = arith.constant 72 : index
    %c0_394 = arith.constant 0 : index
    %664 = vector.load %arg7[%c72_393, %c0_394] : memref<128x128xf32, #tpu.memory_space<vmem>>, vector<1x128xf32>
    tpu.vector_store %arg7[%c72_393, %c0_394], %663 {strides = array<i32>} : memref<128x128xf32, #tpu.memory_space<vmem>>, vector<1x128xf32>,
    %c9_i32_395 = arith.constant 9 : i32
    %665 = arith.addi %0, %c9_i32_395 : i32
    %c8_i32_396 = arith.constant 8 : i32
    %666 = arith.muli %665, %c8_i32_396 : i32
    %c1_i32_397 = arith.constant 1 : i32
    %667 = arith.addi %666, %c1_i32_397 : i32
    %668 = arith.index_cast %667 : i32 to index
    %669 = memref.load %arg2[%668] : memref<256xi32, #tpu.memory_space<smem>>
    %670 = arith.index_cast %669 : i32 to index
    %c0_398 = arith.constant 0 : index
    %671 = vector.load %arg4[%670, %c0_398] : memref<512x128xf32, #tpu.memory_space<vmem>>, vector<1x128xf32>
    %c73 = arith.constant 73 : index
    %c0_399 = arith.constant 0 : index
    %672 = vector.load %arg7[%c73, %c0_399] : memref<128x128xf32, #tpu.memory_space<vmem>>, vector<1x128xf32>
    tpu.vector_store %arg7[%c73, %c0_399], %671 {strides = array<i32>} : memref<128x128xf32, #tpu.memory_space<vmem>>, vector<1x128xf32>,
    %c9_i32_400 = arith.constant 9 : i32
    %673 = arith.addi %0, %c9_i32_400 : i32
    %c8_i32_401 = arith.constant 8 : i32
    %674 = arith.muli %673, %c8_i32_401 : i32
    %c2_i32_402 = arith.constant 2 : i32
    %675 = arith.addi %674, %c2_i32_402 : i32
    %676 = arith.index_cast %675 : i32 to index
    %677 = memref.load %arg2[%676] : memref<256xi32, #tpu.memory_space<smem>>
    %678 = arith.index_cast %677 : i32 to index
    %c0_403 = arith.constant 0 : index
    %679 = vector.load %arg4[%678, %c0_403] : memref<512x128xf32, #tpu.memory_space<vmem>>, vector<1x128xf32>
    %c74 = arith.constant 74 : index
    %c0_404 = arith.constant 0 : index
    %680 = vector.load %arg7[%c74, %c0_404] : memref<128x128xf32, #tpu.memory_space<vmem>>, vector<1x128xf32>
    tpu.vector_store %arg7[%c74, %c0_404], %679 {strides = array<i32>} : memref<128x128xf32, #tpu.memory_space<vmem>>, vector<1x128xf32>,
    %c9_i32_405 = arith.constant 9 : i32
    %681 = arith.addi %0, %c9_i32_405 : i32
    %c8_i32_406 = arith.constant 8 : i32
    %682 = arith.muli %681, %c8_i32_406 : i32
    %c3_i32_407 = arith.constant 3 : i32
    %683 = arith.addi %682, %c3_i32_407 : i32
    %684 = arith.index_cast %683 : i32 to index
    %685 = memref.load %arg2[%684] : memref<256xi32, #tpu.memory_space<smem>>
    %686 = arith.index_cast %685 : i32 to index
    %c0_408 = arith.constant 0 : index
    %687 = vector.load %arg4[%686, %c0_408] : memref<512x128xf32, #tpu.memory_space<vmem>>, vector<1x128xf32>
    %c75 = arith.constant 75 : index
    %c0_409 = arith.constant 0 : index
    %688 = vector.load %arg7[%c75, %c0_409] : memref<128x128xf32, #tpu.memory_space<vmem>>, vector<1x128xf32>
    tpu.vector_store %arg7[%c75, %c0_409], %687 {strides = array<i32>} : memref<128x128xf32, #tpu.memory_space<vmem>>, vector<1x128xf32>,
    %c9_i32_410 = arith.constant 9 : i32
    %689 = arith.addi %0, %c9_i32_410 : i32
    %c8_i32_411 = arith.constant 8 : i32
    %690 = arith.muli %689, %c8_i32_411 : i32
    %c4_i32_412 = arith.constant 4 : i32
    %691 = arith.addi %690, %c4_i32_412 : i32
    %692 = arith.index_cast %691 : i32 to index
    %693 = memref.load %arg2[%692] : memref<256xi32, #tpu.memory_space<smem>>
    %694 = arith.index_cast %693 : i32 to index
    %c0_413 = arith.constant 0 : index
    %695 = vector.load %arg4[%694, %c0_413] : memref<512x128xf32, #tpu.memory_space<vmem>>, vector<1x128xf32>
    %c76 = arith.constant 76 : index
    %c0_414 = arith.constant 0 : index
    %696 = vector.load %arg7[%c76, %c0_414] : memref<128x128xf32, #tpu.memory_space<vmem>>, vector<1x128xf32>
    tpu.vector_store %arg7[%c76, %c0_414], %695 {strides = array<i32>} : memref<128x128xf32, #tpu.memory_space<vmem>>, vector<1x128xf32>,
    %c9_i32_415 = arith.constant 9 : i32
    %697 = arith.addi %0, %c9_i32_415 : i32
    %c8_i32_416 = arith.constant 8 : i32
    %698 = arith.muli %697, %c8_i32_416 : i32
    %c5_i32_417 = arith.constant 5 : i32
    %699 = arith.addi %698, %c5_i32_417 : i32
    %700 = arith.index_cast %699 : i32 to index
    %701 = memref.load %arg2[%700] : memref<256xi32, #tpu.memory_space<smem>>
    %702 = arith.index_cast %701 : i32 to index
    %c0_418 = arith.constant 0 : index
    %703 = vector.load %arg4[%702, %c0_418] : memref<512x128xf32, #tpu.memory_space<vmem>>, vector<1x128xf32>
    %c77 = arith.constant 77 : index
    %c0_419 = arith.constant 0 : index
    %704 = vector.load %arg7[%c77, %c0_419] : memref<128x128xf32, #tpu.memory_space<vmem>>, vector<1x128xf32>
    tpu.vector_store %arg7[%c77, %c0_419], %703 {strides = array<i32>} : memref<128x128xf32, #tpu.memory_space<vmem>>, vector<1x128xf32>,
    %c9_i32_420 = arith.constant 9 : i32
    %705 = arith.addi %0, %c9_i32_420 : i32
    %c8_i32_421 = arith.constant 8 : i32
    %706 = arith.muli %705, %c8_i32_421 : i32
    %c6_i32_422 = arith.constant 6 : i32
    %707 = arith.addi %706, %c6_i32_422 : i32
    %708 = arith.index_cast %707 : i32 to index
    %709 = memref.load %arg2[%708] : memref<256xi32, #tpu.memory_space<smem>>
    %710 = arith.index_cast %709 : i32 to index
    %c0_423 = arith.constant 0 : index
    %711 = vector.load %arg4[%710, %c0_423] : memref<512x128xf32, #tpu.memory_space<vmem>>, vector<1x128xf32>
    %c78 = arith.constant 78 : index
    %c0_424 = arith.constant 0 : index
    %712 = vector.load %arg7[%c78, %c0_424] : memref<128x128xf32, #tpu.memory_space<vmem>>, vector<1x128xf32>
    tpu.vector_store %arg7[%c78, %c0_424], %711 {strides = array<i32>} : memref<128x128xf32, #tpu.memory_space<vmem>>, vector<1x128xf32>,
    %c9_i32_425 = arith.constant 9 : i32
    %713 = arith.addi %0, %c9_i32_425 : i32
    %c8_i32_426 = arith.constant 8 : i32
    %714 = arith.muli %713, %c8_i32_426 : i32
    %c7_i32_427 = arith.constant 7 : i32
    %715 = arith.addi %714, %c7_i32_427 : i32
    %716 = arith.index_cast %715 : i32 to index
    %717 = memref.load %arg2[%716] : memref<256xi32, #tpu.memory_space<smem>>
    %718 = arith.index_cast %717 : i32 to index
    %c0_428 = arith.constant 0 : index
    %719 = vector.load %arg4[%718, %c0_428] : memref<512x128xf32, #tpu.memory_space<vmem>>, vector<1x128xf32>
    %c79 = arith.constant 79 : index
    %c0_429 = arith.constant 0 : index
    %720 = vector.load %arg7[%c79, %c0_429] : memref<128x128xf32, #tpu.memory_space<vmem>>, vector<1x128xf32>
    tpu.vector_store %arg7[%c79, %c0_429], %719 {strides = array<i32>} : memref<128x128xf32, #tpu.memory_space<vmem>>, vector<1x128xf32>,
    %c10_i32 = arith.constant 10 : i32
    %721 = arith.addi %0, %c10_i32 : i32
    %722 = arith.index_cast %721 : i32 to index
    %723 = memref.load %arg1[%722] : memref<32xi32, #tpu.memory_space<smem>>
    %724 = arith.index_cast %723 : i32 to index
    %c0_430 = arith.constant 0 : index
    %725 = vector.load %arg3[%724, %c0_430] : memref<512x128xf32, #tpu.memory_space<vmem>>, vector<1x128xf32>
    %726 = vector.shape_cast %725 : vector<1x128xf32> to vector<1x128xf32>
    %727 = vector.broadcast %726 : vector<1x128xf32> to vector<8x128xf32>
    %c80 = arith.constant 80 : index
    %c0_431 = arith.constant 0 : index
    %728 = vector.load %arg6[%c80, %c0_431] : memref<128x128xf32, #tpu.memory_space<vmem>>, vector<8x128xf32>
    tpu.vector_store %arg6[%c80, %c0_431], %727 {strides = array<i32>} : memref<128x128xf32, #tpu.memory_space<vmem>>, vector<8x128xf32>,
    %c10_i32_432 = arith.constant 10 : i32
    %729 = arith.addi %0, %c10_i32_432 : i32
    %c8_i32_433 = arith.constant 8 : i32
    %730 = arith.muli %729, %c8_i32_433 : i32
    %c0_i32_434 = arith.constant 0 : i32
    %731 = arith.addi %730, %c0_i32_434 : i32
    %732 = arith.index_cast %731 : i32 to index
    %733 = memref.load %arg2[%732] : memref<256xi32, #tpu.memory_space<smem>>
    %734 = arith.index_cast %733 : i32 to index
    %c0_435 = arith.constant 0 : index
    %735 = vector.load %arg4[%734, %c0_435] : memref<512x128xf32, #tpu.memory_space<vmem>>, vector<1x128xf32>
    %c80_436 = arith.constant 80 : index
    %c0_437 = arith.constant 0 : index
    %736 = vector.load %arg7[%c80_436, %c0_437] : memref<128x128xf32, #tpu.memory_space<vmem>>, vector<1x128xf32>
    tpu.vector_store %arg7[%c80_436, %c0_437], %735 {strides = array<i32>} : memref<128x128xf32, #tpu.memory_space<vmem>>, vector<1x128xf32>,
    %c10_i32_438 = arith.constant 10 : i32
    %737 = arith.addi %0, %c10_i32_438 : i32
    %c8_i32_439 = arith.constant 8 : i32
    %738 = arith.muli %737, %c8_i32_439 : i32
    %c1_i32_440 = arith.constant 1 : i32
    %739 = arith.addi %738, %c1_i32_440 : i32
    %740 = arith.index_cast %739 : i32 to index
    %741 = memref.load %arg2[%740] : memref<256xi32, #tpu.memory_space<smem>>
    %742 = arith.index_cast %741 : i32 to index
    %c0_441 = arith.constant 0 : index
    %743 = vector.load %arg4[%742, %c0_441] : memref<512x128xf32, #tpu.memory_space<vmem>>, vector<1x128xf32>
    %c81 = arith.constant 81 : index
    %c0_442 = arith.constant 0 : index
    %744 = vector.load %arg7[%c81, %c0_442] : memref<128x128xf32, #tpu.memory_space<vmem>>, vector<1x128xf32>
    tpu.vector_store %arg7[%c81, %c0_442], %743 {strides = array<i32>} : memref<128x128xf32, #tpu.memory_space<vmem>>, vector<1x128xf32>,
    %c10_i32_443 = arith.constant 10 : i32
    %745 = arith.addi %0, %c10_i32_443 : i32
    %c8_i32_444 = arith.constant 8 : i32
    %746 = arith.muli %745, %c8_i32_444 : i32
    %c2_i32_445 = arith.constant 2 : i32
    %747 = arith.addi %746, %c2_i32_445 : i32
    %748 = arith.index_cast %747 : i32 to index
    %749 = memref.load %arg2[%748] : memref<256xi32, #tpu.memory_space<smem>>
    %750 = arith.index_cast %749 : i32 to index
    %c0_446 = arith.constant 0 : index
    %751 = vector.load %arg4[%750, %c0_446] : memref<512x128xf32, #tpu.memory_space<vmem>>, vector<1x128xf32>
    %c82 = arith.constant 82 : index
    %c0_447 = arith.constant 0 : index
    %752 = vector.load %arg7[%c82, %c0_447] : memref<128x128xf32, #tpu.memory_space<vmem>>, vector<1x128xf32>
    tpu.vector_store %arg7[%c82, %c0_447], %751 {strides = array<i32>} : memref<128x128xf32, #tpu.memory_space<vmem>>, vector<1x128xf32>,
    %c10_i32_448 = arith.constant 10 : i32
    %753 = arith.addi %0, %c10_i32_448 : i32
    %c8_i32_449 = arith.constant 8 : i32
    %754 = arith.muli %753, %c8_i32_449 : i32
    %c3_i32_450 = arith.constant 3 : i32
    %755 = arith.addi %754, %c3_i32_450 : i32
    %756 = arith.index_cast %755 : i32 to index
    %757 = memref.load %arg2[%756] : memref<256xi32, #tpu.memory_space<smem>>
    %758 = arith.index_cast %757 : i32 to index
    %c0_451 = arith.constant 0 : index
    %759 = vector.load %arg4[%758, %c0_451] : memref<512x128xf32, #tpu.memory_space<vmem>>, vector<1x128xf32>
    %c83 = arith.constant 83 : index
    %c0_452 = arith.constant 0 : index
    %760 = vector.load %arg7[%c83, %c0_452] : memref<128x128xf32, #tpu.memory_space<vmem>>, vector<1x128xf32>
    tpu.vector_store %arg7[%c83, %c0_452], %759 {strides = array<i32>} : memref<128x128xf32, #tpu.memory_space<vmem>>, vector<1x128xf32>,
    %c10_i32_453 = arith.constant 10 : i32
    %761 = arith.addi %0, %c10_i32_453 : i32
    %c8_i32_454 = arith.constant 8 : i32
    %762 = arith.muli %761, %c8_i32_454 : i32
    %c4_i32_455 = arith.constant 4 : i32
    %763 = arith.addi %762, %c4_i32_455 : i32
    %764 = arith.index_cast %763 : i32 to index
    %765 = memref.load %arg2[%764] : memref<256xi32, #tpu.memory_space<smem>>
    %766 = arith.index_cast %765 : i32 to index
    %c0_456 = arith.constant 0 : index
    %767 = vector.load %arg4[%766, %c0_456] : memref<512x128xf32, #tpu.memory_space<vmem>>, vector<1x128xf32>
    %c84 = arith.constant 84 : index
    %c0_457 = arith.constant 0 : index
    %768 = vector.load %arg7[%c84, %c0_457] : memref<128x128xf32, #tpu.memory_space<vmem>>, vector<1x128xf32>
    tpu.vector_store %arg7[%c84, %c0_457], %767 {strides = array<i32>} : memref<128x128xf32, #tpu.memory_space<vmem>>, vector<1x128xf32>,
    %c10_i32_458 = arith.constant 10 : i32
    %769 = arith.addi %0, %c10_i32_458 : i32
    %c8_i32_459 = arith.constant 8 : i32
    %770 = arith.muli %769, %c8_i32_459 : i32
    %c5_i32_460 = arith.constant 5 : i32
    %771 = arith.addi %770, %c5_i32_460 : i32
    %772 = arith.index_cast %771 : i32 to index
    %773 = memref.load %arg2[%772] : memref<256xi32, #tpu.memory_space<smem>>
    %774 = arith.index_cast %773 : i32 to index
    %c0_461 = arith.constant 0 : index
    %775 = vector.load %arg4[%774, %c0_461] : memref<512x128xf32, #tpu.memory_space<vmem>>, vector<1x128xf32>
    %c85 = arith.constant 85 : index
    %c0_462 = arith.constant 0 : index
    %776 = vector.load %arg7[%c85, %c0_462] : memref<128x128xf32, #tpu.memory_space<vmem>>, vector<1x128xf32>
    tpu.vector_store %arg7[%c85, %c0_462], %775 {strides = array<i32>} : memref<128x128xf32, #tpu.memory_space<vmem>>, vector<1x128xf32>,
    %c10_i32_463 = arith.constant 10 : i32
    %777 = arith.addi %0, %c10_i32_463 : i32
    %c8_i32_464 = arith.constant 8 : i32
    %778 = arith.muli %777, %c8_i32_464 : i32
    %c6_i32_465 = arith.constant 6 : i32
    %779 = arith.addi %778, %c6_i32_465 : i32
    %780 = arith.index_cast %779 : i32 to index
    %781 = memref.load %arg2[%780] : memref<256xi32, #tpu.memory_space<smem>>
    %782 = arith.index_cast %781 : i32 to index
    %c0_466 = arith.constant 0 : index
    %783 = vector.load %arg4[%782, %c0_466] : memref<512x128xf32, #tpu.memory_space<vmem>>, vector<1x128xf32>
    %c86 = arith.constant 86 : index
    %c0_467 = arith.constant 0 : index
    %784 = vector.load %arg7[%c86, %c0_467] : memref<128x128xf32, #tpu.memory_space<vmem>>, vector<1x128xf32>
    tpu.vector_store %arg7[%c86, %c0_467], %783 {strides = array<i32>} : memref<128x128xf32, #tpu.memory_space<vmem>>, vector<1x128xf32>,
    %c10_i32_468 = arith.constant 10 : i32
    %785 = arith.addi %0, %c10_i32_468 : i32
    %c8_i32_469 = arith.constant 8 : i32
    %786 = arith.muli %785, %c8_i32_469 : i32
    %c7_i32_470 = arith.constant 7 : i32
    %787 = arith.addi %786, %c7_i32_470 : i32
    %788 = arith.index_cast %787 : i32 to index
    %789 = memref.load %arg2[%788] : memref<256xi32, #tpu.memory_space<smem>>
    %790 = arith.index_cast %789 : i32 to index
    %c0_471 = arith.constant 0 : index
    %791 = vector.load %arg4[%790, %c0_471] : memref<512x128xf32, #tpu.memory_space<vmem>>, vector<1x128xf32>
    %c87 = arith.constant 87 : index
    %c0_472 = arith.constant 0 : index
    %792 = vector.load %arg7[%c87, %c0_472] : memref<128x128xf32, #tpu.memory_space<vmem>>, vector<1x128xf32>
    tpu.vector_store %arg7[%c87, %c0_472], %791 {strides = array<i32>} : memref<128x128xf32, #tpu.memory_space<vmem>>, vector<1x128xf32>,
    %c11_i32 = arith.constant 11 : i32
    %793 = arith.addi %0, %c11_i32 : i32
    %794 = arith.index_cast %793 : i32 to index
    %795 = memref.load %arg1[%794] : memref<32xi32, #tpu.memory_space<smem>>
    %796 = arith.index_cast %795 : i32 to index
    %c0_473 = arith.constant 0 : index
    %797 = vector.load %arg3[%796, %c0_473] : memref<512x128xf32, #tpu.memory_space<vmem>>, vector<1x128xf32>
    %798 = vector.shape_cast %797 : vector<1x128xf32> to vector<1x128xf32>
    %799 = vector.broadcast %798 : vector<1x128xf32> to vector<8x128xf32>
    %c88 = arith.constant 88 : index
    %c0_474 = arith.constant 0 : index
    %800 = vector.load %arg6[%c88, %c0_474] : memref<128x128xf32, #tpu.memory_space<vmem>>, vector<8x128xf32>
    tpu.vector_store %arg6[%c88, %c0_474], %799 {strides = array<i32>} : memref<128x128xf32, #tpu.memory_space<vmem>>, vector<8x128xf32>,
    %c11_i32_475 = arith.constant 11 : i32
    %801 = arith.addi %0, %c11_i32_475 : i32
    %c8_i32_476 = arith.constant 8 : i32
    %802 = arith.muli %801, %c8_i32_476 : i32
    %c0_i32_477 = arith.constant 0 : i32
    %803 = arith.addi %802, %c0_i32_477 : i32
    %804 = arith.index_cast %803 : i32 to index
    %805 = memref.load %arg2[%804] : memref<256xi32, #tpu.memory_space<smem>>
    %806 = arith.index_cast %805 : i32 to index
    %c0_478 = arith.constant 0 : index
    %807 = vector.load %arg4[%806, %c0_478] : memref<512x128xf32, #tpu.memory_space<vmem>>, vector<1x128xf32>
    %c88_479 = arith.constant 88 : index
    %c0_480 = arith.constant 0 : index
    %808 = vector.load %arg7[%c88_479, %c0_480] : memref<128x128xf32, #tpu.memory_space<vmem>>, vector<1x128xf32>
    tpu.vector_store %arg7[%c88_479, %c0_480], %807 {strides = array<i32>} : memref<128x128xf32, #tpu.memory_space<vmem>>, vector<1x128xf32>,
    %c11_i32_481 = arith.constant 11 : i32
    %809 = arith.addi %0, %c11_i32_481 : i32
    %c8_i32_482 = arith.constant 8 : i32
    %810 = arith.muli %809, %c8_i32_482 : i32
    %c1_i32_483 = arith.constant 1 : i32
    %811 = arith.addi %810, %c1_i32_483 : i32
    %812 = arith.index_cast %811 : i32 to index
    %813 = memref.load %arg2[%812] : memref<256xi32, #tpu.memory_space<smem>>
    %814 = arith.index_cast %813 : i32 to index
    %c0_484 = arith.constant 0 : index
    %815 = vector.load %arg4[%814, %c0_484] : memref<512x128xf32, #tpu.memory_space<vmem>>, vector<1x128xf32>
    %c89 = arith.constant 89 : index
    %c0_485 = arith.constant 0 : index
    %816 = vector.load %arg7[%c89, %c0_485] : memref<128x128xf32, #tpu.memory_space<vmem>>, vector<1x128xf32>
    tpu.vector_store %arg7[%c89, %c0_485], %815 {strides = array<i32>} : memref<128x128xf32, #tpu.memory_space<vmem>>, vector<1x128xf32>,
    %c11_i32_486 = arith.constant 11 : i32
    %817 = arith.addi %0, %c11_i32_486 : i32
    %c8_i32_487 = arith.constant 8 : i32
    %818 = arith.muli %817, %c8_i32_487 : i32
    %c2_i32_488 = arith.constant 2 : i32
    %819 = arith.addi %818, %c2_i32_488 : i32
    %820 = arith.index_cast %819 : i32 to index
    %821 = memref.load %arg2[%820] : memref<256xi32, #tpu.memory_space<smem>>
    %822 = arith.index_cast %821 : i32 to index
    %c0_489 = arith.constant 0 : index
    %823 = vector.load %arg4[%822, %c0_489] : memref<512x128xf32, #tpu.memory_space<vmem>>, vector<1x128xf32>
    %c90 = arith.constant 90 : index
    %c0_490 = arith.constant 0 : index
    %824 = vector.load %arg7[%c90, %c0_490] : memref<128x128xf32, #tpu.memory_space<vmem>>, vector<1x128xf32>
    tpu.vector_store %arg7[%c90, %c0_490], %823 {strides = array<i32>} : memref<128x128xf32, #tpu.memory_space<vmem>>, vector<1x128xf32>,
    %c11_i32_491 = arith.constant 11 : i32
    %825 = arith.addi %0, %c11_i32_491 : i32
    %c8_i32_492 = arith.constant 8 : i32
    %826 = arith.muli %825, %c8_i32_492 : i32
    %c3_i32_493 = arith.constant 3 : i32
    %827 = arith.addi %826, %c3_i32_493 : i32
    %828 = arith.index_cast %827 : i32 to index
    %829 = memref.load %arg2[%828] : memref<256xi32, #tpu.memory_space<smem>>
    %830 = arith.index_cast %829 : i32 to index
    %c0_494 = arith.constant 0 : index
    %831 = vector.load %arg4[%830, %c0_494] : memref<512x128xf32, #tpu.memory_space<vmem>>, vector<1x128xf32>
    %c91 = arith.constant 91 : index
    %c0_495 = arith.constant 0 : index
    %832 = vector.load %arg7[%c91, %c0_495] : memref<128x128xf32, #tpu.memory_space<vmem>>, vector<1x128xf32>
    tpu.vector_store %arg7[%c91, %c0_495], %831 {strides = array<i32>} : memref<128x128xf32, #tpu.memory_space<vmem>>, vector<1x128xf32>,
    %c11_i32_496 = arith.constant 11 : i32
    %833 = arith.addi %0, %c11_i32_496 : i32
    %c8_i32_497 = arith.constant 8 : i32
    %834 = arith.muli %833, %c8_i32_497 : i32
    %c4_i32_498 = arith.constant 4 : i32
    %835 = arith.addi %834, %c4_i32_498 : i32
    %836 = arith.index_cast %835 : i32 to index
    %837 = memref.load %arg2[%836] : memref<256xi32, #tpu.memory_space<smem>>
    %838 = arith.index_cast %837 : i32 to index
    %c0_499 = arith.constant 0 : index
    %839 = vector.load %arg4[%838, %c0_499] : memref<512x128xf32, #tpu.memory_space<vmem>>, vector<1x128xf32>
    %c92 = arith.constant 92 : index
    %c0_500 = arith.constant 0 : index
    %840 = vector.load %arg7[%c92, %c0_500] : memref<128x128xf32, #tpu.memory_space<vmem>>, vector<1x128xf32>
    tpu.vector_store %arg7[%c92, %c0_500], %839 {strides = array<i32>} : memref<128x128xf32, #tpu.memory_space<vmem>>, vector<1x128xf32>,
    %c11_i32_501 = arith.constant 11 : i32
    %841 = arith.addi %0, %c11_i32_501 : i32
    %c8_i32_502 = arith.constant 8 : i32
    %842 = arith.muli %841, %c8_i32_502 : i32
    %c5_i32_503 = arith.constant 5 : i32
    %843 = arith.addi %842, %c5_i32_503 : i32
    %844 = arith.index_cast %843 : i32 to index
    %845 = memref.load %arg2[%844] : memref<256xi32, #tpu.memory_space<smem>>
    %846 = arith.index_cast %845 : i32 to index
    %c0_504 = arith.constant 0 : index
    %847 = vector.load %arg4[%846, %c0_504] : memref<512x128xf32, #tpu.memory_space<vmem>>, vector<1x128xf32>
    %c93 = arith.constant 93 : index
    %c0_505 = arith.constant 0 : index
    %848 = vector.load %arg7[%c93, %c0_505] : memref<128x128xf32, #tpu.memory_space<vmem>>, vector<1x128xf32>
    tpu.vector_store %arg7[%c93, %c0_505], %847 {strides = array<i32>} : memref<128x128xf32, #tpu.memory_space<vmem>>, vector<1x128xf32>,
    %c11_i32_506 = arith.constant 11 : i32
    %849 = arith.addi %0, %c11_i32_506 : i32
    %c8_i32_507 = arith.constant 8 : i32
    %850 = arith.muli %849, %c8_i32_507 : i32
    %c6_i32_508 = arith.constant 6 : i32
    %851 = arith.addi %850, %c6_i32_508 : i32
    %852 = arith.index_cast %851 : i32 to index
    %853 = memref.load %arg2[%852] : memref<256xi32, #tpu.memory_space<smem>>
    %854 = arith.index_cast %853 : i32 to index
    %c0_509 = arith.constant 0 : index
    %855 = vector.load %arg4[%854, %c0_509] : memref<512x128xf32, #tpu.memory_space<vmem>>, vector<1x128xf32>
    %c94 = arith.constant 94 : index
    %c0_510 = arith.constant 0 : index
    %856 = vector.load %arg7[%c94, %c0_510] : memref<128x128xf32, #tpu.memory_space<vmem>>, vector<1x128xf32>
    tpu.vector_store %arg7[%c94, %c0_510], %855 {strides = array<i32>} : memref<128x128xf32, #tpu.memory_space<vmem>>, vector<1x128xf32>,
    %c11_i32_511 = arith.constant 11 : i32
    %857 = arith.addi %0, %c11_i32_511 : i32
    %c8_i32_512 = arith.constant 8 : i32
    %858 = arith.muli %857, %c8_i32_512 : i32
    %c7_i32_513 = arith.constant 7 : i32
    %859 = arith.addi %858, %c7_i32_513 : i32
    %860 = arith.index_cast %859 : i32 to index
    %861 = memref.load %arg2[%860] : memref<256xi32, #tpu.memory_space<smem>>
    %862 = arith.index_cast %861 : i32 to index
    %c0_514 = arith.constant 0 : index
    %863 = vector.load %arg4[%862, %c0_514] : memref<512x128xf32, #tpu.memory_space<vmem>>, vector<1x128xf32>
    %c95 = arith.constant 95 : index
    %c0_515 = arith.constant 0 : index
    %864 = vector.load %arg7[%c95, %c0_515] : memref<128x128xf32, #tpu.memory_space<vmem>>, vector<1x128xf32>
    tpu.vector_store %arg7[%c95, %c0_515], %863 {strides = array<i32>} : memref<128x128xf32, #tpu.memory_space<vmem>>, vector<1x128xf32>,
    %c12_i32 = arith.constant 12 : i32
    %865 = arith.addi %0, %c12_i32 : i32
    %866 = arith.index_cast %865 : i32 to index
    %867 = memref.load %arg1[%866] : memref<32xi32, #tpu.memory_space<smem>>
    %868 = arith.index_cast %867 : i32 to index
    %c0_516 = arith.constant 0 : index
    %869 = vector.load %arg3[%868, %c0_516] : memref<512x128xf32, #tpu.memory_space<vmem>>, vector<1x128xf32>
    %870 = vector.shape_cast %869 : vector<1x128xf32> to vector<1x128xf32>
    %871 = vector.broadcast %870 : vector<1x128xf32> to vector<8x128xf32>
    %c96 = arith.constant 96 : index
    %c0_517 = arith.constant 0 : index
    %872 = vector.load %arg6[%c96, %c0_517] : memref<128x128xf32, #tpu.memory_space<vmem>>, vector<8x128xf32>
    tpu.vector_store %arg6[%c96, %c0_517], %871 {strides = array<i32>} : memref<128x128xf32, #tpu.memory_space<vmem>>, vector<8x128xf32>,
    %c12_i32_518 = arith.constant 12 : i32
    %873 = arith.addi %0, %c12_i32_518 : i32
    %c8_i32_519 = arith.constant 8 : i32
    %874 = arith.muli %873, %c8_i32_519 : i32
    %c0_i32_520 = arith.constant 0 : i32
    %875 = arith.addi %874, %c0_i32_520 : i32
    %876 = arith.index_cast %875 : i32 to index
    %877 = memref.load %arg2[%876] : memref<256xi32, #tpu.memory_space<smem>>
    %878 = arith.index_cast %877 : i32 to index
    %c0_521 = arith.constant 0 : index
    %879 = vector.load %arg4[%878, %c0_521] : memref<512x128xf32, #tpu.memory_space<vmem>>, vector<1x128xf32>
    %c96_522 = arith.constant 96 : index
    %c0_523 = arith.constant 0 : index
    %880 = vector.load %arg7[%c96_522, %c0_523] : memref<128x128xf32, #tpu.memory_space<vmem>>, vector<1x128xf32>
    tpu.vector_store %arg7[%c96_522, %c0_523], %879 {strides = array<i32>} : memref<128x128xf32, #tpu.memory_space<vmem>>, vector<1x128xf32>,
    %c12_i32_524 = arith.constant 12 : i32
    %881 = arith.addi %0, %c12_i32_524 : i32
    %c8_i32_525 = arith.constant 8 : i32
    %882 = arith.muli %881, %c8_i32_525 : i32
    %c1_i32_526 = arith.constant 1 : i32
    %883 = arith.addi %882, %c1_i32_526 : i32
    %884 = arith.index_cast %883 : i32 to index
    %885 = memref.load %arg2[%884] : memref<256xi32, #tpu.memory_space<smem>>
    %886 = arith.index_cast %885 : i32 to index
    %c0_527 = arith.constant 0 : index
    %887 = vector.load %arg4[%886, %c0_527] : memref<512x128xf32, #tpu.memory_space<vmem>>, vector<1x128xf32>
    %c97 = arith.constant 97 : index
    %c0_528 = arith.constant 0 : index
    %888 = vector.load %arg7[%c97, %c0_528] : memref<128x128xf32, #tpu.memory_space<vmem>>, vector<1x128xf32>
    tpu.vector_store %arg7[%c97, %c0_528], %887 {strides = array<i32>} : memref<128x128xf32, #tpu.memory_space<vmem>>, vector<1x128xf32>,
    %c12_i32_529 = arith.constant 12 : i32
    %889 = arith.addi %0, %c12_i32_529 : i32
    %c8_i32_530 = arith.constant 8 : i32
    %890 = arith.muli %889, %c8_i32_530 : i32
    %c2_i32_531 = arith.constant 2 : i32
    %891 = arith.addi %890, %c2_i32_531 : i32
    %892 = arith.index_cast %891 : i32 to index
    %893 = memref.load %arg2[%892] : memref<256xi32, #tpu.memory_space<smem>>
    %894 = arith.index_cast %893 : i32 to index
    %c0_532 = arith.constant 0 : index
    %895 = vector.load %arg4[%894, %c0_532] : memref<512x128xf32, #tpu.memory_space<vmem>>, vector<1x128xf32>
    %c98 = arith.constant 98 : index
    %c0_533 = arith.constant 0 : index
    %896 = vector.load %arg7[%c98, %c0_533] : memref<128x128xf32, #tpu.memory_space<vmem>>, vector<1x128xf32>
    tpu.vector_store %arg7[%c98, %c0_533], %895 {strides = array<i32>} : memref<128x128xf32, #tpu.memory_space<vmem>>, vector<1x128xf32>,
    %c12_i32_534 = arith.constant 12 : i32
    %897 = arith.addi %0, %c12_i32_534 : i32
    %c8_i32_535 = arith.constant 8 : i32
    %898 = arith.muli %897, %c8_i32_535 : i32
    %c3_i32_536 = arith.constant 3 : i32
    %899 = arith.addi %898, %c3_i32_536 : i32
    %900 = arith.index_cast %899 : i32 to index
    %901 = memref.load %arg2[%900] : memref<256xi32, #tpu.memory_space<smem>>
    %902 = arith.index_cast %901 : i32 to index
    %c0_537 = arith.constant 0 : index
    %903 = vector.load %arg4[%902, %c0_537] : memref<512x128xf32, #tpu.memory_space<vmem>>, vector<1x128xf32>
    %c99 = arith.constant 99 : index
    %c0_538 = arith.constant 0 : index
    %904 = vector.load %arg7[%c99, %c0_538] : memref<128x128xf32, #tpu.memory_space<vmem>>, vector<1x128xf32>
    tpu.vector_store %arg7[%c99, %c0_538], %903 {strides = array<i32>} : memref<128x128xf32, #tpu.memory_space<vmem>>, vector<1x128xf32>,
    %c12_i32_539 = arith.constant 12 : i32
    %905 = arith.addi %0, %c12_i32_539 : i32
    %c8_i32_540 = arith.constant 8 : i32
    %906 = arith.muli %905, %c8_i32_540 : i32
    %c4_i32_541 = arith.constant 4 : i32
    %907 = arith.addi %906, %c4_i32_541 : i32
    %908 = arith.index_cast %907 : i32 to index
    %909 = memref.load %arg2[%908] : memref<256xi32, #tpu.memory_space<smem>>
    %910 = arith.index_cast %909 : i32 to index
    %c0_542 = arith.constant 0 : index
    %911 = vector.load %arg4[%910, %c0_542] : memref<512x128xf32, #tpu.memory_space<vmem>>, vector<1x128xf32>
    %c100 = arith.constant 100 : index
    %c0_543 = arith.constant 0 : index
    %912 = vector.load %arg7[%c100, %c0_543] : memref<128x128xf32, #tpu.memory_space<vmem>>, vector<1x128xf32>
    tpu.vector_store %arg7[%c100, %c0_543], %911 {strides = array<i32>} : memref<128x128xf32, #tpu.memory_space<vmem>>, vector<1x128xf32>,
    %c12_i32_544 = arith.constant 12 : i32
    %913 = arith.addi %0, %c12_i32_544 : i32
    %c8_i32_545 = arith.constant 8 : i32
    %914 = arith.muli %913, %c8_i32_545 : i32
    %c5_i32_546 = arith.constant 5 : i32
    %915 = arith.addi %914, %c5_i32_546 : i32
    %916 = arith.index_cast %915 : i32 to index
    %917 = memref.load %arg2[%916] : memref<256xi32, #tpu.memory_space<smem>>
    %918 = arith.index_cast %917 : i32 to index
    %c0_547 = arith.constant 0 : index
    %919 = vector.load %arg4[%918, %c0_547] : memref<512x128xf32, #tpu.memory_space<vmem>>, vector<1x128xf32>
    %c101 = arith.constant 101 : index
    %c0_548 = arith.constant 0 : index
    %920 = vector.load %arg7[%c101, %c0_548] : memref<128x128xf32, #tpu.memory_space<vmem>>, vector<1x128xf32>
    tpu.vector_store %arg7[%c101, %c0_548], %919 {strides = array<i32>} : memref<128x128xf32, #tpu.memory_space<vmem>>, vector<1x128xf32>,
    %c12_i32_549 = arith.constant 12 : i32
    %921 = arith.addi %0, %c12_i32_549 : i32
    %c8_i32_550 = arith.constant 8 : i32
    %922 = arith.muli %921, %c8_i32_550 : i32
    %c6_i32_551 = arith.constant 6 : i32
    %923 = arith.addi %922, %c6_i32_551 : i32
    %924 = arith.index_cast %923 : i32 to index
    %925 = memref.load %arg2[%924] : memref<256xi32, #tpu.memory_space<smem>>
    %926 = arith.index_cast %925 : i32 to index
    %c0_552 = arith.constant 0 : index
    %927 = vector.load %arg4[%926, %c0_552] : memref<512x128xf32, #tpu.memory_space<vmem>>, vector<1x128xf32>
    %c102 = arith.constant 102 : index
    %c0_553 = arith.constant 0 : index
    %928 = vector.load %arg7[%c102, %c0_553] : memref<128x128xf32, #tpu.memory_space<vmem>>, vector<1x128xf32>
    tpu.vector_store %arg7[%c102, %c0_553], %927 {strides = array<i32>} : memref<128x128xf32, #tpu.memory_space<vmem>>, vector<1x128xf32>,
    %c12_i32_554 = arith.constant 12 : i32
    %929 = arith.addi %0, %c12_i32_554 : i32
    %c8_i32_555 = arith.constant 8 : i32
    %930 = arith.muli %929, %c8_i32_555 : i32
    %c7_i32_556 = arith.constant 7 : i32
    %931 = arith.addi %930, %c7_i32_556 : i32
    %932 = arith.index_cast %931 : i32 to index
    %933 = memref.load %arg2[%932] : memref<256xi32, #tpu.memory_space<smem>>
    %934 = arith.index_cast %933 : i32 to index
    %c0_557 = arith.constant 0 : index
    %935 = vector.load %arg4[%934, %c0_557] : memref<512x128xf32, #tpu.memory_space<vmem>>, vector<1x128xf32>
    %c103 = arith.constant 103 : index
    %c0_558 = arith.constant 0 : index
    %936 = vector.load %arg7[%c103, %c0_558] : memref<128x128xf32, #tpu.memory_space<vmem>>, vector<1x128xf32>
    tpu.vector_store %arg7[%c103, %c0_558], %935 {strides = array<i32>} : memref<128x128xf32, #tpu.memory_space<vmem>>, vector<1x128xf32>,
    %c13_i32 = arith.constant 13 : i32
    %937 = arith.addi %0, %c13_i32 : i32
    %938 = arith.index_cast %937 : i32 to index
    %939 = memref.load %arg1[%938] : memref<32xi32, #tpu.memory_space<smem>>
    %940 = arith.index_cast %939 : i32 to index
    %c0_559 = arith.constant 0 : index
    %941 = vector.load %arg3[%940, %c0_559] : memref<512x128xf32, #tpu.memory_space<vmem>>, vector<1x128xf32>
    %942 = vector.shape_cast %941 : vector<1x128xf32> to vector<1x128xf32>
    %943 = vector.broadcast %942 : vector<1x128xf32> to vector<8x128xf32>
    %c104 = arith.constant 104 : index
    %c0_560 = arith.constant 0 : index
    %944 = vector.load %arg6[%c104, %c0_560] : memref<128x128xf32, #tpu.memory_space<vmem>>, vector<8x128xf32>
    tpu.vector_store %arg6[%c104, %c0_560], %943 {strides = array<i32>} : memref<128x128xf32, #tpu.memory_space<vmem>>, vector<8x128xf32>,
    %c13_i32_561 = arith.constant 13 : i32
    %945 = arith.addi %0, %c13_i32_561 : i32
    %c8_i32_562 = arith.constant 8 : i32
    %946 = arith.muli %945, %c8_i32_562 : i32
    %c0_i32_563 = arith.constant 0 : i32
    %947 = arith.addi %946, %c0_i32_563 : i32
    %948 = arith.index_cast %947 : i32 to index
    %949 = memref.load %arg2[%948] : memref<256xi32, #tpu.memory_space<smem>>
    %950 = arith.index_cast %949 : i32 to index
    %c0_564 = arith.constant 0 : index
    %951 = vector.load %arg4[%950, %c0_564] : memref<512x128xf32, #tpu.memory_space<vmem>>, vector<1x128xf32>
    %c104_565 = arith.constant 104 : index
    %c0_566 = arith.constant 0 : index
    %952 = vector.load %arg7[%c104_565, %c0_566] : memref<128x128xf32, #tpu.memory_space<vmem>>, vector<1x128xf32>
    tpu.vector_store %arg7[%c104_565, %c0_566], %951 {strides = array<i32>} : memref<128x128xf32, #tpu.memory_space<vmem>>, vector<1x128xf32>,
    %c13_i32_567 = arith.constant 13 : i32
    %953 = arith.addi %0, %c13_i32_567 : i32
    %c8_i32_568 = arith.constant 8 : i32
    %954 = arith.muli %953, %c8_i32_568 : i32
    %c1_i32_569 = arith.constant 1 : i32
    %955 = arith.addi %954, %c1_i32_569 : i32
    %956 = arith.index_cast %955 : i32 to index
    %957 = memref.load %arg2[%956] : memref<256xi32, #tpu.memory_space<smem>>
    %958 = arith.index_cast %957 : i32 to index
    %c0_570 = arith.constant 0 : index
    %959 = vector.load %arg4[%958, %c0_570] : memref<512x128xf32, #tpu.memory_space<vmem>>, vector<1x128xf32>
    %c105 = arith.constant 105 : index
    %c0_571 = arith.constant 0 : index
    %960 = vector.load %arg7[%c105, %c0_571] : memref<128x128xf32, #tpu.memory_space<vmem>>, vector<1x128xf32>
    tpu.vector_store %arg7[%c105, %c0_571], %959 {strides = array<i32>} : memref<128x128xf32, #tpu.memory_space<vmem>>, vector<1x128xf32>,
    %c13_i32_572 = arith.constant 13 : i32
    %961 = arith.addi %0, %c13_i32_572 : i32
    %c8_i32_573 = arith.constant 8 : i32
    %962 = arith.muli %961, %c8_i32_573 : i32
    %c2_i32_574 = arith.constant 2 : i32
    %963 = arith.addi %962, %c2_i32_574 : i32
    %964 = arith.index_cast %963 : i32 to index
    %965 = memref.load %arg2[%964] : memref<256xi32, #tpu.memory_space<smem>>
    %966 = arith.index_cast %965 : i32 to index
    %c0_575 = arith.constant 0 : index
    %967 = vector.load %arg4[%966, %c0_575] : memref<512x128xf32, #tpu.memory_space<vmem>>, vector<1x128xf32>
    %c106 = arith.constant 106 : index
    %c0_576 = arith.constant 0 : index
    %968 = vector.load %arg7[%c106, %c0_576] : memref<128x128xf32, #tpu.memory_space<vmem>>, vector<1x128xf32>
    tpu.vector_store %arg7[%c106, %c0_576], %967 {strides = array<i32>} : memref<128x128xf32, #tpu.memory_space<vmem>>, vector<1x128xf32>,
    %c13_i32_577 = arith.constant 13 : i32
    %969 = arith.addi %0, %c13_i32_577 : i32
    %c8_i32_578 = arith.constant 8 : i32
    %970 = arith.muli %969, %c8_i32_578 : i32
    %c3_i32_579 = arith.constant 3 : i32
    %971 = arith.addi %970, %c3_i32_579 : i32
    %972 = arith.index_cast %971 : i32 to index
    %973 = memref.load %arg2[%972] : memref<256xi32, #tpu.memory_space<smem>>
    %974 = arith.index_cast %973 : i32 to index
    %c0_580 = arith.constant 0 : index
    %975 = vector.load %arg4[%974, %c0_580] : memref<512x128xf32, #tpu.memory_space<vmem>>, vector<1x128xf32>
    %c107 = arith.constant 107 : index
    %c0_581 = arith.constant 0 : index
    %976 = vector.load %arg7[%c107, %c0_581] : memref<128x128xf32, #tpu.memory_space<vmem>>, vector<1x128xf32>
    tpu.vector_store %arg7[%c107, %c0_581], %975 {strides = array<i32>} : memref<128x128xf32, #tpu.memory_space<vmem>>, vector<1x128xf32>,
    %c13_i32_582 = arith.constant 13 : i32
    %977 = arith.addi %0, %c13_i32_582 : i32
    %c8_i32_583 = arith.constant 8 : i32
    %978 = arith.muli %977, %c8_i32_583 : i32
    %c4_i32_584 = arith.constant 4 : i32
    %979 = arith.addi %978, %c4_i32_584 : i32
    %980 = arith.index_cast %979 : i32 to index
    %981 = memref.load %arg2[%980] : memref<256xi32, #tpu.memory_space<smem>>
    %982 = arith.index_cast %981 : i32 to index
    %c0_585 = arith.constant 0 : index
    %983 = vector.load %arg4[%982, %c0_585] : memref<512x128xf32, #tpu.memory_space<vmem>>, vector<1x128xf32>
    %c108 = arith.constant 108 : index
    %c0_586 = arith.constant 0 : index
    %984 = vector.load %arg7[%c108, %c0_586] : memref<128x128xf32, #tpu.memory_space<vmem>>, vector<1x128xf32>
    tpu.vector_store %arg7[%c108, %c0_586], %983 {strides = array<i32>} : memref<128x128xf32, #tpu.memory_space<vmem>>, vector<1x128xf32>,
    %c13_i32_587 = arith.constant 13 : i32
    %985 = arith.addi %0, %c13_i32_587 : i32
    %c8_i32_588 = arith.constant 8 : i32
    %986 = arith.muli %985, %c8_i32_588 : i32
    %c5_i32_589 = arith.constant 5 : i32
    %987 = arith.addi %986, %c5_i32_589 : i32
    %988 = arith.index_cast %987 : i32 to index
    %989 = memref.load %arg2[%988] : memref<256xi32, #tpu.memory_space<smem>>
    %990 = arith.index_cast %989 : i32 to index
    %c0_590 = arith.constant 0 : index
    %991 = vector.load %arg4[%990, %c0_590] : memref<512x128xf32, #tpu.memory_space<vmem>>, vector<1x128xf32>
    %c109 = arith.constant 109 : index
    %c0_591 = arith.constant 0 : index
    %992 = vector.load %arg7[%c109, %c0_591] : memref<128x128xf32, #tpu.memory_space<vmem>>, vector<1x128xf32>
    tpu.vector_store %arg7[%c109, %c0_591], %991 {strides = array<i32>} : memref<128x128xf32, #tpu.memory_space<vmem>>, vector<1x128xf32>,
    %c13_i32_592 = arith.constant 13 : i32
    %993 = arith.addi %0, %c13_i32_592 : i32
    %c8_i32_593 = arith.constant 8 : i32
    %994 = arith.muli %993, %c8_i32_593 : i32
    %c6_i32_594 = arith.constant 6 : i32
    %995 = arith.addi %994, %c6_i32_594 : i32
    %996 = arith.index_cast %995 : i32 to index
    %997 = memref.load %arg2[%996] : memref<256xi32, #tpu.memory_space<smem>>
    %998 = arith.index_cast %997 : i32 to index
    %c0_595 = arith.constant 0 : index
    %999 = vector.load %arg4[%998, %c0_595] : memref<512x128xf32, #tpu.memory_space<vmem>>, vector<1x128xf32>
    %c110 = arith.constant 110 : index
    %c0_596 = arith.constant 0 : index
    %1000 = vector.load %arg7[%c110, %c0_596] : memref<128x128xf32, #tpu.memory_space<vmem>>, vector<1x128xf32>
    tpu.vector_store %arg7[%c110, %c0_596], %999 {strides = array<i32>} : memref<128x128xf32, #tpu.memory_space<vmem>>, vector<1x128xf32>,
    %c13_i32_597 = arith.constant 13 : i32
    %1001 = arith.addi %0, %c13_i32_597 : i32
    %c8_i32_598 = arith.constant 8 : i32
    %1002 = arith.muli %1001, %c8_i32_598 : i32
    %c7_i32_599 = arith.constant 7 : i32
    %1003 = arith.addi %1002, %c7_i32_599 : i32
    %1004 = arith.index_cast %1003 : i32 to index
    %1005 = memref.load %arg2[%1004] : memref<256xi32, #tpu.memory_space<smem>>
    %1006 = arith.index_cast %1005 : i32 to index
    %c0_600 = arith.constant 0 : index
    %1007 = vector.load %arg4[%1006, %c0_600] : memref<512x128xf32, #tpu.memory_space<vmem>>, vector<1x128xf32>
    %c111 = arith.constant 111 : index
    %c0_601 = arith.constant 0 : index
    %1008 = vector.load %arg7[%c111, %c0_601] : memref<128x128xf32, #tpu.memory_space<vmem>>, vector<1x128xf32>
    tpu.vector_store %arg7[%c111, %c0_601], %1007 {strides = array<i32>} : memref<128x128xf32, #tpu.memory_space<vmem>>, vector<1x128xf32>,
    %c14_i32 = arith.constant 14 : i32
    %1009 = arith.addi %0, %c14_i32 : i32
    %1010 = arith.index_cast %1009 : i32 to index
    %1011 = memref.load %arg1[%1010] : memref<32xi32, #tpu.memory_space<smem>>
    %1012 = arith.index_cast %1011 : i32 to index
    %c0_602 = arith.constant 0 : index
    %1013 = vector.load %arg3[%1012, %c0_602] : memref<512x128xf32, #tpu.memory_space<vmem>>, vector<1x128xf32>
    %1014 = vector.shape_cast %1013 : vector<1x128xf32> to vector<1x128xf32>
    %1015 = vector.broadcast %1014 : vector<1x128xf32> to vector<8x128xf32>
    %c112 = arith.constant 112 : index
    %c0_603 = arith.constant 0 : index
    %1016 = vector.load %arg6[%c112, %c0_603] : memref<128x128xf32, #tpu.memory_space<vmem>>, vector<8x128xf32>
    tpu.vector_store %arg6[%c112, %c0_603], %1015 {strides = array<i32>} : memref<128x128xf32, #tpu.memory_space<vmem>>, vector<8x128xf32>,
    %c14_i32_604 = arith.constant 14 : i32
    %1017 = arith.addi %0, %c14_i32_604 : i32
    %c8_i32_605 = arith.constant 8 : i32
    %1018 = arith.muli %1017, %c8_i32_605 : i32
    %c0_i32_606 = arith.constant 0 : i32
    %1019 = arith.addi %1018, %c0_i32_606 : i32
    %1020 = arith.index_cast %1019 : i32 to index
    %1021 = memref.load %arg2[%1020] : memref<256xi32, #tpu.memory_space<smem>>
    %1022 = arith.index_cast %1021 : i32 to index
    %c0_607 = arith.constant 0 : index
    %1023 = vector.load %arg4[%1022, %c0_607] : memref<512x128xf32, #tpu.memory_space<vmem>>, vector<1x128xf32>
    %c112_608 = arith.constant 112 : index
    %c0_609 = arith.constant 0 : index
    %1024 = vector.load %arg7[%c112_608, %c0_609] : memref<128x128xf32, #tpu.memory_space<vmem>>, vector<1x128xf32>
    tpu.vector_store %arg7[%c112_608, %c0_609], %1023 {strides = array<i32>} : memref<128x128xf32, #tpu.memory_space<vmem>>, vector<1x128xf32>,
    %c14_i32_610 = arith.constant 14 : i32
    %1025 = arith.addi %0, %c14_i32_610 : i32
    %c8_i32_611 = arith.constant 8 : i32
    %1026 = arith.muli %1025, %c8_i32_611 : i32
    %c1_i32_612 = arith.constant 1 : i32
    %1027 = arith.addi %1026, %c1_i32_612 : i32
    %1028 = arith.index_cast %1027 : i32 to index
    %1029 = memref.load %arg2[%1028] : memref<256xi32, #tpu.memory_space<smem>>
    %1030 = arith.index_cast %1029 : i32 to index
    %c0_613 = arith.constant 0 : index
    %1031 = vector.load %arg4[%1030, %c0_613] : memref<512x128xf32, #tpu.memory_space<vmem>>, vector<1x128xf32>
    %c113 = arith.constant 113 : index
    %c0_614 = arith.constant 0 : index
    %1032 = vector.load %arg7[%c113, %c0_614] : memref<128x128xf32, #tpu.memory_space<vmem>>, vector<1x128xf32>
    tpu.vector_store %arg7[%c113, %c0_614], %1031 {strides = array<i32>} : memref<128x128xf32, #tpu.memory_space<vmem>>, vector<1x128xf32>,
    %c14_i32_615 = arith.constant 14 : i32
    %1033 = arith.addi %0, %c14_i32_615 : i32
    %c8_i32_616 = arith.constant 8 : i32
    %1034 = arith.muli %1033, %c8_i32_616 : i32
    %c2_i32_617 = arith.constant 2 : i32
    %1035 = arith.addi %1034, %c2_i32_617 : i32
    %1036 = arith.index_cast %1035 : i32 to index
    %1037 = memref.load %arg2[%1036] : memref<256xi32, #tpu.memory_space<smem>>
    %1038 = arith.index_cast %1037 : i32 to index
    %c0_618 = arith.constant 0 : index
    %1039 = vector.load %arg4[%1038, %c0_618] : memref<512x128xf32, #tpu.memory_space<vmem>>, vector<1x128xf32>
    %c114 = arith.constant 114 : index
    %c0_619 = arith.constant 0 : index
    %1040 = vector.load %arg7[%c114, %c0_619] : memref<128x128xf32, #tpu.memory_space<vmem>>, vector<1x128xf32>
    tpu.vector_store %arg7[%c114, %c0_619], %1039 {strides = array<i32>} : memref<128x128xf32, #tpu.memory_space<vmem>>, vector<1x128xf32>,
    %c14_i32_620 = arith.constant 14 : i32
    %1041 = arith.addi %0, %c14_i32_620 : i32
    %c8_i32_621 = arith.constant 8 : i32
    %1042 = arith.muli %1041, %c8_i32_621 : i32
    %c3_i32_622 = arith.constant 3 : i32
    %1043 = arith.addi %1042, %c3_i32_622 : i32
    %1044 = arith.index_cast %1043 : i32 to index
    %1045 = memref.load %arg2[%1044] : memref<256xi32, #tpu.memory_space<smem>>
    %1046 = arith.index_cast %1045 : i32 to index
    %c0_623 = arith.constant 0 : index
    %1047 = vector.load %arg4[%1046, %c0_623] : memref<512x128xf32, #tpu.memory_space<vmem>>, vector<1x128xf32>
    %c115 = arith.constant 115 : index
    %c0_624 = arith.constant 0 : index
    %1048 = vector.load %arg7[%c115, %c0_624] : memref<128x128xf32, #tpu.memory_space<vmem>>, vector<1x128xf32>
    tpu.vector_store %arg7[%c115, %c0_624], %1047 {strides = array<i32>} : memref<128x128xf32, #tpu.memory_space<vmem>>, vector<1x128xf32>,
    %c14_i32_625 = arith.constant 14 : i32
    %1049 = arith.addi %0, %c14_i32_625 : i32
    %c8_i32_626 = arith.constant 8 : i32
    %1050 = arith.muli %1049, %c8_i32_626 : i32
    %c4_i32_627 = arith.constant 4 : i32
    %1051 = arith.addi %1050, %c4_i32_627 : i32
    %1052 = arith.index_cast %1051 : i32 to index
    %1053 = memref.load %arg2[%1052] : memref<256xi32, #tpu.memory_space<smem>>
    %1054 = arith.index_cast %1053 : i32 to index
    %c0_628 = arith.constant 0 : index
    %1055 = vector.load %arg4[%1054, %c0_628] : memref<512x128xf32, #tpu.memory_space<vmem>>, vector<1x128xf32>
    %c116 = arith.constant 116 : index
    %c0_629 = arith.constant 0 : index
    %1056 = vector.load %arg7[%c116, %c0_629] : memref<128x128xf32, #tpu.memory_space<vmem>>, vector<1x128xf32>
    tpu.vector_store %arg7[%c116, %c0_629], %1055 {strides = array<i32>} : memref<128x128xf32, #tpu.memory_space<vmem>>, vector<1x128xf32>,
    %c14_i32_630 = arith.constant 14 : i32
    %1057 = arith.addi %0, %c14_i32_630 : i32
    %c8_i32_631 = arith.constant 8 : i32
    %1058 = arith.muli %1057, %c8_i32_631 : i32
    %c5_i32_632 = arith.constant 5 : i32
    %1059 = arith.addi %1058, %c5_i32_632 : i32
    %1060 = arith.index_cast %1059 : i32 to index
    %1061 = memref.load %arg2[%1060] : memref<256xi32, #tpu.memory_space<smem>>
    %1062 = arith.index_cast %1061 : i32 to index
    %c0_633 = arith.constant 0 : index
    %1063 = vector.load %arg4[%1062, %c0_633] : memref<512x128xf32, #tpu.memory_space<vmem>>, vector<1x128xf32>
    %c117 = arith.constant 117 : index
    %c0_634 = arith.constant 0 : index
    %1064 = vector.load %arg7[%c117, %c0_634] : memref<128x128xf32, #tpu.memory_space<vmem>>, vector<1x128xf32>
    tpu.vector_store %arg7[%c117, %c0_634], %1063 {strides = array<i32>} : memref<128x128xf32, #tpu.memory_space<vmem>>, vector<1x128xf32>,
    %c14_i32_635 = arith.constant 14 : i32
    %1065 = arith.addi %0, %c14_i32_635 : i32
    %c8_i32_636 = arith.constant 8 : i32
    %1066 = arith.muli %1065, %c8_i32_636 : i32
    %c6_i32_637 = arith.constant 6 : i32
    %1067 = arith.addi %1066, %c6_i32_637 : i32
    %1068 = arith.index_cast %1067 : i32 to index
    %1069 = memref.load %arg2[%1068] : memref<256xi32, #tpu.memory_space<smem>>
    %1070 = arith.index_cast %1069 : i32 to index
    %c0_638 = arith.constant 0 : index
    %1071 = vector.load %arg4[%1070, %c0_638] : memref<512x128xf32, #tpu.memory_space<vmem>>, vector<1x128xf32>
    %c118 = arith.constant 118 : index
    %c0_639 = arith.constant 0 : index
    %1072 = vector.load %arg7[%c118, %c0_639] : memref<128x128xf32, #tpu.memory_space<vmem>>, vector<1x128xf32>
    tpu.vector_store %arg7[%c118, %c0_639], %1071 {strides = array<i32>} : memref<128x128xf32, #tpu.memory_space<vmem>>, vector<1x128xf32>,
    %c14_i32_640 = arith.constant 14 : i32
    %1073 = arith.addi %0, %c14_i32_640 : i32
    %c8_i32_641 = arith.constant 8 : i32
    %1074 = arith.muli %1073, %c8_i32_641 : i32
    %c7_i32_642 = arith.constant 7 : i32
    %1075 = arith.addi %1074, %c7_i32_642 : i32
    %1076 = arith.index_cast %1075 : i32 to index
    %1077 = memref.load %arg2[%1076] : memref<256xi32, #tpu.memory_space<smem>>
    %1078 = arith.index_cast %1077 : i32 to index
    %c0_643 = arith.constant 0 : index
    %1079 = vector.load %arg4[%1078, %c0_643] : memref<512x128xf32, #tpu.memory_space<vmem>>, vector<1x128xf32>
    %c119 = arith.constant 119 : index
    %c0_644 = arith.constant 0 : index
    %1080 = vector.load %arg7[%c119, %c0_644] : memref<128x128xf32, #tpu.memory_space<vmem>>, vector<1x128xf32>
    tpu.vector_store %arg7[%c119, %c0_644], %1079 {strides = array<i32>} : memref<128x128xf32, #tpu.memory_space<vmem>>, vector<1x128xf32>,
    %c15_i32 = arith.constant 15 : i32
    %1081 = arith.addi %0, %c15_i32 : i32
    %1082 = arith.index_cast %1081 : i32 to index
    %1083 = memref.load %arg1[%1082] : memref<32xi32, #tpu.memory_space<smem>>
    %1084 = arith.index_cast %1083 : i32 to index
    %c0_645 = arith.constant 0 : index
    %1085 = vector.load %arg3[%1084, %c0_645] : memref<512x128xf32, #tpu.memory_space<vmem>>, vector<1x128xf32>
    %1086 = vector.shape_cast %1085 : vector<1x128xf32> to vector<1x128xf32>
    %1087 = vector.broadcast %1086 : vector<1x128xf32> to vector<8x128xf32>
    %c120 = arith.constant 120 : index
    %c0_646 = arith.constant 0 : index
    %1088 = vector.load %arg6[%c120, %c0_646] : memref<128x128xf32, #tpu.memory_space<vmem>>, vector<8x128xf32>
    tpu.vector_store %arg6[%c120, %c0_646], %1087 {strides = array<i32>} : memref<128x128xf32, #tpu.memory_space<vmem>>, vector<8x128xf32>,
    %c15_i32_647 = arith.constant 15 : i32
    %1089 = arith.addi %0, %c15_i32_647 : i32
    %c8_i32_648 = arith.constant 8 : i32
    %1090 = arith.muli %1089, %c8_i32_648 : i32
    %c0_i32_649 = arith.constant 0 : i32
    %1091 = arith.addi %1090, %c0_i32_649 : i32
    %1092 = arith.index_cast %1091 : i32 to index
    %1093 = memref.load %arg2[%1092] : memref<256xi32, #tpu.memory_space<smem>>
    %1094 = arith.index_cast %1093 : i32 to index
    %c0_650 = arith.constant 0 : index
    %1095 = vector.load %arg4[%1094, %c0_650] : memref<512x128xf32, #tpu.memory_space<vmem>>, vector<1x128xf32>
    %c120_651 = arith.constant 120 : index
    %c0_652 = arith.constant 0 : index
    %1096 = vector.load %arg7[%c120_651, %c0_652] : memref<128x128xf32, #tpu.memory_space<vmem>>, vector<1x128xf32>
    tpu.vector_store %arg7[%c120_651, %c0_652], %1095 {strides = array<i32>} : memref<128x128xf32, #tpu.memory_space<vmem>>, vector<1x128xf32>,
    %c15_i32_653 = arith.constant 15 : i32
    %1097 = arith.addi %0, %c15_i32_653 : i32
    %c8_i32_654 = arith.constant 8 : i32
    %1098 = arith.muli %1097, %c8_i32_654 : i32
    %c1_i32_655 = arith.constant 1 : i32
    %1099 = arith.addi %1098, %c1_i32_655 : i32
    %1100 = arith.index_cast %1099 : i32 to index
    %1101 = memref.load %arg2[%1100] : memref<256xi32, #tpu.memory_space<smem>>
    %1102 = arith.index_cast %1101 : i32 to index
    %c0_656 = arith.constant 0 : index
    %1103 = vector.load %arg4[%1102, %c0_656] : memref<512x128xf32, #tpu.memory_space<vmem>>, vector<1x128xf32>
    %c121 = arith.constant 121 : index
    %c0_657 = arith.constant 0 : index
    %1104 = vector.load %arg7[%c121, %c0_657] : memref<128x128xf32, #tpu.memory_space<vmem>>, vector<1x128xf32>
    tpu.vector_store %arg7[%c121, %c0_657], %1103 {strides = array<i32>} : memref<128x128xf32, #tpu.memory_space<vmem>>, vector<1x128xf32>,
    %c15_i32_658 = arith.constant 15 : i32
    %1105 = arith.addi %0, %c15_i32_658 : i32
    %c8_i32_659 = arith.constant 8 : i32
    %1106 = arith.muli %1105, %c8_i32_659 : i32
    %c2_i32_660 = arith.constant 2 : i32
    %1107 = arith.addi %1106, %c2_i32_660 : i32
    %1108 = arith.index_cast %1107 : i32 to index
    %1109 = memref.load %arg2[%1108] : memref<256xi32, #tpu.memory_space<smem>>
    %1110 = arith.index_cast %1109 : i32 to index
    %c0_661 = arith.constant 0 : index
    %1111 = vector.load %arg4[%1110, %c0_661] : memref<512x128xf32, #tpu.memory_space<vmem>>, vector<1x128xf32>
    %c122 = arith.constant 122 : index
    %c0_662 = arith.constant 0 : index
    %1112 = vector.load %arg7[%c122, %c0_662] : memref<128x128xf32, #tpu.memory_space<vmem>>, vector<1x128xf32>
    tpu.vector_store %arg7[%c122, %c0_662], %1111 {strides = array<i32>} : memref<128x128xf32, #tpu.memory_space<vmem>>, vector<1x128xf32>,
    %c15_i32_663 = arith.constant 15 : i32
    %1113 = arith.addi %0, %c15_i32_663 : i32
    %c8_i32_664 = arith.constant 8 : i32
    %1114 = arith.muli %1113, %c8_i32_664 : i32
    %c3_i32_665 = arith.constant 3 : i32
    %1115 = arith.addi %1114, %c3_i32_665 : i32
    %1116 = arith.index_cast %1115 : i32 to index
    %1117 = memref.load %arg2[%1116] : memref<256xi32, #tpu.memory_space<smem>>
    %1118 = arith.index_cast %1117 : i32 to index
    %c0_666 = arith.constant 0 : index
    %1119 = vector.load %arg4[%1118, %c0_666] : memref<512x128xf32, #tpu.memory_space<vmem>>, vector<1x128xf32>
    %c123 = arith.constant 123 : index
    %c0_667 = arith.constant 0 : index
    %1120 = vector.load %arg7[%c123, %c0_667] : memref<128x128xf32, #tpu.memory_space<vmem>>, vector<1x128xf32>
    tpu.vector_store %arg7[%c123, %c0_667], %1119 {strides = array<i32>} : memref<128x128xf32, #tpu.memory_space<vmem>>, vector<1x128xf32>,
    %c15_i32_668 = arith.constant 15 : i32
    %1121 = arith.addi %0, %c15_i32_668 : i32
    %c8_i32_669 = arith.constant 8 : i32
    %1122 = arith.muli %1121, %c8_i32_669 : i32
    %c4_i32_670 = arith.constant 4 : i32
    %1123 = arith.addi %1122, %c4_i32_670 : i32
    %1124 = arith.index_cast %1123 : i32 to index
    %1125 = memref.load %arg2[%1124] : memref<256xi32, #tpu.memory_space<smem>>
    %1126 = arith.index_cast %1125 : i32 to index
    %c0_671 = arith.constant 0 : index
    %1127 = vector.load %arg4[%1126, %c0_671] : memref<512x128xf32, #tpu.memory_space<vmem>>, vector<1x128xf32>
    %c124 = arith.constant 124 : index
    %c0_672 = arith.constant 0 : index
    %1128 = vector.load %arg7[%c124, %c0_672] : memref<128x128xf32, #tpu.memory_space<vmem>>, vector<1x128xf32>
    tpu.vector_store %arg7[%c124, %c0_672], %1127 {strides = array<i32>} : memref<128x128xf32, #tpu.memory_space<vmem>>, vector<1x128xf32>,
    %c15_i32_673 = arith.constant 15 : i32
    %1129 = arith.addi %0, %c15_i32_673 : i32
    %c8_i32_674 = arith.constant 8 : i32
    %1130 = arith.muli %1129, %c8_i32_674 : i32
    %c5_i32_675 = arith.constant 5 : i32
    %1131 = arith.addi %1130, %c5_i32_675 : i32
    %1132 = arith.index_cast %1131 : i32 to index
    %1133 = memref.load %arg2[%1132] : memref<256xi32, #tpu.memory_space<smem>>
    %1134 = arith.index_cast %1133 : i32 to index
    %c0_676 = arith.constant 0 : index
    %1135 = vector.load %arg4[%1134, %c0_676] : memref<512x128xf32, #tpu.memory_space<vmem>>, vector<1x128xf32>
    %c125 = arith.constant 125 : index
    %c0_677 = arith.constant 0 : index
    %1136 = vector.load %arg7[%c125, %c0_677] : memref<128x128xf32, #tpu.memory_space<vmem>>, vector<1x128xf32>
    tpu.vector_store %arg7[%c125, %c0_677], %1135 {strides = array<i32>} : memref<128x128xf32, #tpu.memory_space<vmem>>, vector<1x128xf32>,
    %c15_i32_678 = arith.constant 15 : i32
    %1137 = arith.addi %0, %c15_i32_678 : i32
    %c8_i32_679 = arith.constant 8 : i32
    %1138 = arith.muli %1137, %c8_i32_679 : i32
    %c6_i32_680 = arith.constant 6 : i32
    %1139 = arith.addi %1138, %c6_i32_680 : i32
    %1140 = arith.index_cast %1139 : i32 to index
    %1141 = memref.load %arg2[%1140] : memref<256xi32, #tpu.memory_space<smem>>
    %1142 = arith.index_cast %1141 : i32 to index
    %c0_681 = arith.constant 0 : index
    %1143 = vector.load %arg4[%1142, %c0_681] : memref<512x128xf32, #tpu.memory_space<vmem>>, vector<1x128xf32>
    %c126 = arith.constant 126 : index
    %c0_682 = arith.constant 0 : index
    %1144 = vector.load %arg7[%c126, %c0_682] : memref<128x128xf32, #tpu.memory_space<vmem>>, vector<1x128xf32>
    tpu.vector_store %arg7[%c126, %c0_682], %1143 {strides = array<i32>} : memref<128x128xf32, #tpu.memory_space<vmem>>, vector<1x128xf32>,
    %c15_i32_683 = arith.constant 15 : i32
    %1145 = arith.addi %0, %c15_i32_683 : i32
    %c8_i32_684 = arith.constant 8 : i32
    %1146 = arith.muli %1145, %c8_i32_684 : i32
    %c7_i32_685 = arith.constant 7 : i32
    %1147 = arith.addi %1146, %c7_i32_685 : i32
    %1148 = arith.index_cast %1147 : i32 to index
    %1149 = memref.load %arg2[%1148] : memref<256xi32, #tpu.memory_space<smem>>
    %1150 = arith.index_cast %1149 : i32 to index
    %c0_686 = arith.constant 0 : index
    %1151 = vector.load %arg4[%1150, %c0_686] : memref<512x128xf32, #tpu.memory_space<vmem>>, vector<1x128xf32>
    %c127 = arith.constant 127 : index
    %c0_687 = arith.constant 0 : index
    %1152 = vector.load %arg7[%c127, %c0_687] : memref<128x128xf32, #tpu.memory_space<vmem>>, vector<1x128xf32>
    tpu.vector_store %arg7[%c127, %c0_687], %1151 {strides = array<i32>} : memref<128x128xf32, #tpu.memory_space<vmem>>, vector<1x128xf32>,
    %c0_688 = arith.constant 0 : index
    %c0_689 = arith.constant 0 : index
    %1153 = vector.load %arg6[%c0_688, %c0_689] : memref<128x128xf32, #tpu.memory_space<vmem>>, vector<128x128xf32>
    %c0_690 = arith.constant 0 : index
    %c0_691 = arith.constant 0 : index
    %1154 = vector.load %arg7[%c0_690, %c0_691] : memref<128x128xf32, #tpu.memory_space<vmem>>, vector<128x128xf32>
    %1155 = arith.mulf %1153, %1154 : vector<128x128xf32>
    %cst = arith.constant dense<0.000000e+00> : vector<128xf32>
    %1156 = vector.multi_reduction <add>, %1155, %cst [1] : vector<128x128xf32> to vector<128xf32>
    %1157 = vector.shape_cast %1156 : vector<128xf32> to vector<1x1x128xf32>
    %c0_692 = arith.constant 0 : index
    %c0_693 = arith.constant 0 : index
    %c0_694 = arith.constant 0 : index
    %1158 = vector.load %arg5[%c0_692, %c0_693, %c0_694] : memref<1x1x128xf32, #tpu.memory_space<vmem>>, vector<1x1x128xf32>
    tpu.vector_store %arg5[%c0_692, %c0_693, %c0_694], %1157 {strides = array<i32>} : memref<1x1x128xf32, #tpu.memory_space<vmem>>, vector<1x1x128xf32>,
    return
  }
  func.func @transform_0(%arg0: i32, %arg1: memref<32xi32, #tpu.memory_space<smem>>, %arg2: memref<256xi32, #tpu.memory_space<smem>>) -> (i32, i32) {
    %c0_i32 = arith.constant 0 : i32
    %c0_i32_0 = arith.constant 0 : i32
    %c0_i32_1 = arith.constant 0 : i32
    return %c0_i32, %c0_i32_0 : i32, i32
  }
  func.func @transform_1(%arg0: i32, %arg1: memref<32xi32, #tpu.memory_space<smem>>, %arg2: memref<256xi32, #tpu.memory_space<smem>>) -> (i32, i32) {
    %c0_i32 = arith.constant 0 : i32
    %c0_i32_0 = arith.constant 0 : i32
    %c0_i32_1 = arith.constant 0 : i32
    return %c0_i32, %c0_i32_0 : i32, i32
  }
  func.func @transform_2(%arg0: i32, %arg1: memref<32xi32, #tpu.memory_space<smem>>, %arg2: memref<256xi32, #tpu.memory_space<smem>>) -> (i32, i32, i32) {
    %c0_i32 = arith.constant 0 : i32
    %c0_i32_0 = arith.constant 0 : i32
    %c0_i32_1 = arith.constant 0 : i32
    return %arg0, %c0_i32, %c0_i32_0 : i32, i32, i32
  }
}

</mosaic_0001>

<bundles_post_ra>
// kernel: tpu_custom_call.1
= control target key start
LH: loop header
LB: loop body
LE: loop exit
PB: predicated region body
PF: predicated region fallthrough
CT: control target
= control target key end

     0   :  { %s2184_s0 = inlined_call_operand.hbm [shape: s32[32], index: 0, kind: input, shape index: {}]   ;;  %s2185_s2 = inlined_call_operand.hbm [shape: f32[512,128], index: 2, kind: input, shape index: {}]   ;;  %s2186_s3 = inlined_call_operand.hbm [shape: f32[512,128], index: 3, kind: input, shape index: {}]   ;;  %s2187_s4 = inlined_call_operand.hbm [shape: f32[2,1,128], index: 4, kind: output, shape index: {}]   ;;  %s2188_s1 = inlined_call_operand.vmem [shape: s32[256], index: 1, kind: input, shape index: {}]  }
   0x1   :  { %2192 = sst [smem:[#allocation17_spill]] %s2185_s2  ;;  %s1528_s17 = scalar_lea.hbm %s2184_s0, 16 }
   0x2   :  { %2193 = sst [smem:[#allocation18_spill]] %s2186_s3  ;;  %p1529_p0 = scmp.ne.s32.totalorder %s2184_s0, %s1528_s17 }
   0x3   :  { %p1532_p1 = scmp.lt.u32.totalorder %s1528_s17, %s2184_s0 }
   0x5   :  { %p1534_p2 = pnand %p1532_p1, %p1529_p0 }
   0x7   :  { %1537 = shalt.err (!%p1534_p2)  }
   0x8   :  { %s1680_s22 = smov [#allocation5]   ;;  %s11_s27 = sshll.u32 %s2188_s1, 4  ;;  %s12_s27 = int_to_ptr.vmem [resolvable:$true] %s11_s27 }
   0x9   :  { %10 = dma.hbm_to_smem %s2184_s0, 16, %s1680_s22, [#allocation4] }
   0xa   :  { %s1538_s28 = scalar_lea.vmem %s12_s27, 32  ;;  %p1543_p4 = scmp.lt.s32.totalorder %s12_s27, %s12_s27 }
   0xb   :  { %p1539_p3 = scmp.ne.s32.totalorder %s12_s27, %s1538_s28  ;;  %p1544_p5 = scmp.lt.s32.totalorder %s1538_s28, %s1538_s28 }
   0xd   :  { %p1545_p6 = por %p1544_p5, %p1543_p4 }
   0xf   :  { %p1546_p7 = pnand %p1545_p6, %p1539_p3 }
  0x11   :  { %1549 = shalt.err (!%p1546_p7)  }
  0x12   :  { %s1681_s29 = smov [#allocation6]  }
  0x13   :  { %14 = dma.vmem_to_smem %s12_s27, 32, %s1681_s29, [#allocation4] }
  0x14   :  { %1650 = dma.done.wait [#allocation4], 48 }
  0x15   :  { %1651 = vsyncadd [#allocation4], 4294967248 }
  0x16   :  { %16 = sfence }
  0x17   :  { %17 = vsyncpa [#allocation8], 0 }
  0x18   :  { %18 = vsyncpa [#allocation11], 0 }
  0x19   :  { %19 = vsyncpa [#allocation9], 0 }
  0x1a   :  { %21 = vsyncpa [#allocation9 + $0x1], 0  ;;  %s1727_s0 = smov 0   ;;  %s1729_s1 = smov 0  }
  0x1b   :  { %s1731_s30 = smov 0   ;;  %s1733_s5 = smov 0  }
  0x1c LB: > { %s1748_s6 = sadd.s32 4294967295, %s1678_s5   ;;  %s1376_s7 = sadd.s32 4294967294, %s1678_s5   ;;  %s1678_s5 = sphi %s1733_s5, %s2211_s5   ;;  %s1674_s30 = sphi %s1731_s30, %s2210_s30   ;;  %s1670_s1 = sphi %s1729_s1, %s2209_s1   ;;  %s1666_s0 = sphi %s1727_s0, %s2208_s0  }
  0x1d   : > { %s1752_s8 = sadd.s32 1, %s1678_s5   ;;  %s76_s9 = sadd.s32 1, %s1674_s30 }
  0x1e   : > { %s73_s10 = ssub.s32 %s1678_s5, %s1752_s8  ;;  %p86_p8 = scmp.ne.s32.totalorder %s1674_s30, %s1670_s1 }
  0x1f   : > { %p74_p9 = scmp.eq.s32.totalorder %s73_s10, 0  ;;  %p87_p10 = scmp.eq.s32.totalorder %s1748_s6, 1 }
  0x20   : > { %p92_p11 = scmp.ne.s32.totalorder %s1670_s1, %s1666_s0  ;;  %p93_p12 = scmp.eq.s32.totalorder %s1376_s7, 1 }
  0x21   : > { %s1763_s11 = scalar_select %p74_p9, %s1674_s30, %s76_s9  }
  0x22   : > { %p1765_p13 = por %p87_p10, %p86_p8  ;;  %p1769_p0 = por %p93_p12, %p92_p11 }
  0x23   : > { %p1377_p1 = scmp.ge.s32.totalorder %s1678_s5, 1  ;;  %p100_p2 = scmp.lt.s32.totalorder %s1678_s5, 3 }
  0x24   : > { %s2194_s12 = scalar_select %p1765_p13, 1, 0 }
  0x25   : > { %s2195_s13 = scalar_select %p1769_p0, 1, 0 }
  0x26   : > { %p2189_p3 = scmp.eq.s32.totalorder %s1748_s6, 0  ;;  %p1776_p4 = pnand %p1377_p1, %p100_p2 }
  0x27   : > { %s1682_s15 = smov [#allocation7]   ;;  %s1683_s18 = smov [#allocation10]  }
  0x28   : > { %s2196_s14 = scalar_select %p1776_p4, 1, 0 }
  0x29   : > { %s112_s16 = sshll.u32 %s1682_s15, 4  ;;  %p1474_p5 = pneg %p1776_p4  ;;  %s113_s16 = int_to_ptr.vmem [resolvable:$true] %s112_s16 }
  0x2a   : > { %s125_s19 = sshll.u32 %s1683_s18, 4  ;;  %s2198_s2 = sld [smem:[#allocation17_spill]]  ;;  %s1788_s19 = int_to_ptr.vmem [resolvable:$true] %s125_s19 }
  0x2b   : > { %p1784_p6 = pnand %p2189_p3, %p1474_p5 }
  0x2d   : > { %p1552_p8 = pneg %p1784_p6 }
  0x30   : > { %s1550_s22 = scalar_lea.hbm %s2198_s2, 8192 }
  0x31   : > { %p1551_p7 = scmp.ne.s32.totalorder %s2198_s2, %s1550_s22  ;;  %p1557_p11 = scmp.lt.u32.totalorder %s1550_s22, %s2198_s2 }
  0x33   : > { %p1553_p9 = pnand %p1552_p8, %p1551_p7 }
  0x35   : > { %p1554_p10 = pneg %p1553_p9 }
  0x37   : > { %p1559_p12 = pnand %p1557_p11, %p1554_p10 }
  0x39   : > { %1562 = shalt.err (!%p1559_p12)
}
  0x3a   : > { %s1563_s27 = scalar_lea.vmem %s113_s16, 8192  ;;  %p1571_p3 = scmp.lt.s32.totalorder %s113_s16, %s113_s16 }
  0x3b   : > { %p1564_p1 = scmp.ne.s32.totalorder %s113_s16, %s1563_s27  ;;  %p1572_p0 = scmp.lt.s32.totalorder %s1563_s27, %s1563_s27 }
  0x3d   : > { %p1566_p2 = pnand %p1564_p1, %p1552_p8  ;;  %p1573_p13 = por %p1572_p0, %p1571_p3 }
  0x3f   : > { %p1567_p5 = pneg %p1566_p2 }
  0x41   : > { %p1574_p4 = pnand %p1573_p13, %p1567_p5 }
  0x43   : > { %1577 = shalt.err (!%p1574_p4)
}
  0x44   : > { %s1684_s28 = smov 128   ;;  %s1685_s29 = smov 8  }
  0x45   : > { %1477 = dma.hbm_to_vmem [thread:$0]  (!%p1784_p6), %s2198_s2, 8192, %s113_s16, [#allocation8], %s1684_s28, %s1684_s28, %s1685_s29  }
  0x46   : > { %s2199_s3 = sld [smem:[#allocation18_spill]] }
  0x4c   : > { %s1578_s18 = scalar_lea.hbm %s2199_s3, 8192 }
  0x4d   : > { %p1579_p7 = scmp.ne.s32.totalorder %s2199_s3, %s1578_s18  ;;  %p1585_p3 = scmp.lt.u32.totalorder %s1578_s18, %s2199_s3 }
  0x4f   : > { %p1581_p13 = pnand %p1579_p7, %p1552_p8 }
  0x51   : > { %p1582_p0 = pneg %p1581_p13 }
  0x53   : > { %p1587_p4 = pnand %p1585_p3, %p1582_p0 }
  0x55   : > { %1590 = shalt.err (!%p1587_p4)
}
  0x56   : > { %s1591_s16 = scalar_lea.vmem %s1788_s19, 8192  ;;  %p1599_p12 = scmp.lt.s32.totalorder %s1788_s19, %s1788_s19 }
  0x57   : > { %p1592_p9 = scmp.ne.s32.totalorder %s1788_s19, %s1591_s16  ;;  %p1600_p1 = scmp.lt.s32.totalorder %s1591_s16, %s1591_s16 }
  0x59   : > { %p1594_p10 = pnand %p1592_p9, %p1552_p8  ;;  %p1601_p2 = por %p1600_p1, %p1599_p12 }
  0x5b   : > { %p1595_p11 = pneg %p1594_p10 }
  0x5d   : > { %p1602_p5 = pnand %p1601_p2, %p1595_p11 }
  0x5f   : > { %1605 = shalt.err (!%p1602_p5)
}
  0x60   : > { %1480 = dma.hbm_to_vmem [thread:$0]  (!%p1784_p6), %s2199_s3, 8192, %s1788_s19, [#allocation11], %s1684_s28, %s1684_s28, %s1685_s29  }
  0x61   : > { %p2200_p7 = scmp.ne.s32.totalorder %s2196_s14, 0 }
  0x62   : > { %p2201_p13 = scmp.eq.s32.totalorder (!%p2200_p7), %s1748_s6, 0 }
  0x63   : > { %141 = sbr.rel (%p2200_p7) target bundleno = 504 (0x1f8), region = 28 }
  0x6a   : > { %1653 = dma.done.wait (%p2201_p13), [#allocation8], 8192   ;;  %p2202_p8 = pmov %p2201_p13 }
  0x6c   : > { %1655 = vsyncadd (%p2202_p8), [#allocation8], 4294959104  ;;  %p2203_p0 = pmov %p2202_p8 }
  0x6e   : > { %1657 = dma.done.wait (%p2203_p0), [#allocation11], 8192   ;;  %p2204_p3 = pmov %p2203_p0 }
  0x6f   : > { %s1848_s17 = sshll.u32 %s1748_s6, 4  ;;  %s1851_s19 = sshll.u32 %s1748_s6, 7  ;;  %vm1052_vm0 = vcmask 130112   ;;  %vm1059_vm1 = vcmask 195712   ;;  %vm1066_vm2 = vcmask 261312   ;;  %vm1073_vm3 = vcmask 326912  }
  0x70   : > { %1659 = vsyncadd (%p2204_p3), [#allocation11], 4294959104  ;;  %s1854_s14 = sld [smem:[#allocation5 + %s1848_s17]]  ;;  %s175_s27 = sadd.s32 1, %s1851_s19  ;;  %vm1080_vm4 = vcmask 392512   ;;  %vm1087_vm5 = vcmask 458112  }
  0x71   : > { %s171_s26 = sld [smem:[#allocation6 + %s1851_s19]]  ;;  %s180_s28 = sadd.s32 2, %s1851_s19  ;;  %vm1094_vm6 = vcmask 523712   ;;  %vm1101_vm7 = vcmask 589312   ;;  %vm1108_vm8 = vcmask 654912   ;;  %vm1115_vm9 = vcmask 720512  }
  0x72   : > { %s176_s29 = sld [smem:[#allocation6 + %s175_s27]]  ;;  %s185_s9 = sadd.s32 3, %s1851_s19  ;;  %vm1122_vm10 = vcmask 786112   ;;  %vm1129_vm11 = vcmask 851712   ;;  %vm1136_vm12 = vcmask 917312   ;;  %vm1143_vm13 = vcmask 982912  }
  0x73   : > { %s181_s7 = sld [smem:[#allocation6 + %s180_s28]]  ;;  %s190_s10 = sadd.s32 4, %s1851_s19  ;;  %vm1150_vm14 = vcmask 1048512  }
  0x74   : > { %s186_s6 = sld [smem:[#allocation6 + %s185_s9]]  ;;  %s195_s18 = sadd.s32 5, %s1851_s19 }
  0x75   : > { %s191_s15 = sld [smem:[#allocation6 + %s190_s10]]  ;;  %s200_s20 = sadd.s32 6, %s1851_s19 }
  0x76   : > { %s196_s22 = sld [smem:[#allocation6 + %s195_s18]]  ;;  %s205_s25 = sadd.s32 7, %s1851_s19 }
  0x77   : > { %s172_s21 = scalar_lea.vmem [#allocation10], %s171_s26  ;;  %s201_s23 = sld [smem:[#allocation6 + %s200_s20]] }
  0x78   : > { %v173_v0 = vld [vmem:[%s172_s21] sm:$0x1]  ;;  %s177_s16 = scalar_lea.vmem [#allocation10], %s176_s29  ;;  %s259_s27 = sadd.s32 2, %s1848_s17 }
  0x79   : > { %174 = vst [vmem:[#allocation3] sm:$0x1] %v173_v0  ;;  %v178_v1 = vld [vmem:[%s177_s16] sm:$0x1]  ;;  %s182_s24 = scalar_lea.vmem [#allocation10], %s181_s7  ;;  %s206_s10 = sld [smem:[#allocation6 + %s205_s25]] }
  0x7a   : > { %v183_v2 = vld [vmem:[%s182_s24] sm:$0x1]  ;;  %179 = vst [vmem:[#allocation3 + $0x1] sm:$0x1] %v178_v1  ;;  %s187_s28 = scalar_lea.vmem [#allocation10], %s186_s6  ;;  %s1865_s26 = sld [smem:[#allocation5 + %s259_s27]] }
  0x7b   : > { %184 = vst [vmem:[#allocation3 + $0x2] sm:$0x1] %v183_v2  ;;  %v188_v3 = vld [vmem:[%s187_s28] sm:$0x1]  ;;  %s192_s9 = scalar_lea.vmem [#allocation10], %s191_s15  ;;  %s1868_s18 = sadd.s32 16, %s1851_s19 }
  0x7c   : > { %v193_v4 = vld [vmem:[%s192_s9] sm:$0x1]  ;;  %189 = vst [vmem:[#allocation3 + $0x3] sm:$0x1] %v188_v3  ;;  %s197_s29 = scalar_lea.vmem [#allocation10], %s196_s22  ;;  %s269_s6 = sld [smem:[#allocation6 + %s1868_s18]] }
  0x7d   : > { %194 = vst [vmem:[#allocation3 + $0x4] sm:$0x1] %v193_v4  ;;  %v198_v5 = vld [vmem:[%s197_s29] sm:$0x1]  ;;  %s202_s7 = scalar_lea.vmem [#allocation10], %s201_s23  ;;  %s273_s15 = sadd.s32 1, %s1868_s18 }
  0x7e   : > { %v203_v6 = vld [vmem:[%s202_s7] sm:$0x1]  ;;  %199 = vst [vmem:[#allocation3 + $0x5] sm:$0x1] %v198_v5  ;;  %s274_s20 = sld [smem:[#allocation6 + %s273_s15]]  ;;  %s278_s21 = sadd.s32 2, %s1868_s18 }
  0x7f   : > { %204 = vst [vmem:[#allocation3 + $0x6] sm:$0x1] %v203_v6  ;;  %s279_s16 = sld [smem:[#allocation6 + %s278_s21]]  ;;  %s283_s24 = sadd.s32 3, %s1868_s18 }
  0x80   : > { %s207_s27 = scalar_lea.vmem [#allocation10], %s206_s10  ;;  %s284_s28 = sld [smem:[#allocation6 + %s283_s24]] }
  0x81   : > { %v208_v7 = vld [vmem:[%s207_s27] sm:$0x1]  ;;  %s288_s22 = sadd.s32 4, %s1868_s18  ;;  %s293_s9 = sadd.s32 5, %s1868_s18 }
  0x82   : > { %209 = vst [vmem:[#allocation3 + $0x7] sm:$0x1] %v208_v7  ;;  %s289_s23 = sld [smem:[#allocation6 + %s288_s22]]  ;;  %s270_s7 = scalar_lea.vmem [#allocation10], %s269_s6 }
  0x83   : > { %s294_s29 = sld [smem:[#allocation6 + %s293_s9]]  ;;  %v271_v8 = vld [vmem:[%s270_s7] sm:$0x1]  ;;  %s298_s2 = sadd.s32 6, %s1868_s18 }
  0x84   : > { %272 = vst [vmem:[#allocation3 + $0x10] sm:$0x1] %v271_v8  ;;  %s275_s15 = scalar_lea.vmem [#allocation10], %s274_s20  ;;  %s299_s21 = sld [smem:[#allocation6 + %s298_s2]] }
  0x85   : > { %v276_v9 = vld [vmem:[%s275_s15] sm:$0x1]  ;;  %s280_s25 = scalar_lea.vmem [#allocation10], %s279_s16  ;;  %s303_s10 = sadd.s32 7, %s1868_s18 }
  0x86   : > { %277 = vst [vmem:[#allocation3 + $0x11] sm:$0x1] %v276_v9  ;;  %v281_v10 = vld [vmem:[%s280_s25] sm:$0x1]  ;;  %s163_s24 = scalar_lea.vmem [#allocation7], %s1854_s14  ;;  %s304_s27 = sld [smem:[#allocation6 + %s303_s10]] }
  0x87   : > { %v1384_v11 = vld [vmem:[%s163_s24] ss:$0 sm:$0xff]  ;;  %282 = vst [vmem:[#allocation3 + $0x12] sm:$0x1] %v281_v10  ;;  %s285_s3 = scalar_lea.vmem [#allocation10], %s284_s28  ;;  %s1881_s22 = sadd.s32 8, %s1851_s19 }
  0x88   : > { %v286_v12 = vld [vmem:[%s285_s3] sm:$0x1]  ;;  %s290_s6 = scalar_lea.vmem [#allocation10], %s289_s23  ;;  %s220_s2 = sld [smem:[#allocation6 + %s1881_s22]] }
  0x89   : > { %v961_v13 = vld [vmem:[#allocation3] sm:$0xff]  ;;  %287 = vst [vmem:[#allocation3 + $0x13] sm:$0x1] %v286_v12  ;;  %v291_v14 = vld [vmem:[%s290_s6] sm:$0x1]  ;;  %s295_s14 = scalar_lea.vmem [#allocation10], %s294_s29 }
  0x8a   : > { %v977_v15 = vmul.f32 %v1384_v11, %v961_v13  ;;  %292 = vst [vmem:[#allocation3 + $0x14] sm:$0x1] %v291_v14  ;;  %v296_v16 = vld [vmem:[%s295_s14] sm:$0x1]  ;;  %s224_s18 = sadd.s32 1, %s1881_s22  ;;  %s229_s20 = sadd.s32 2, %s1881_s22 }
  0x8b   : > { %297 = vst [vmem:[#allocation3 + $0x15] sm:$0x1] %v296_v16  ;;  %s225_s3 = sld [smem:[#allocation6 + %s224_s18]]  ;;  %s300_s16 = scalar_lea.vmem [#allocation10], %s299_s21 }
  0x8c   : > { %993 = vadd.xlane.f32.xlu0 %v977_v15  ;;  %v301_v17 = vld [vmem:[%s300_s16] sm:$0x1]  ;;  %s2205_s25 = sadd.s32 1, %s1848_s17  ;;  %s230_s23 = sld [smem:[#allocation6 + %s229_s20]] }
  0x8d   : > { %s1888_s28 = sld [smem:[#allocation5 + %s2205_s25]]  ;;  %302 = vst [vmem:[#allocation3 + $0x16] sm:$0x1] %v301_v17  ;;  %s234_s9 = sadd.s32 3, %s1881_s22 }
  0x8e   : > { %s305_s7 = scalar_lea.vmem [#allocation10], %s304_s27  ;;  %s235_s29 = sld [smem:[#allocation6 + %s234_s9]] }
  0x8f   : > { %v306_v18 = vld [vmem:[%s305_s7] sm:$0x1]  ;;  %s239_s15 = sadd.s32 4, %s1881_s22  ;;  %s221_s24 = scalar_lea.vmem [#allocation10], %s220_s2 }
  0x90   : > { %307 = vst [vmem:[#allocation3 + $0x17] sm:$0x1] %v306_v18  ;;  %s240_s10 = sld [smem:[#allocation6 + %s239_s15]]  ;;  %v222_v19 = vld [vmem:[%s221_s24] sm:$0x1]  ;;  %s244_s6 = sadd.s32 5, %s1881_s22 }
  0x91   : > { %s249_s21 = sadd.s32 6, %s1881_s22  ;;  %223 = vst [vmem:[#allocation3 + $0x8] sm:$0x1] %v222_v19  ;;  %s245_s14 = sld [smem:[#allocation6 + %s244_s6]] }
  0x92   : > { %s226_s18 = scalar_lea.vmem [#allocation10], %s225_s3  ;;  %s250_s20 = sld [smem:[#allocation6 + %s249_s21]] }
  0x93   : > { %v227_v20 = vld [vmem:[%s226_s18] sm:$0x1]  ;;  %s231_s27 = scalar_lea.vmem [#allocation10], %s230_s23  ;;  %s254_s16 = sadd.s32 7, %s1881_s22 }
  0x94   : > { %228 = vst [vmem:[#allocation3 + $0x9] sm:$0x1] %v227_v20  ;;  %v232_v21 = vld [vmem:[%s231_s27] sm:$0x1]  ;;  %s308_s25 = sadd.s32 3, %s1848_s17  ;;  %s261_s9 = scalar_lea.vmem [#allocation7], %s1865_s26 }
  0x95   : > { %v1388_v22 = vld [vmem:[%s261_s9] ss:$0 sm:$0xff]  ;;  %233 = vst [vmem:[#allocation3 + $0xa] sm:$0x1] %v232_v21  ;;  %s255_s7 = sld [smem:[#allocation6 + %s254_s16]]  ;;  %s236_s15 = scalar_lea.vmem [#allocation10], %s235_s29 }
  0x96   : > { %v237_v23 = vld [vmem:[%s236_s15] sm:$0x1]  ;;  %s241_s2 = scalar_lea.vmem [#allocation10], %s240_s10  ;;  %s1897_s24 = sld [smem:[#allocation5 + %s308_s25]] }
  0x97   : > { %v963_v24 = vld [vmem:[#allocation3 + $0x10] sm:$0xff]  ;;  %238 = vst [vmem:[#allocation3 + $0xb] sm:$0x1] %v237_v23  ;;  %v242_v25 = vld [vmem:[%s241_s2] sm:$0x1]  ;;  %s1900_s3 = sadd.s32 24, %s1851_s19 }
  0x98   : > { %v979_v26 = vmul.f32 %v1388_v22, %v963_v24  ;;  %243 = vst [vmem:[#allocation3 + $0xc] sm:$0x1] %v242_v25  ;;  %s318_s26 = sld [smem:[#allocation6 + %s1900_s3]]  ;;  %s246_s22 = scalar_lea.vmem [#allocation10], %s245_s14 }
  0x99   : > { %v247_v27 = vld [vmem:[%s246_s22] sm:$0x1]  ;;  %s322_s23 = sadd.s32 1, %s1900_s3  ;;  %s251_s29 = scalar_lea.vmem [#allocation10], %s250_s20 }
  0x9a   : > { %997 = vadd.xlane.f32.xlu1 %v979_v26  ;;  %248 = vst [vmem:[#allocation3 + $0xd] sm:$0x1] %v247_v27  ;;  %v252_v28 = vld [vmem:[%s251_s29] sm:$0x1]  ;;  %s323_s10 = sld [smem:[#allocation6 + %s322_s23]]  ;;  %s327_s6 = sadd.s32 2, %s1900_s3 }
  0x9b   : > { %253 = vst [vmem:[#allocation3 + $0xe] sm:$0x1] %v252_v28  ;;  %s328_s21 = sld [smem:[#allocation6 + %s327_s6]]  ;;  %s256_s18 = scalar_lea.vmem [#allocation10], %s255_s7 }
  0x9c   : > { %v257_v29 = vld [vmem:[%s256_s18] sm:$0x1]  ;;  %s332_s27 = sadd.s32 3, %s1900_s3  ;;  %s357_s16 = sadd.s32 4, %s1848_s17 }
  0x9d   : > { %258 = vst [vmem:[#allocation3 + $0xf] sm:$0x1] %v257_v29  ;;  %s333_s14 = sld [smem:[#allocation6 + %s332_s27]]  ;;  %s337_s25 = sadd.s32 4, %s1900_s3 }
  0x9e   : > { %s338_s9 = sld [smem:[#allocation6 + %s337_s25]]  ;;  %s319_s15 = scalar_lea.vmem [#allocation10], %s318_s26 }
  0x9f   : > { %v320_v30 = vld [vmem:[%s319_s15] sm:$0x1]  ;;  %s342_s20 = sadd.s32 5, %s1900_s3  ;;  %s347_s2 = sadd.s32 6, %s1900_s3 }
  0xa0   : > { %321 = vst [vmem:[#allocation3 + $0x18] sm:$0x1] %v320_v30  ;;  %s343_s22 = sld [smem:[#allocation6 + %s342_s20]]  ;;  %s324_s23 = scalar_lea.vmem [#allocation10], %s323_s10 }
  0xa1   : > { %v325_v31 = vld [vmem:[%s324_s23] sm:$0x1]  ;;  %s348_s29 = sld [smem:[#allocation6 + %s347_s2]]  ;;  %s212_s7 = scalar_lea.vmem [#allocation7], %s1888_s28 }
  0xa2   : > { %v1386_v32 = vld [vmem:[%s212_s7] ss:$0 sm:$0xff]  ;;  %326 = vst [vmem:[#allocation3 + $0x19] sm:$0x1] %v325_v31  ;;  %s329_s6 = scalar_lea.vmem [#allocation10], %s328_s21  ;;  %s352_s18 = sadd.s32 7, %s1900_s3 }
  0xa3   : > { %v330_v33 = vld [vmem:[%s329_s6] sm:$0x1]  ;;  %s353_s27 = sld [smem:[#allocation6 + %s352_s18]]  ;;  %s334_s25 = scalar_lea.vmem [#allocation10], %s333_s14 }
  0xa4   : > { %331 = vst [vmem:[#allocation3 + $0x1a] sm:$0x1] %v330_v33  ;;  %v962_v34 = vld [vmem:[#allocation3 + $0x8] sm:$0xff]  ;;  %v335_v35 = vld [vmem:[%s334_s25] sm:$0x1]  ;;  %s1913_s26 = sadd.s32 32, %s1851_s19 }
  0xa5   : > { %v978_v36 = vmul.f32 %v1386_v32, %v962_v34  ;;  %336 = vst [vmem:[#allocation3 + $0x1b] sm:$0x1] %v335_v35  ;;  %s339_s10 = scalar_lea.vmem [#allocation10], %s338_s9  ;;  %s367_s28 = sld [smem:[#allocation6 + %s1913_s26]] }
  0xa6   : > { %v340_v37 = vld [vmem:[%s339_s10] sm:$0x1]  ;;  %s371_s21 = sadd.s32 1, %s1913_s26  ;;  %s344_s15 = scalar_lea.vmem [#allocation10], %s343_s22 }
  0xa7   : > { %341 = vst [vmem:[#allocation3 + $0x1c] sm:$0x1] %v340_v37  ;;  %s372_s3 = sld [smem:[#allocation6 + %s371_s21]]  ;;  %995 = vadd.xlane.f32.xlu0 %v978_v36  ;;  %v345_v38 = vld [vmem:[%s344_s15] sm:$0x1]  ;;  %s376_s14 = sadd.s32 2, %s1913_s26 }
  0xa8   : > { %346 = vst [vmem:[#allocation3 + $0x1d] sm:$0x1] %v345_v38  ;;  %s349_s20 = scalar_lea.vmem [#allocation10], %s348_s29  ;;  %s1920_s2 = sld [smem:[#allocation5 + %s357_s16]] }
  0xa9   : > { %v350_v39 = vld [vmem:[%s349_s20] sm:$0x1]  ;;  %s377_s23 = sld [smem:[#allocation6 + %s376_s14]]  ;;  %s381_s9 = sadd.s32 3, %s1913_s26 }
  0xaa   : > { %351 = vst [vmem:[#allocation3 + $0x1e] sm:$0x1] %v350_v39  ;;  %s354_s7 = scalar_lea.vmem [#allocation10], %s353_s27  ;;  %s382_s6 = sld [smem:[#allocation6 + %s381_s9]] }
  0xab   : > { %v355_v40 = vld [vmem:[%s354_s7] sm:$0x1]  ;;  %s386_s18 = sadd.s32 4, %s1913_s26  ;;  %s368_s25 = scalar_lea.vmem [#allocation10], %s367_s28 }
  0xac   : > { %356 = vst [vmem:[#allocation3 + $0x1f] sm:$0x1] %v355_v40  ;;  %s387_s22 = sld [smem:[#allocation6 + %s386_s18]]  ;;  %v369_v41 = vld [vmem:[%s368_s25] sm:$0x1]  ;;  %s391_s29 = sadd.s32 5, %s1913_s26 }
  0xad   : > { %370 = vst [vmem:[#allocation3 + $0x20] sm:$0x1] %v369_v41  ;;  %s373_s10 = scalar_lea.vmem [#allocation10], %s372_s3  ;;  %s392_s16 = sld [smem:[#allocation6 + %s391_s29]] }
  0xae   : > { %v374_v42 = vld [vmem:[%s373_s10] sm:$0x1]  ;;  %s396_s21 = sadd.s32 6, %s1913_s26  ;;  %s401_s14 = sadd.s32 7, %s1913_s26 }
  0xaf   : > { %375 = vst [vmem:[#allocation3 + $0x21] sm:$0x1] %v374_v42  ;;  %s397_s15 = sld [smem:[#allocation6 + %s396_s21]]  ;;  %s378_s27 = scalar_lea.vmem [#allocation10], %s377_s23 }
  0xb0   : > { %v379_v43 = vld [vmem:[%s378_s27] sm:$0x1]  ;;  %s406_s20 = sadd.s32 5, %s1848_s17  ;;  %s310_s9 = scalar_lea.vmem [#allocation7], %s1897_s24 }
  0xb1   : > { %v1390_v44 = vld [vmem:[%s310_s9] ss:$0 sm:$0xff]  ;;  %380 = vst [vmem:[#allocation3 + $0x22] sm:$0x1] %v379_v43  ;;  %s402_s7 = sld [smem:[#allocation6 + %s401_s14]]  ;;  %s383_s18 = scalar_lea.vmem [#allocation10], %s382_s6 }
  0xb2   : > { %v384_v45 = vld [vmem:[%s383_s18] sm:$0x1]  ;;  %s388_s28 = scalar_lea.vmem [#allocation10], %s387_s22  ;;  %s1929_s3 = sld [smem:[#allocation5 + %s406_s20]] }
  0xb3   : > { %v964_v46 = vld [vmem:[#allocation3 + $0x18] sm:$0xff]  ;;  %385 = vst [vmem:[#allocation3 + $0x23] sm:$0x1] %v384_v45  ;;  %s1932_s25 = sadd.s32 40, %s1851_s19  ;;  %s393_s26 = scalar_lea.vmem [#allocation10], %s392_s16 }
  0xb4   : > { %v389_v47 = vld [vmem:[%s388_s28] sm:$0x1]  ;;  %v980_v48 = vmul.f32 %v1390_v44, %v964_v46  ;;  %s416_s24 = sld [smem:[#allocation6 + %s1932_s25]]  ;;  %s420_s23 = sadd.s32 1, %s1932_s25 }
  0xb5   : > { %390 = vst [vmem:[#allocation3 + $0x24] sm:$0x1] %v389_v47  ;;  %v394_v49 = vld [vmem:[%s393_s26] sm:$0x1]  ;;  %s398_s6 = scalar_lea.vmem [#allocation10], %s397_s15  ;;  %s421_s22 = sld [smem:[#allocation6 + %s420_s23]] }
  0xb6   : > { %999 = vadd.xlane.f32.xlu1 %v980_v48  ;;  %395 = vst [vmem:[#allocation3 + $0x25] sm:$0x1] %v394_v49  ;;  %v399_v50 = vld [vmem:[%s398_s6] sm:$0x1]  ;;  %s425_s29 = sadd.s32 2, %s1932_s25  ;;  %s430_s27 = sadd.s32 3, %s1932_s25 }
  0xb7   : > { %400 = vst [vmem:[#allocation3 + $0x26] sm:$0x1] %v399_v50  ;;  %s426_s10 = sld [smem:[#allocation6 + %s425_s29]]  ;;  %s403_s21 = scalar_lea.vmem [#allocation10], %s402_s7 }
  0xb8   : > { %v404_v51 = vld [vmem:[%s403_s21] sm:$0x1]  ;;  %s455_s14 = sadd.s32 6, %s1848_s17  ;;  %s431_s16 = sld [smem:[#allocation6 + %s430_s27]] }
  0xb9   : > { %405 = vst [vmem:[#allocation3 + $0x27] sm:$0x1] %v404_v51  ;;  %s435_s20 = sadd.s32 4, %s1932_s25  ;;  %s440_s15 = sadd.s32 5, %s1932_s25 }
  0xba   : > { %s436_s9 = sld [smem:[#allocation6 + %s435_s20]]  ;;  %s417_s18 = scalar_lea.vmem [#allocation10], %s416_s24 }
  0xbb   : > { %v418_v52 = vld [vmem:[%s417_s18] sm:$0x1]  ;;  %s445_s28 = sadd.s32 6, %s1932_s25  ;;  %s441_s26 = sld [smem:[#allocation6 + %s440_s15]] }
  0xbc   : > { %419 = vst [vmem:[#allocation3 + $0x28] sm:$0x1] %v418_v52  ;;  %s422_s23 = scalar_lea.vmem [#allocation10], %s421_s22  ;;  %s446_s6 = sld [smem:[#allocation6 + %s445_s28]] }
  0xbd   : > { %v423_v53 = vld [vmem:[%s422_s23] sm:$0x1]  ;;  %s359_s7 = scalar_lea.vmem [#allocation7], %s1920_s2  ;;  %s427_s29 = scalar_lea.vmem [#allocation10], %s426_s10 }
  0xbe   : > { %v1392_v54 = vld [vmem:[%s359_s7] ss:$0 sm:$0xff]  ;;  %424 = vst [vmem:[#allocation3 + $0x29] sm:$0x1] %v423_v53  ;;  %s450_s21 = sadd.s32 7, %s1932_s25  ;;  %s432_s20 = scalar_lea.vmem [#allocation10], %s431_s16 }
  0xbf   : > { %v428_v55 = vld [vmem:[%s427_s29] sm:$0x1]  ;;  %s451_s27 = sld [smem:[#allocation6 + %s450_s21]]  ;;  %s1945_s24 = sadd.s32 48, %s1851_s19 }
  0xc0   : > { %429 = vst [vmem:[#allocation3 + $0x2a] sm:$0x1] %v428_v55  ;;  %v965_v56 = vld [vmem:[#allocation3 + $0x20] sm:$0xff]  ;;  %v433_v57 = vld [vmem:[%s432_s20] sm:$0x1]  ;;  %s437_s22 = scalar_lea.vmem [#allocation10], %s436_s9 }
  0xc1   : > { %v981_v58 = vmul.f32 %v1392_v54, %v965_v56  ;;  %434 = vst [vmem:[#allocation3 + $0x2b] sm:$0x1] %v433_v57  ;;  %v438_v59 = vld [vmem:[%s437_s22] sm:$0x1]  ;;  %s465_s2 = sld [smem:[#allocation6 + %s1945_s24]]  ;;  %s469_s10 = sadd.s32 1, %s1945_s24 }
  0xc2   : > { %439 = vst [vmem:[#allocation3 + $0x2c] sm:$0x1] %v438_v59  ;;  %s470_s25 = sld [smem:[#allocation6 + %s469_s10]]  ;;  %s442_s18 = scalar_lea.vmem [#allocation10], %s441_s26 }
  0xc3   : > { %1001 = vadd.xlane.f32.xlu0 %v981_v58  ;;  %v443_v60 = vld [vmem:[%s442_s18] sm:$0x1]  ;;  %s474_s16 = sadd.s32 2, %s1945_s24  ;;  %s447_s15 = scalar_lea.vmem [#allocation10], %s446_s6 }
  0xc4   : > { %444 = vst [vmem:[#allocation3 + $0x2d] sm:$0x1] %v443_v60  ;;  %v448_v61 = vld [vmem:[%s447_s15] sm:$0x1]  ;;  %s1952_s28 = sld [smem:[#allocation5 + %s455_s14]]  ;;  %s479_s9 = sadd.s32 3, %s1945_s24 }
  0xc5   : > { %s475_s23 = sld [smem:[#allocation6 + %s474_s16]]  ;;  %449 = vst [vmem:[#allocation3 + $0x2e] sm:$0x1] %v448_v61  ;;  %s452_s7 = scalar_lea.vmem [#allocation10], %s451_s27 }
  0xc6   : > { %v453_v62 = vld [vmem:[%s452_s7] sm:$0x1]  ;;  %s480_s29 = sld [smem:[#allocation6 + %s479_s9]]  ;;  %s484_s21 = sadd.s32 4, %s1945_s24 }
  0xc7   : > { %454 = vst [vmem:[#allocation3 + $0x2f] sm:$0x1] %v453_v62  ;;  %s485_s26 = sld [smem:[#allocation6 + %s484_s21]]  ;;  %s466_s20 = scalar_lea.vmem [#allocation10], %s465_s2 }
  0xc8   : > { %v467_v63 = vld [vmem:[%s466_s20] sm:$0x1]  ;;  %s489_s6 = sadd.s32 5, %s1945_s24  ;;  %s471_s22 = scalar_lea.vmem [#allocation10], %s470_s25 }
  0xc9   : > { %468 = vst [vmem:[#allocation3 + $0x30] sm:$0x1] %v467_v63  ;;  %v472_v0 = vld [vmem:[%s471_s22] sm:$0x1]  ;;  %s490_s14 = sld [smem:[#allocation6 + %s489_s6]]  ;;  %s494_s10 = sadd.s32 6, %s1945_s24 }
  0xca   : > { %473 = vst [vmem:[#allocation3 + $0x31] sm:$0x1] %v472_v0  ;;  %s495_s18 = sld [smem:[#allocation6 + %s494_s10]]  ;;  %s499_s16 = sadd.s32 7, %s1945_s24 }
  0xcb   : > { %s476_s27 = scalar_lea.vmem [#allocation10], %s475_s23  ;;  %s504_s15 = sadd.s32 7, %s1848_s17 }
  0xcc   : > { %v477_v1 = vld [vmem:[%s476_s27] sm:$0x1]  ;;  %s408_s9 = scalar_lea.vmem [#allocation7], %s1929_s3  ;;  %s500_s7 = sld [smem:[#allocation6 + %s499_s16]] }
  0xcd   : > { %v1394_v2 = vld [vmem:[%s408_s9] ss:$0 sm:$0xff]  ;;  %478 = vst [vmem:[#allocation3 + $0x32] sm:$0x1] %v477_v1  ;;  %s481_s21 = scalar_lea.vmem [#allocation10], %s480_s29  ;;  %s486_s2 = scalar_lea.vmem [#allocation10], %s485_s26 }
  0xce   : > { %v482_v3 = vld [vmem:[%s481_s21] sm:$0x1]  ;;  %v966_v4 = vld [vmem:[#allocation3 + $0x28] sm:$0xff]  ;;  %s1961_s25 = sld [smem:[#allocation5 + %s504_s15]]  ;;  %s1964_s20 = sadd.s32 56, %s1851_s19 }
  0xcf   : > { %483 = vst [vmem:[#allocation3 + $0x33] sm:$0x1] %v482_v3  ;;  %v487_v5 = vld [vmem:[%s486_s2] sm:$0x1]  ;;  %v982_v6 = vmul.f32 %v1394_v2, %v966_v4  ;;  %s514_s3 = sld [smem:[#allocation6 + %s1964_s20]]  ;;  %s491_s24 = scalar_lea.vmem [#allocation10], %s490_s14 }
  0xd0   : > { %488 = vst [vmem:[#allocation3 + $0x34] sm:$0x1] %v487_v5  ;;  %v492_v7 = vld [vmem:[%s491_s24] sm:$0x1]  ;;  %s518_s23 = sadd.s32 1, %s1964_s20  ;;  %s496_s29 = scalar_lea.vmem [#allocation10], %s495_s18 }
  0xd1   : > { %1003 = vadd.xlane.f32.xlu1 %v982_v6  ;;  %493 = vst [vmem:[#allocation3 + $0x35] sm:$0x1] %v492_v7  ;;  %v497_v8 = vld [vmem:[%s496_s29] sm:$0x1]  ;;  %s519_s26 = sld [smem:[#allocation6 + %s518_s23]]  ;;  %s523_s6 = sadd.s32 2, %s1964_s20 }
  0xd2   : > { %498 = vst [vmem:[#allocation3 + $0x36] sm:$0x1] %v497_v8  ;;  %s524_s22 = sld [smem:[#allocation6 + %s523_s6]]  ;;  %s501_s10 = scalar_lea.vmem [#allocation10], %s500_s7 }
  0xd3   : > { %v502_v9 = vld [vmem:[%s501_s10] sm:$0x1]  ;;  %s528_s27 = sadd.s32 3, %s1964_s20  ;;  %s553_s16 = sadd.s32 8, %s1848_s17 }
  0xd4   : > { %503 = vst [vmem:[#allocation3 + $0x37] sm:$0x1] %v502_v9  ;;  %s529_s14 = sld [smem:[#allocation6 + %s528_s27]]  ;;  %s533_s15 = sadd.s32 4, %s1964_s20 }
  0xd5   : > { %s534_s9 = sld [smem:[#allocation6 + %s533_s15]]  ;;  %s515_s21 = scalar_lea.vmem [#allocation10], %s514_s3 }
  0xd6   : > { %v516_v10 = vld [vmem:[%s515_s21] sm:$0x1]  ;;  %s538_s18 = sadd.s32 5, %s1964_s20  ;;  %s543_s2 = sadd.s32 6, %s1964_s20 }
  0xd7   : > { %517 = vst [vmem:[#allocation3 + $0x38] sm:$0x1] %v516_v10  ;;  %s539_s24 = sld [smem:[#allocation6 + %s538_s18]]  ;;  %s520_s23 = scalar_lea.vmem [#allocation10], %s519_s26 }
  0xd8   : > { %v521_v11 = vld [vmem:[%s520_s23] sm:$0x1]  ;;  %s544_s29 = sld [smem:[#allocation6 + %s543_s2]]  ;;  %s457_s7 = scalar_lea.vmem [#allocation7], %s1952_s28 }
  0xd9   : > { %v1396_v12 = vld [vmem:[%s457_s7] ss:$0 sm:$0xff]  ;;  %522 = vst [vmem:[#allocation3 + $0x39] sm:$0x1] %v521_v11  ;;  %s525_s6 = scalar_lea.vmem [#allocation10], %s524_s22  ;;  %s548_s10 = sadd.s32 7, %s1964_s20 }
  0xda   : > { %v526_v13 = vld [vmem:[%s525_s6] sm:$0x1]  ;;  %s549_s27 = sld [smem:[#allocation6 + %s548_s10]]  ;;  %s530_s15 = scalar_lea.vmem [#allocation10], %s529_s14 }
  0xdb   : > { %527 = vst [vmem:[#allocation3 + $0x3a] sm:$0x1] %v526_v13  ;;  %v967_v14 = vld [vmem:[#allocation3 + $0x30] sm:$0xff]  ;;  %v531_v15 = vld [vmem:[%s530_s15] sm:$0x1]  ;;  %s1977_s3 = sadd.s32 64, %s1851_s19 }
  0xdc   : > { %v983_v16 = vmul.f32 %v1396_v12, %v967_v14  ;;  %532 = vst [vmem:[#allocation3 + $0x3b] sm:$0x1] %v531_v15  ;;  %s535_s26 = scalar_lea.vmem [#allocation10], %s534_s9  ;;  %s563_s28 = sld [smem:[#allocation6 + %s1977_s3]] }
  0xdd   : > { %v536_v17 = vld [vmem:[%s535_s26] sm:$0x1]  ;;  %s567_s22 = sadd.s32 1, %s1977_s3  ;;  %s540_s21 = scalar_lea.vmem [#allocation10], %s539_s24 }
  0xde   : > { %537 = vst [vmem:[#allocation3 + $0x3c] sm:$0x1] %v536_v17  ;;  %s568_s20 = sld [smem:[#allocation6 + %s567_s22]]  ;;  %1005 = vadd.xlane.f32.xlu0 %v983_v16  ;;  %v541_v18 = vld [vmem:[%s540_s21] sm:$0x1]  ;;  %s572_s14 = sadd.s32 2, %s1977_s3 }
  0xdf   : > { %542 = vst [vmem:[#allocation3 + $0x3d] sm:$0x1] %v541_v18  ;;  %s545_s18 = scalar_lea.vmem [#allocation10], %s544_s29  ;;  %s1984_s2 = sld [smem:[#allocation5 + %s553_s16]] }
  0xe0   : > { %v546_v19 = vld [vmem:[%s545_s18] sm:$0x1]  ;;  %s573_s23 = sld [smem:[#allocation6 + %s572_s14]]  ;;  %s577_s9 = sadd.s32 3, %s1977_s3 }
  0xe1   : > { %547 = vst [vmem:[#allocation3 + $0x3e] sm:$0x1] %v546_v19  ;;  %s550_s7 = scalar_lea.vmem [#allocation10], %s549_s27  ;;  %s578_s6 = sld [smem:[#allocation6 + %s577_s9]] }
  0xe2   : > { %v551_v20 = vld [vmem:[%s550_s7] sm:$0x1]  ;;  %s582_s10 = sadd.s32 4, %s1977_s3  ;;  %s564_s15 = scalar_lea.vmem [#allocation10], %s563_s28 }
  0xe3   : > { %552 = vst [vmem:[#allocation3 + $0x3f] sm:$0x1] %v551_v20  ;;  %s583_s24 = sld [smem:[#allocation6 + %s582_s10]]  ;;  %v565_v21 = vld [vmem:[%s564_s15] sm:$0x1]  ;;  %s587_s29 = sadd.s32 5, %s1977_s3 }
  0xe4   : > { %566 = vst [vmem:[#allocation3 + $0x40] sm:$0x1] %v565_v21  ;;  %s569_s26 = scalar_lea.vmem [#allocation10], %s568_s20  ;;  %s588_s16 = sld [smem:[#allocation6 + %s587_s29]] }
  0xe5   : > { %v570_v22 = vld [vmem:[%s569_s26] sm:$0x1]  ;;  %s592_s22 = sadd.s32 6, %s1977_s3  ;;  %s597_s14 = sadd.s32 7, %s1977_s3 }
  0xe6   : > { %571 = vst [vmem:[#allocation3 + $0x41] sm:$0x1] %v570_v22  ;;  %s593_s21 = sld [smem:[#allocation6 + %s592_s22]]  ;;  %s574_s27 = scalar_lea.vmem [#allocation10], %s573_s23 }
  0xe7   : > { %v575_v23 = vld [vmem:[%s574_s27] sm:$0x1]  ;;  %s602_s18 = sadd.s32 9, %s1848_s17  ;;  %s506_s9 = scalar_lea.vmem [#allocation7], %s1961_s25 }
  0xe8   : > { %v1398_v24 = vld [vmem:[%s506_s9] ss:$0 sm:$0xff]  ;;  %576 = vst [vmem:[#allocation3 + $0x42] sm:$0x1] %v575_v23  ;;  %s598_s7 = sld [smem:[#allocation6 + %s597_s14]]  ;;  %s579_s10 = scalar_lea.vmem [#allocation10], %s578_s6 }
  0xe9   : > { %v580_v25 = vld [vmem:[%s579_s10] sm:$0x1]  ;;  %s584_s28 = scalar_lea.vmem [#allocation10], %s583_s24  ;;  %s1993_s20 = sld [smem:[#allocation5 + %s602_s18]] }
  0xea   : > { %v968_v26 = vld [vmem:[#allocation3 + $0x38] sm:$0xff]  ;;  %581 = vst [vmem:[#allocation3 + $0x43] sm:$0x1] %v580_v25  ;;  %s1996_s15 = sadd.s32 72, %s1851_s19  ;;  %s589_s3 = scalar_lea.vmem [#allocation10], %s588_s16 }
  0xeb   : > { %v585_v27 = vld [vmem:[%s584_s28] sm:$0x1]  ;;  %v984_v28 = vmul.f32 %v1398_v24, %v968_v26  ;;  %s612_s25 = sld [smem:[#allocation6 + %s1996_s15]]  ;;  %s616_s23 = sadd.s32 1, %s1996_s15 }
  0xec   : > { %586 = vst [vmem:[#allocation3 + $0x44] sm:$0x1] %v585_v27  ;;  %v590_v29 = vld [vmem:[%s589_s3] sm:$0x1]  ;;  %s594_s6 = scalar_lea.vmem [#allocation10], %s593_s21  ;;  %s617_s24 = sld [smem:[#allocation6 + %s616_s23]] }
  0xed   : > { %1007 = vadd.xlane.f32.xlu1 %v984_v28  ;;  %591 = vst [vmem:[#allocation3 + $0x45] sm:$0x1] %v590_v29  ;;  %v595_v30 = vld [vmem:[%s594_s6] sm:$0x1]  ;;  %s621_s29 = sadd.s32 2, %s1996_s15  ;;  %s626_s27 = sadd.s32 3, %s1996_s15 }
  0xee   : > { %596 = vst [vmem:[#allocation3 + $0x46] sm:$0x1] %v595_v30  ;;  %s622_s26 = sld [smem:[#allocation6 + %s621_s29]]  ;;  %s599_s22 = scalar_lea.vmem [#allocation10], %s598_s7 }
  0xef   : > { %v600_v31 = vld [vmem:[%s599_s22] sm:$0x1]  ;;  %s651_s14 = sadd.s32 10, %s1848_s17  ;;  %s627_s16 = sld [smem:[#allocation6 + %s626_s27]] }
  0xf0   : > { %601 = vst [vmem:[#allocation3 + $0x47] sm:$0x1] %v600_v31  ;;  %s631_s18 = sadd.s32 4, %s1996_s15  ;;  %s636_s21 = sadd.s32 5, %s1996_s15 }
  0xf1   : > { %s632_s9 = sld [smem:[#allocation6 + %s631_s18]]  ;;  %s613_s10 = scalar_lea.vmem [#allocation10], %s612_s25 }
  0xf2   : > { %v614_v32 = vld [vmem:[%s613_s10] sm:$0x1]  ;;  %s641_s28 = sadd.s32 6, %s1996_s15  ;;  %s637_s3 = sld [smem:[#allocation6 + %s636_s21]] }
  0xf3   : > { %615 = vst [vmem:[#allocation3 + $0x48] sm:$0x1] %v614_v32  ;;  %s618_s23 = scalar_lea.vmem [#allocation10], %s617_s24  ;;  %s642_s6 = sld [smem:[#allocation6 + %s641_s28]] }
  0xf4   : > { %v619_v33 = vld [vmem:[%s618_s23] sm:$0x1]  ;;  %s555_s7 = scalar_lea.vmem [#allocation7], %s1984_s2  ;;  %s623_s29 = scalar_lea.vmem [#allocation10], %s622_s26 }
  0xf5   : > { %v1400_v34 = vld [vmem:[%s555_s7] ss:$0 sm:$0xff]  ;;  %620 = vst [vmem:[#allocation3 + $0x49] sm:$0x1] %v619_v33  ;;  %s646_s22 = sadd.s32 7, %s1996_s15  ;;  %s628_s18 = scalar_lea.vmem [#allocation10], %s627_s16 }
  0xf6   : > { %v624_v35 = vld [vmem:[%s623_s29] sm:$0x1]  ;;  %s647_s27 = sld [smem:[#allocation6 + %s646_s22]]  ;;  %s2009_s25 = sadd.s32 80, %s1851_s19 }
  0xf7   : > { %625 = vst [vmem:[#allocation3 + $0x4a] sm:$0x1] %v624_v35  ;;  %v969_v36 = vld [vmem:[#allocation3 + $0x40] sm:$0xff]  ;;  %v629_v37 = vld [vmem:[%s628_s18] sm:$0x1]  ;;  %s633_s24 = scalar_lea.vmem [#allocation10], %s632_s9 }
  0xf8   : > { %v985_v38 = vmul.f32 %v1400_v34, %v969_v36  ;;  %630 = vst [vmem:[#allocation3 + $0x4b] sm:$0x1] %v629_v37  ;;  %v634_v39 = vld [vmem:[%s633_s24] sm:$0x1]  ;;  %s661_s2 = sld [smem:[#allocation6 + %s2009_s25]]  ;;  %s665_s26 = sadd.s32 1, %s2009_s25 }
  0xf9   : > { %635 = vst [vmem:[#allocation3 + $0x4c] sm:$0x1] %v634_v39  ;;  %s666_s15 = sld [smem:[#allocation6 + %s665_s26]]  ;;  %s638_s10 = scalar_lea.vmem [#allocation10], %s637_s3 }
  0xfa   : > { %1009 = vadd.xlane.f32.xlu0 %v985_v38  ;;  %v639_v40 = vld [vmem:[%s638_s10] sm:$0x1]  ;;  %s670_s16 = sadd.s32 2, %s2009_s25  ;;  %s643_s21 = scalar_lea.vmem [#allocation10], %s642_s6 }
  0xfb   : > { %640 = vst [vmem:[#allocation3 + $0x4d] sm:$0x1] %v639_v40  ;;  %v644_v41 = vld [vmem:[%s643_s21] sm:$0x1]  ;;  %s2016_s28 = sld [smem:[#allocation5 + %s651_s14]]  ;;  %s675_s9 = sadd.s32 3, %s2009_s25 }
  0xfc   : > { %s671_s23 = sld [smem:[#allocation6 + %s670_s16]]  ;;  %645 = vst [vmem:[#allocation3 + $0x4e] sm:$0x1] %v644_v41  ;;  %s648_s7 = scalar_lea.vmem [#allocation10], %s647_s27 }
  0xfd   : > { %v649_v42 = vld [vmem:[%s648_s7] sm:$0x1]  ;;  %s676_s29 = sld [smem:[#allocation6 + %s675_s9]]  ;;  %s680_s22 = sadd.s32 4, %s2009_s25 }
  0xfe   : > { %650 = vst [vmem:[#allocation3 + $0x4f] sm:$0x1] %v649_v42  ;;  %s681_s3 = sld [smem:[#allocation6 + %s680_s22]]  ;;  %s662_s18 = scalar_lea.vmem [#allocation10], %s661_s2 }
  0xff   : > { %v663_v43 = vld [vmem:[%s662_s18] sm:$0x1]  ;;  %s685_s6 = sadd.s32 5, %s2009_s25  ;;  %s667_s24 = scalar_lea.vmem [#allocation10], %s666_s15 }
 0x100   : > { %664 = vst [vmem:[#allocation3 + $0x50] sm:$0x1] %v663_v43  ;;  %v668_v44 = vld [vmem:[%s667_s24] sm:$0x1]  ;;  %s686_s14 = sld [smem:[#allocation6 + %s685_s6]]  ;;  %s690_s26 = sadd.s32 6, %s2009_s25 }
 0x101   : > { %669 = vst [vmem:[#allocation3 + $0x51] sm:$0x1] %v668_v44  ;;  %s691_s10 = sld [smem:[#allocation6 + %s690_s26]]  ;;  %s695_s16 = sadd.s32 7, %s2009_s25 }
 0x102   : > { %s672_s27 = scalar_lea.vmem [#allocation10], %s671_s23  ;;  %s700_s21 = sadd.s32 11, %s1848_s17 }
 0x103   : > { %v673_v45 = vld [vmem:[%s672_s27] sm:$0x1]  ;;  %s604_s9 = scalar_lea.vmem [#allocation7], %s1993_s20  ;;  %s696_s7 = sld [smem:[#allocation6 + %s695_s16]] }
 0x104   : > { %v1402_v46 = vld [vmem:[%s604_s9] ss:$0 sm:$0xff]  ;;  %674 = vst [vmem:[#allocation3 + $0x52] sm:$0x1] %v673_v45  ;;  %s677_s22 = scalar_lea.vmem [#allocation10], %s676_s29  ;;  %s682_s2 = scalar_lea.vmem [#allocation10], %s681_s3 }
 0x105   : > { %v678_v47 = vld [vmem:[%s677_s22] sm:$0x1]  ;;  %v970_v48 = vld [vmem:[#allocation3 + $0x48] sm:$0xff]  ;;  %s2025_s15 = sld [smem:[#allocation5 + %s700_s21]]  ;;  %s2028_s18 = sadd.s32 88, %s1851_s19 }
 0x106   : > { %679 = vst [vmem:[#allocation3 + $0x53] sm:$0x1] %v678_v47  ;;  %v683_v49 = vld [vmem:[%s682_s2] sm:$0x1]  ;;  %v986_v50 = vmul.f32 %v1402_v46, %v970_v48  ;;  %s710_s20 = sld [smem:[#allocation6 + %s2028_s18]]  ;;  %s687_s25 = scalar_lea.vmem [#allocation10], %s686_s14 }
 0x107   : > { %684 = vst [vmem:[#allocation3 + $0x54] sm:$0x1] %v683_v49  ;;  %v688_v51 = vld [vmem:[%s687_s25] sm:$0x1]  ;;  %s714_s23 = sadd.s32 1, %s2028_s18  ;;  %s692_s29 = scalar_lea.vmem [#allocation10], %s691_s10  ;;  %v1041_v49 = vlaneseq }
 0x108   : > { %1011 = vadd.xlane.f32.xlu1 %v986_v50  ;;  %689 = vst [vmem:[#allocation3 + $0x55] sm:$0x1] %v688_v51  ;;  %v693_v52 = vld [vmem:[%s692_s29] sm:$0x1]  ;;  %s715_s3 = sld [smem:[#allocation6 + %s714_s23]]  ;;  %s719_s6 = sadd.s32 2, %s2028_s18 }
 0x109   : > { %694 = vst [vmem:[#allocation3 + $0x56] sm:$0x1] %v693_v52  ;;  %s720_s24 = sld [smem:[#allocation6 + %s719_s6]]  ;;  %s697_s26 = scalar_lea.vmem [#allocation10], %s696_s7  ;;  %v2101_v51 = vand.u32 127, %v1041_v49 }
 0x10a   : > { %v698_v53 = vld [vmem:[%s697_s26] sm:$0x1]  ;;  %s724_s27 = sadd.s32 3, %s2028_s18  ;;  %s749_s16 = sadd.s32 12, %s1848_s17 }
 0x10b   : > { %699 = vst [vmem:[#allocation3 + $0x57] sm:$0x1] %v698_v53  ;;  %s725_s14 = sld [smem:[#allocation6 + %s724_s27]]  ;;  %s729_s21 = sadd.s32 4, %s2028_s18  ;;  %v1047_v53 = vadd.s32 4294967288, %v2101_v51 }
 0x10c   : > { %s730_s9 = sld [smem:[#allocation6 + %s729_s21]]  ;;  %s711_s22 = scalar_lea.vmem [#allocation10], %s710_s20 }
 0x10d   : > { %v712_v54 = vld [vmem:[%s711_s22] sm:$0x1]  ;;  %s734_s10 = sadd.s32 5, %s2028_s18  ;;  %s739_s2 = sadd.s32 6, %s2028_s18 }
 0x10e   : > { %713 = vst [vmem:[#allocation3 + $0x58] sm:$0x1] %v712_v54  ;;  %s735_s25 = sld [smem:[#allocation6 + %s734_s10]]  ;;  %s716_s23 = scalar_lea.vmem [#allocation10], %s715_s3  ;;  %v2104_v54 = vshrl.u32 %v1041_v49, 7 }
 0x10f   : > { %v717_v55 = vld [vmem:[%s716_s23] sm:$0x1]  ;;  %s740_s29 = sld [smem:[#allocation6 + %s739_s2]]  ;;  %s653_s7 = scalar_lea.vmem [#allocation7], %s2016_s28 }
 0x110   : > { %v1404_v56 = vld [vmem:[%s653_s7] ss:$0 sm:$0xff]  ;;  %718 = vst [vmem:[#allocation3 + $0x59] sm:$0x1] %v717_v55  ;;  %s721_s6 = scalar_lea.vmem [#allocation10], %s720_s24  ;;  %s744_s26 = sadd.s32 7, %s2028_s18 }
 0x111   : > { %v722_v57 = vld [vmem:[%s721_s6] sm:$0x1]  ;;  %s745_s27 = sld [smem:[#allocation6 + %s744_s26]]  ;;  %s726_s21 = scalar_lea.vmem [#allocation10], %s725_s14 }
 0x112   : > { %723 = vst [vmem:[#allocation3 + $0x5a] sm:$0x1] %v722_v57  ;;  %v971_v58 = vld [vmem:[#allocation3 + $0x50] sm:$0xff]  ;;  %v727_v59 = vld [vmem:[%s726_s21] sm:$0x1]  ;;  %s2041_s20 = sadd.s32 96, %s1851_s19 }
 0x113   : > { %v987_v60 = vmul.f32 %v1404_v56, %v971_v58  ;;  %728 = vst [vmem:[#allocation3 + $0x5b] sm:$0x1] %v727_v59  ;;  %s731_s3 = scalar_lea.vmem [#allocation10], %s730_s9  ;;  %s759_s28 = sld [smem:[#allocation6 + %s2041_s20]]  ;;  %v1050_v56 = vsub.s32 %v1047_v53, %v2104_v54  ;;  %v1054_v58 = vadd.s32 4294967280, %v2101_v51  ;;  %v1045_v59 = vsub.s32 %v2101_v51, %v2104_v54 }
 0x114   : > { %v732_v61 = vld [vmem:[%s731_s3] sm:$0x1]  ;;  %s763_s24 = sadd.s32 1, %s2041_s20  ;;  %s736_s22 = scalar_lea.vmem [#allocation10], %s735_s25 }
 0x115   : > { %733 = vst [vmem:[#allocation3 + $0x5c] sm:$0x1] %v732_v61  ;;  %s764_s18 = sld [smem:[#allocation6 + %s763_s24]]  ;;  %1013 = vadd.xlane.f32.xlu0 %v987_v60  ;;  %v737_v62 = vld [vmem:[%s736_s22] sm:$0x1]  ;;  %s768_s14 = sadd.s32 2, %s2041_s20 }
 0x116   : > { %738 = vst [vmem:[#allocation3 + $0x5d] sm:$0x1] %v737_v62  ;;  %s741_s10 = scalar_lea.vmem [#allocation10], %s740_s29  ;;  %s2048_s2 = sld [smem:[#allocation5 + %s749_s16]]  ;;  %v1061_v60 = vadd.s32 4294967272, %v2101_v51  ;;  %v1057_v62 = vsub.s32 %v1054_v58, %v2104_v54 }
 0x117   : > { %v742_v63 = vld [vmem:[%s741_s10] sm:$0x1]  ;;  %s769_s23 = sld [smem:[#allocation6 + %s768_s14]]  ;;  %s773_s9 = sadd.s32 3, %s2041_s20 }
 0x118   : > { %743 = vst [vmem:[#allocation3 + $0x5e] sm:$0x1] %v742_v63  ;;  %s746_s7 = scalar_lea.vmem [#allocation10], %s745_s27  ;;  %s774_s6 = sld [smem:[#allocation6 + %s773_s9]]  ;;  %v1068_v63 = vadd.s32 4294967264, %v2101_v51 }
 0x119   : > { %v747_v0 = vld [vmem:[%s746_s7] sm:$0x1]  ;;  %s778_s26 = sadd.s32 4, %s2041_s20  ;;  %s760_s21 = scalar_lea.vmem [#allocation10], %s759_s28  ;;  %v994_v48 = vpop.xlane.xlu0 %993 }
 0x11a   : > { %748 = vst [vmem:[#allocation3 + $0x5f] sm:$0x1] %v747_v0  ;;  %s779_s25 = sld [smem:[#allocation6 + %s778_s26]]  ;;  %v761_v1 = vld [vmem:[%s760_s21] sm:$0x1]  ;;  %s783_s3 = sadd.s32 5, %s2041_s20 }
 0x11b   : > { %762 = vst [vmem:[#allocation3 + $0x60] sm:$0x1] %v761_v1  ;;  %s765_s29 = scalar_lea.vmem [#allocation10], %s764_s18  ;;  %s784_s16 = sld [smem:[#allocation6 + %s783_s3]]  ;;  %v1046_v1 = vrot.slane %v994_v48, %v1045_v59 }
 0x11c   : > { %v766_v2 = vld [vmem:[%s765_s29] sm:$0x1]  ;;  %s788_s24 = sadd.s32 6, %s2041_s20  ;;  %s793_s14 = sadd.s32 7, %s2041_s20 }
 0x11d   : > { %767 = vst [vmem:[#allocation3 + $0x61] sm:$0x1] %v766_v2  ;;  %s789_s22 = sld [smem:[#allocation6 + %s788_s24]]  ;;  %s770_s27 = scalar_lea.vmem [#allocation10], %s769_s23  ;;  %v1064_v2 = vsub.s32 %v1061_v60, %v2104_v54 }
 0x11e   : > { %v771_v3 = vld [vmem:[%s770_s27] sm:$0x1]  ;;  %s702_s10 = scalar_lea.vmem [#allocation7], %s2025_s15  ;;  %s794_s9 = sld [smem:[#allocation6 + %s793_s14]] }
 0x11f   : > { %v1406_v4 = vld [vmem:[%s702_s10] ss:$0 sm:$0xff]  ;;  %772 = vst [vmem:[#allocation3 + $0x62] sm:$0x1] %v771_v3  ;;  %s775_s7 = scalar_lea.vmem [#allocation10], %s774_s6  ;;  %s798_s18 = sadd.s32 13, %s1848_s17 }
 0x120   : > { %v776_v5 = vld [vmem:[%s775_s7] sm:$0x1]  ;;  %s780_s28 = scalar_lea.vmem [#allocation10], %s779_s25  ;;  %s2058_s26 = sadd.s32 104, %s1851_s19 }
 0x121   : > { %v972_v6 = vld [vmem:[#allocation3 + $0x58] sm:$0xff]  ;;  %777 = vst [vmem:[#allocation3 + $0x63] sm:$0x1] %v776_v5  ;;  %s808_s20 = sld [smem:[#allocation6 + %s2058_s26]]  ;;  %s785_s15 = scalar_lea.vmem [#allocation10], %s784_s16  ;;  %v1075_v5 = vadd.s32 4294967256, %v2101_v51 }
 0x122   : > { %v781_v7 = vld [vmem:[%s780_s28] sm:$0x1]  ;;  %v988_v8 = vmul.f32 %v1406_v4, %v972_v6  ;;  %s812_s23 = sadd.s32 1, %s2058_s26  ;;  %s817_s21 = sadd.s32 2, %s2058_s26 }
 0x123   : > { %782 = vst [vmem:[#allocation3 + $0x64] sm:$0x1] %v781_v7  ;;  %v786_v9 = vld [vmem:[%s785_s15] sm:$0x1]  ;;  %s790_s6 = scalar_lea.vmem [#allocation10], %s789_s22  ;;  %s813_s25 = sld [smem:[#allocation6 + %s812_s23]]  ;;  %v1071_v7 = vsub.s32 %v1068_v63, %v2104_v54 }
 0x124   : > { %1015 = vadd.xlane.f32.xlu1 %v988_v8  ;;  %787 = vst [vmem:[#allocation3 + $0x65] sm:$0x1] %v786_v9  ;;  %v791_v10 = vld [vmem:[%s790_s6] sm:$0x1]  ;;  %s818_s3 = sld [smem:[#allocation6 + %s817_s21]]  ;;  %s795_s29 = scalar_lea.vmem [#allocation10], %s794_s9 }
 0x125   : > { %792 = vst [vmem:[#allocation3 + $0x66] sm:$0x1] %v791_v10  ;;  %v796_v11 = vld [vmem:[%s795_s29] sm:$0x1]  ;;  %s2063_s24 = sld [smem:[#allocation5 + %s798_s18]]  ;;  %s822_s27 = sadd.s32 3, %s2058_s26 }
 0x126   : > { %797 = vst [vmem:[#allocation3 + $0x67] sm:$0x1] %v796_v11  ;;  %s823_s16 = sld [smem:[#allocation6 + %s822_s27]]  ;;  %s827_s14 = sadd.s32 4, %s2058_s26  ;;  %v1082_v8 = vadd.s32 4294967248, %v2101_v51 }
 0x127   : > { %s828_s10 = sld [smem:[#allocation6 + %s827_s14]]  ;;  %s809_s22 = scalar_lea.vmem [#allocation10], %s808_s20  ;;  %v998_v50 = vpop.xlane.xlu1 %997 }
 0x128   : > { %v810_v12 = vld [vmem:[%s809_s22] sm:$0x1]  ;;  %s832_s7 = sadd.s32 5, %s2058_s26  ;;  %s837_s28 = sadd.s32 6, %s2058_s26  ;;  %v1058_v6 = vrot.slane %v998_v50, %v1057_v62 }
 0x129   : > { %811 = vst [vmem:[#allocation3 + $0x68] sm:$0x1] %v810_v12  ;;  %s833_s15 = sld [smem:[#allocation6 + %s832_s7]]  ;;  %s814_s23 = scalar_lea.vmem [#allocation10], %s813_s25  ;;  %v1078_v12 = vsub.s32 %v1075_v5, %v2104_v54 }
 0x12a   : > { %v815_v13 = vld [vmem:[%s814_s23] sm:$0x1]  ;;  %s838_s9 = sld [smem:[#allocation6 + %s837_s28]]  ;;  %s751_s6 = scalar_lea.vmem [#allocation7], %s2048_s2 }
 0x12b   : > { %v1408_v14 = vld [vmem:[%s751_s6] ss:$0 sm:$0xff]  ;;  %816 = vst [vmem:[#allocation3 + $0x69] sm:$0x1] %v815_v13  ;;  %s819_s18 = scalar_lea.vmem [#allocation10], %s818_s3  ;;  %s842_s21 = sadd.s32 7, %s2058_s26 }
 0x12c   : > { %v820_v15 = vld [vmem:[%s819_s18] sm:$0x1]  ;;  %s847_s29 = sadd.s32 14, %s1848_s17  ;;  %s843_s27 = sld [smem:[#allocation6 + %s842_s21]]  ;;  %v1089_v13 = vadd.s32 4294967240, %v2101_v51 }
 0x12d   : > { %821 = vst [vmem:[#allocation3 + $0x6a] sm:$0x1] %v820_v15  ;;  %v973_v16 = vld [vmem:[#allocation3 + $0x60] sm:$0xff]  ;;  %s824_s20 = scalar_lea.vmem [#allocation10], %s823_s16  ;;  %s2073_s14 = sadd.s32 112, %s1851_s19 }
 0x12e   : > { %v825_v17 = vld [vmem:[%s824_s20] sm:$0x1]  ;;  %v989_v18 = vmul.f32 %v1408_v14, %v973_v16  ;;  %s829_s2 = scalar_lea.vmem [#allocation10], %s828_s10  ;;  %s857_s25 = sld [smem:[#allocation6 + %s2073_s14]]  ;;  %v1085_v16 = vsub.s32 %v1082_v8, %v2104_v54 }
 0x12f   : > { %826 = vst [vmem:[#allocation3 + $0x6b] sm:$0x1] %v825_v17  ;;  %v830_v19 = vld [vmem:[%s829_s2] sm:$0x1]  ;;  %s861_s3 = sadd.s32 1, %s2073_s14  ;;  %s834_s22 = scalar_lea.vmem [#allocation10], %s833_s15 }
 0x130   : > { %831 = vst [vmem:[#allocation3 + $0x6c] sm:$0x1] %v830_v19  ;;  %s862_s26 = sld [smem:[#allocation6 + %s861_s3]]  ;;  %1017 = vadd.xlane.f32.xlu0 %v989_v18  ;;  %v835_v20 = vld [vmem:[%s834_s22] sm:$0x1]  ;;  %s866_s16 = sadd.s32 2, %s2073_s14 }
 0x131   : > { %836 = vst [vmem:[#allocation3 + $0x6d] sm:$0x1] %v835_v20  ;;  %s839_s7 = scalar_lea.vmem [#allocation10], %s838_s9  ;;  %s867_s28 = sld [smem:[#allocation6 + %s866_s16]]  ;;  %v1096_v17 = vadd.s32 4294967232, %v2101_v51  ;;  %v1092_v20 = vsub.s32 %v1089_v13, %v2104_v54 }
 0x132   : > { %v840_v21 = vld [vmem:[%s839_s7] sm:$0x1]  ;;  %s871_s23 = sadd.s32 3, %s2073_s14  ;;  %s844_s6 = scalar_lea.vmem [#allocation10], %s843_s27 }
 0x133   : > { %841 = vst [vmem:[#allocation3 + $0x6e] sm:$0x1] %v840_v21  ;;  %v845_v22 = vld [vmem:[%s844_s6] sm:$0x1]  ;;  %s872_s10 = sld [smem:[#allocation6 + %s871_s23]]  ;;  %s876_s18 = sadd.s32 4, %s2073_s14 }
 0x134   : > { %846 = vst [vmem:[#allocation3 + $0x6f] sm:$0x1] %v845_v22  ;;  %s877_s21 = sld [smem:[#allocation6 + %s876_s18]]  ;;  %s858_s15 = scalar_lea.vmem [#allocation10], %s857_s25  ;;  %v996_v52 = vpop.xlane.xlu0 %995  ;;  %v1103_v21 = vadd.s32 4294967224, %v2101_v51 }
 0x135   : > { %v859_v23 = vld [vmem:[%s858_s15] sm:$0x1]  ;;  %s881_s20 = sadd.s32 5, %s2073_s14  ;;  %s886_s3 = sadd.s32 6, %s2073_s14  ;;  %v1051_v61 = vrot.slane %v996_v52, %v1050_v56  ;;  %v1145_v56 = vadd.s32 4294967176, %v2101_v51 }
 0x136   : > { %860 = vst [vmem:[#allocation3 + $0x70] sm:$0x1] %v859_v23  ;;  %s863_s2 = scalar_lea.vmem [#allocation10], %s862_s26  ;;  %s882_s9 = sld [smem:[#allocation6 + %s881_s20]] }
 0x137   : > { %v864_v24 = vld [vmem:[%s863_s2] sm:$0x1]  ;;  %s887_s22 = sld [smem:[#allocation6 + %s886_s3]]  ;;  %s868_s16 = scalar_lea.vmem [#allocation10], %s867_s28  ;;  %v1053_v4 = vsel %vm1052_vm0, %v1051_v61, %v1046_v1  ;;  %v1148_v61 = vsub.s32 %v1145_v56, %v2104_v54 }
 0x138   : > { %865 = vst [vmem:[#allocation3 + $0x71] sm:$0x1] %v864_v24  ;;  %s2084_s27 = sld [smem:[#allocation5 + %s847_s29]]  ;;  %v869_v25 = vld [vmem:[%s868_s16] sm:$0x1]  ;;  %s891_s7 = sadd.s32 7, %s2073_s14  ;;  %v1060_v10 = vsel %vm1059_vm1, %v1058_v6, %v1053_v4  ;;  %v1099_v24 = vsub.s32 %v1096_v17, %v2104_v54 }
 0x139   : > { %s800_s23 = scalar_lea.vmem [#allocation7], %s2063_s24  ;;  %870 = vst [vmem:[#allocation3 + $0x72] sm:$0x1] %v869_v25  ;;  %s892_s25 = sld [smem:[#allocation6 + %s891_s7]] }
 0x13a   : > { %v1410_v26 = vld [vmem:[%s800_s23] ss:$0 sm:$0xff]  ;;  %s873_s6 = scalar_lea.vmem [#allocation10], %s872_s10  ;;  %s878_s26 = scalar_lea.vmem [#allocation10], %s877_s21 }
 0x13b   : > { %v874_v27 = vld [vmem:[%s873_s6] sm:$0x1]  ;;  %v974_v28 = vld [vmem:[#allocation3 + $0x68] sm:$0xff]  ;;  %s2089_s18 = sadd.s32 120, %s1851_s19  ;;  %p2206_p4 = scmp.ne.s32.totalorder %s2194_s12, 0 }
 0x13c   : > { %875 = vst [vmem:[#allocation3 + $0x73] sm:$0x1] %v874_v27  ;;  %v879_v29 = vld [vmem:[%s878_s26] sm:$0x1]  ;;  %v990_v30 = vmul.f32 %v1410_v26, %v974_v28  ;;  %s906_s29 = sld [smem:[#allocation6 + %s2089_s18]]  ;;  %s883_s14 = scalar_lea.vmem [#allocation10], %s882_s9 }
 0x13d   : > { %880 = vst [vmem:[#allocation3 + $0x74] sm:$0x1] %v879_v29  ;;  %v884_v31 = vld [vmem:[%s883_s14] sm:$0x1]  ;;  %s910_s24 = sadd.s32 1, %s2089_s18  ;;  %s888_s28 = scalar_lea.vmem [#allocation10], %s887_s22 }
 0x13e   : > { %1019 = vadd.xlane.f32.xlu1 %v990_v30  ;;  %885 = vst [vmem:[#allocation3 + $0x75] sm:$0x1] %v884_v31  ;;  %v889_v32 = vld [vmem:[%s888_s28] sm:$0x1]  ;;  %s911_s10 = sld [smem:[#allocation6 + %s910_s24]]  ;;  %s915_s19 = sadd.s32 2, %s2089_s18  ;;  %v1106_v30 = vsub.s32 %v1103_v21, %v2104_v54 }
 0x13f   : > { %890 = vst [vmem:[#allocation3 + $0x76] sm:$0x1] %v889_v32  ;;  %s916_s21 = sld [smem:[#allocation6 + %s915_s19]]  ;;  %s893_s15 = scalar_lea.vmem [#allocation10], %s892_s25  ;;  %v1110_v26 = vadd.s32 4294967216, %v2101_v51  ;;  %v1117_v31 = vadd.s32 4294967208, %v2101_v51 }
 0x140   : > { %v894_v33 = vld [vmem:[%s893_s15] sm:$0x1]  ;;  %s920_s20 = sadd.s32 3, %s2089_s18  ;;  %s925_s9 = sadd.s32 4, %s2089_s18 }
 0x141   : > { %895 = vst [vmem:[#allocation3 + $0x77] sm:$0x1] %v894_v33  ;;  %s921_s2 = sld [smem:[#allocation6 + %s920_s20]]  ;;  %s930_s7 = sadd.s32 5, %s2089_s18 }
 0x142   : > { %s926_s3 = sld [smem:[#allocation6 + %s925_s9]]  ;;  %s907_s16 = scalar_lea.vmem [#allocation10], %s906_s29 }
 0x143   : > { %v908_v34 = vld [vmem:[%s907_s16] sm:$0x1]  ;;  %s935_s22 = sadd.s32 6, %s2089_s18  ;;  %s931_s23 = sld [smem:[#allocation6 + %s930_s7]]  ;;  %v1000_v55 = vpop.xlane.xlu1 %999 }
 0x144   : > { %909 = vst [vmem:[#allocation3 + $0x78] sm:$0x1] %v908_v34  ;;  %s912_s6 = scalar_lea.vmem [#allocation10], %s911_s10  ;;  %s936_s26 = sld [smem:[#allocation6 + %s935_s22]]  ;;  %v1065_v9 = vrot.slane %v1000_v55, %v1064_v2  ;;  %v1113_v34 = vsub.s32 %v1110_v26, %v2104_v54 }
 0x145   : > { %v913_v35 = vld [vmem:[%s912_s6] sm:$0x1]  ;;  %s849_s14 = scalar_lea.vmem [#allocation7], %s2084_s27  ;;  %s896_s25 = sadd.s32 15, %s1848_s17 }
 0x146   : > { %v1412_v36 = vld [vmem:[%s849_s14] ss:$0 sm:$0xff]  ;;  %914 = vst [vmem:[#allocation3 + $0x79] sm:$0x1] %v913_v35  ;;  %s917_s24 = scalar_lea.vmem [#allocation10], %s916_s21  ;;  %s940_s28 = sadd.s32 7, %s2089_s18  ;;  %v1067_v18 = vsel %vm1066_vm2, %v1065_v9, %v1060_v10 }
 0x147   : > { %v918_v37 = vld [vmem:[%s917_s24] sm:$0x1]  ;;  %s941_s19 = sld [smem:[#allocation6 + %s940_s28]]  ;;  %s922_s15 = scalar_lea.vmem [#allocation10], %s921_s2  ;;  %v1124_v35 = vadd.s32 4294967200, %v2101_v51 }
 0x148   : > { %919 = vst [vmem:[#allocation3 + $0x7a] sm:$0x1] %v918_v37  ;;  %v975_v38 = vld [vmem:[#allocation3 + $0x70] sm:$0xff]  ;;  %v923_v39 = vld [vmem:[%s922_s15] sm:$0x1]  ;;  %s897_s29 = sld [smem:[#allocation5 + %s896_s25]]  ;;  %s2142_s22 = scalar_lea.hbm %s2187_s4, %s1848_s17 }
 0x149   : > { %v991_v40 = vmul.f32 %v1412_v36, %v975_v38  ;;  %924 = vst [vmem:[#allocation3 + $0x7b] sm:$0x1] %v923_v39  ;;  %s927_s20 = scalar_lea.vmem [#allocation10], %s926_s3  ;;  %s932_s10 = scalar_lea.vmem [#allocation10], %s931_s23  ;;  %v1120_v39 = vsub.s32 %v1117_v31, %v2104_v54 }
 0x14a   : > { %v928_v41 = vld [vmem:[%s927_s20] sm:$0x1]  ;;  %s937_s27 = scalar_lea.vmem [#allocation10], %s936_s26  ;;  %s159_s2 = sand.u32 1, %s1670_s1  }
 0x14b   : > { %929 = vst [vmem:[#allocation3 + $0x7c] sm:$0x1] %v928_v41  ;;  %1021 = vadd.xlane.f32.xlu0 %v991_v40  ;;  %v933_v42 = vld [vmem:[%s932_s10] sm:$0x1]  ;;  %v1131_v41 = vadd.s32 4294967192, %v2101_v51  ;;  %s160_s9 = scalar_lea.vmem [#allocation12], %s159_s2 }
 0x14c   : > { %934 = vst [vmem:[#allocation3 + $0x7d] sm:$0x1] %v933_v42  ;;  %v938_v43 = vld [vmem:[%s937_s27] sm:$0x1]  ;;  %s1167_s3 = sshll.u32 %s160_s9, 4  ;;  %s1155_s23 = scalar_lea.sflag [#allocation9], %s159_s2  ;;  %s2144_s3 = int_to_ptr.vmem [resolvable:$true] %s1167_s3 }
 0x14d   : > { %939 = vst [vmem:[#allocation3 + $0x7e] sm:$0x1] %v938_v43  ;;  %s942_s21 = scalar_lea.vmem [#allocation10], %s941_s19  ;;  %v1134_v48 = vsub.s32 %v1131_v41, %v2104_v54  ;;  %s1606_s6 = scalar_lea.vmem %s2144_s3, 16 }
 0x14e   : > { %v943_v44 = vld [vmem:[%s942_s21] sm:$0x1]  ;;  %s898_s18 = scalar_lea.vmem [#allocation7], %s897_s29  ;;  %p1607_p6 = scmp.ne.s32.totalorder %s2144_s3, %s1606_s6 }
 0x14f   : > { %944 = vst [vmem:[#allocation3 + $0x7f] sm:$0x1] %v943_v44  ;;  %v1414_v45 = vld [vmem:[%s898_s18] ss:$0 sm:$0xff]  ;;  %v1127_v44 = vsub.s32 %v1124_v35, %v2104_v54  ;;  %s1686_s26 = smov [#allocation12]  }
 0x150   : > { %v1002_v57 = vpop.xlane.xlu0 %1001  ;;  %p1608_p9 = pnand %p1607_p6, %p2206_p4  ;;  %s1610_s14 = sshll.u32 %s1686_s26, 4  ;;  %s1611_s14 = int_to_ptr.vmem [resolvable:$false] %s1610_s14 }
 0x151   : > { %v1072_v15 = vrot.slane %v1002_v57, %v1071_v7  ;;  %s1612_s25 = scalar_lea.vmem %s1611_s14, 32  ;;  %p1613_p11 = scmp.lt.s32.totalorder %s2144_s3, %s1611_s14 }
 0x152   : > { %p1609_p10 = pneg %p1608_p9  ;;  %p1614_p12 = scmp.lt.s32.totalorder %s1612_s25, %s1606_s6 }
 0x153   : > { %v1074_v22 = vsel %vm1073_vm3, %v1072_v15, %v1067_v18 }
 0x154   : > { %p1615_p1 = por %p1614_p12, %p1613_p11 }
 0x156   : > { %v976_v46 = vld [vmem:[#allocation3 + $0x78] sm:$0xff]  ;;  %p1616_p2 = pnand %p1615_p1, %p1609_p10 }
 0x157   : > { %v992_v47 = vmul.f32 %v1414_v45, %v976_v46  ;;  %v1138_v45 = vadd.s32 4294967184, %v2101_v51 }
 0x159   : > { %1023 = vadd.xlane.f32.xlu1 %v992_v47  ;;  %v1141_v53 = vsub.s32 %v1138_v45, %v2104_v54 }
 0x15e   : > { %v1004_v0 = vpop.xlane.xlu1 %1003 }
 0x15f   : > { %v1079_v19 = vrot.slane %v1004_v0, %v1078_v12 }
 0x161   : > { %v1081_v28 = vsel %vm1080_vm4, %v1079_v19, %v1074_v22 }
 0x16b   : > { %v1006_v3 = vpop.xlane.xlu0 %1005 }
 0x16c   : > { %v1086_v23 = vrot.slane %v1006_v3, %v1085_v16 }
 0x16e   : > { %v1088_v32 = vsel %vm1087_vm5, %v1086_v23, %v1081_v28 }
 0x17a   : > { %v1008_v11 = vpop.xlane.xlu1 %1007 }
 0x17b   : > { %v1093_v29 = vrot.slane %v1008_v11, %v1092_v20 }
 0x17d   : > { %v1095_v37 = vsel %vm1094_vm6, %v1093_v29, %v1088_v32 }
 0x187   : > { %v1010_v14 = vpop.xlane.xlu0 %1009 }
 0x188   : > { %v1100_v33 = vrot.slane %v1010_v14, %v1099_v24 }
 0x18a   : > { %v1102_v42 = vsel %vm1101_vm7, %v1100_v33, %v1095_v37 }
 0x195   : > { %v1012_v25 = vpop.xlane.xlu1 %1011 }
 0x196   : > { %v1107_v38 = vrot.slane %v1012_v25, %v1106_v30 }
 0x198   : > { %v1109_v46 = vsel %vm1108_vm8, %v1107_v38, %v1102_v42 }
 0x1a2   : > { %v1014_v27 = vpop.xlane.xlu0 %1013 }
 0x1a3   : > { %v1114_v43 = vrot.slane %v1014_v27, %v1113_v34 }
 0x1a5   : > { %v1116_v49 = vsel %vm1115_vm9, %v1114_v43, %v1109_v46 }
 0x1b1   : > { %v1016_v36 = vpop.xlane.xlu1 %1015 }
 0x1b2   : > { %v1121_v47 = vrot.slane %v1016_v36, %v1120_v39 }
 0x1b4   : > { %v1123_v57 = vsel %vm1122_vm10, %v1121_v47, %v1116_v49 }
 0x1bd   : > { %v1018_v40 = vpop.xlane.xlu0 %1017 }
 0x1be   : > { %v1128_v50 = vrot.slane %v1018_v40, %v1127_v44 }
 0x1c0   : > { %v1130_v59 = vsel %vm1129_vm11, %v1128_v50, %v1123_v57 }
 0x1cb   : > { %v1020_v52 = vpop.xlane.xlu1 %1019 }
 0x1cc   : > { %v1135_v58 = vrot.slane %v1020_v52, %v1134_v48 }
 0x1ce   : > { %v1137_v62 = vsel %vm1136_vm12, %v1135_v58, %v1130_v59 }
 0x1d8   : > { %v1022_v55 = vpop.xlane.xlu0 %1021 }
 0x1d9   : > { %v1142_v60 = vrot.slane %v1022_v55, %v1141_v53 }
 0x1db   : > { %v1144_v63 = vsel %vm1143_vm13, %v1142_v60, %v1137_v62 }
 0x1e6   : > { %v1024_v0 = vpop.xlane.xlu1 %1023 }
 0x1e7   : > { %v1149_v1 = vrot.slane %v1024_v0, %v1148_v61 }
 0x1e9   : > { %v1151_v51 = vsel %vm1150_vm14, %v1149_v1, %v1144_v63 }
 0x1ea   : > { %1153 = vst [vmem:[%s160_s9] sm:$0x1] %v1151_v51 }
 0x1eb   : > { %1619 = shalt.err (!%p1616_p2)
}
 0x1ec   : > { %s1620_s17 = scalar_lea.hbm %s2142_s22, 16  ;;  %s1624_s19 = scalar_lea.hbm %s2187_s4, 32 }
 0x1ed   : > { %p1621_p5 = scmp.ne.s32.totalorder %s2142_s22, %s1620_s17  ;;  %p1625_p8 = scmp.lt.u32.totalorder %s2142_s22, %s2187_s4 }
 0x1ee   : > { %p1626_p0 = scmp.lt.u32.totalorder %s1624_s19, %s1620_s17  ;;  %p1628_p6 = scmp.lt.u32.totalorder %s1620_s17, %s2142_s22 }
 0x1ef   : > { %p1622_p7 = pnand %p1621_p5, %p2206_p4 }
 0x1f0   : > { %p1627_p3 = por %p1626_p0, %p1625_p8 }
 0x1f1   : > { %p1623_p13 = pneg %p1622_p7 }
 0x1f2   : > { %p1629_p9 = por %p1628_p6, %p1627_p3 }
 0x1f4   : > { %p1630_p10 = pnand %p1629_p9, %p1623_p13 }
 0x1f6   : > { %1633 = shalt.err (!%p1630_p10)
}
 0x1f7   : > { %1472 = dma.vmem_to_hbm [thread:$0]  (%p2206_p4), %s2144_s3, 16, %s2142_s22, %s1155_s23  }
 0x1f8 PF: > { %p1489_p11 = scmp.ge.s32.totalorder %s1678_s5, 2  ;;  %s1179_s20 = sand.u32 1, %s1666_s0  }
 0x1f9   : > { %p2207_p12 = scmp.ne.s32.totalorder %s2195_s13, 0  ;;  %s1180_s10 = scalar_lea.sflag [#allocation9], %s1179_s20 }
 0x1fb   : > { %p1482_p1 = pnand %p1489_p11, %p2207_p12 }
 0x1fd   : > { %1661 = dma.done.wait (!%p1482_p1), %s1180_s10, 16  }
 0x1fe   : > { %1663 = vsyncadd (!%p1482_p1), %s1180_s10, 4294967280  ;;  %p24_p2 = scmp.ge.s32.totalorder %s1752_s8, 4   ;;  %s2208_s0 = smov %s1670_s1 }
 0x1ff   : > { %s2209_s1 = smov %s1674_s30  ;;  %s2210_s30 = smov %s1763_s11 }
 0x200   : > { %s2211_s5 = smov %s1752_s8  ;;  %26 = sbr.rel (!%p24_p2) target bundleno = 28 (0x1c), region = 213 }
 0x207   :  { %1184 = vsyncpa [#allocation8], 1 }
 0x208   :  { %1186 = vsyncpa [#allocation8 + $0x1], 1 }
 0x209   :  { %1187 = vsyncpa [#allocation11], 1 }
 0x20a   :  { %1188 = vsyncpa [#allocation9], 1 }
 0x20b   :  { %1190 = vsyncpa [#allocation9 + $0x1], 1 }

</bundles_post_ra>
